<compile_context>
chip_gen: v7x
topology: tpu7x:2x2x1
jax: 0.10.0
libtpu: 0.0.40
codegen_flags: <defaults>
</compile_context>

<pallas_src>
import functools

import jax
import jax.numpy as jnp
from jax import lax
from jax.experimental import pallas as pl
from jax.experimental.pallas import tpu as pltpu

BN_EPS = 1e-5
_TM_MAX = 512               # M-tile rows: ~85% HBM roofline per measured numbers.
_MIN_PALLAS_CHANNELS = 64   # below this, lane padding wastes most MXU work -> XLA conv.
_PATCH_BUFFER_COUNT = 2     # sweep 3 on v5e if the patch DMA is exposed.


# ------------------------------ small helpers --------------------------------
def _round_up(x, m):
    return (x + m - 1) // m * m


def _vmem_limit_bytes():
    cap = 128 * 1024 * 1024
    try:
        cap = int(getattr(pltpu.get_tpu_info(), "vmem_capacity_bytes", cap))
    except Exception:
        pass
    # 64 MiB on v5e/v6e (128 MiB physical VMEM), ~48 MiB on v7x (64 MiB physical).
    return max(16 * 1024 * 1024, min(64 * 1024 * 1024, cap - 16 * 1024 * 1024))


_VMEM_LIMIT = _vmem_limit_bytes()


def _choose_tiling(m):
    """Returns (tm, Mp, nt). Even tile count >= 2 keeps both v7x TensorCores busy
    on the 'parallel' M axis (harmless on single-TC v5e/v6e)."""
    nt = -(-m // _TM_MAX)
    nt += nt % 2
    nt = max(2, nt)
    tm = _round_up(-(-m // nt), 8)
    return tm, tm * nt, nt


def _pad2d(a, rows, cols):
    r, c = a.shape
    return jnp.pad(a, ((0, rows - r), (0, cols - c)))


def _pad_rows_with(a, rows, fill_row):
    """Pad rows of `a` up to `rows` with a per-column fill value (broadcast row)."""
    if rows == a.shape[0]:
        return a
    pad = jnp.broadcast_to(fill_row.astype(a.dtype), (rows - a.shape[0], a.shape[1]))
    return jnp.concatenate([a, pad], axis=0)


def _padc(v, c):
    # NOTE: pad channels MUST keep gamma == 0 so the folded BN scale is exactly 0
    # and the (sliced-off) pad lanes stay zero — rsqrt(0 + eps) never leaks.
    return jnp.pad(v.astype(jnp.float32), (0, c - v.shape[0]))


# ----------------------------- Pallas kernels ---------------------------------
def _conv_stats_kernel(*refs, prologues, tm):
    """Pass A.  Per stream:
       - optional prologue: relu(patch * scale_k + shift_k) — the previous layer's
         BN+ReLU folded per K-column (scale/shift tiled 9x in im2col column order),
       - bf16 MXU matmul with f32 accumulation -> raw conv tile (bf16),
       - per-tile partial channel sum / sum-of-squares as [8, C] via an unrolled
         8-row accumulation over the f32 acc (no reshape temps, stays on the VALU).
    """
    n_in = sum(4 if p else 2 for p in prologues)
    ins, outs = refs[:n_in], refs[n_in:]
    ii = 0
    for s, has_pro in enumerate(prologues):
        p_ref, w_ref = ins[ii], ins[ii + 1]
        ii += 2
        if has_pro:
            psc_ref, psh_ref = ins[ii], ins[ii + 1]
            ii += 2
        o_ref, sum_ref, sq_ref = outs[3 * s], outs[3 * s + 1], outs[3 * s + 2]

        p = p_ref[...]
        if has_pro:
            # Folded BN1 + ReLU on the patch tile (VALU work, hides under the MXU).
            p = jnp.maximum(p.astype(jnp.float32) * psc_ref[...] + psh_ref[...], 0.0)
            p = p.astype(jnp.bfloat16)
        acc = jnp.dot(p, w_ref[...], preferred_element_type=jnp.float32)
        o_ref[...] = acc.astype(o_ref.dtype)

        c = acc.shape[-1]
        s_part = jnp.zeros((8, c), jnp.float32)
        q_part = jnp.zeros((8, c), jnp.float32)
        for r in range(tm // 8):                      # unrolled: no (tm,C) temps
            a8 = acc[r * 8:(r + 1) * 8, :]
            s_part = s_part + a8
            q_part = q_part + a8 * a8
        sum_ref[...] = s_part
        sq_ref[...] = q_part


def _bn_apply_kernel(*refs, relu, res_mode):
    """Pass B: y*scale + shift [+ReLU] [+ residual (raw or BN'ed)] — folded
    per-channel scale/shift means 1 mul + 1 add per element (mem-bound)."""
    if res_mode == "bn":
        y_ref, sc_ref, sh_ref, r_ref, rsc_ref, rsh_ref, o_ref = refs
    elif res_mode == "raw":
        y_ref, sc_ref, sh_ref, r_ref, o_ref = refs
    else:
        y_ref, sc_ref, sh_ref, o_ref = refs
    y = y_ref[...].astype(jnp.float32) * sc_ref[...] + sh_ref[...]
    if relu:
        y = jnp.maximum(y, 0.0)
    if res_mode == "bn":
        y = y + (r_ref[...].astype(jnp.float32) * rsc_ref[...] + rsh_ref[...])
    elif res_mode == "raw":
        y = y + r_ref[...].astype(jnp.float32)
    o_ref[...] = y.astype(o_ref.dtype)


# ----------------------------- kernel wrappers --------------------------------
def _patch_spec(tm, kp):
    if _PATCH_BUFFER_COUNT != 2:                       # v5e knob: deeper patch pipeline
        return pl.BlockSpec((tm, kp), lambda i: (i, 0),
                            pipeline_mode=pl.Buffered(_PATCH_BUFFER_COUNT))
    return pl.BlockSpec((tm, kp), lambda i: (i, 0))


def fused_conv_stats(streams, tm):
    """streams: list of (patches [Mp,Kp] bf16, weights [Kp,Cp] bf16, prologue)
    where prologue is None or (scale_k [1,Kp] f32, shift_k [1,Kp] f32).
    Returns per stream: (raw conv out bf16 [Mp,Cp],
                         partial sums f32 [nt*8,Cp], partial sumsq f32 [nt*8,Cp])."""
    mp = streams[0][0].shape[0]
    cp = streams[0][1].shape[1]
    nt = mp // tm

    inputs, in_specs, out_shape, out_specs, prologues = [], [], [], [], []
    flops, bytes_acc = 0, 0
    for (p, w, pro) in streams:
        kp = p.shape[1]
        inputs += [p, w]
        in_specs += [_patch_spec(tm, kp),
                     pl.BlockSpec((kp, cp), lambda i: (0, 0))]   # grid-invariant weights
        prologues.append(pro is not None)
        if pro is not None:
            inputs += [pro[0], pro[1]]
            in_specs += [pl.BlockSpec((1, kp), lambda i: (0, 0)),
                         pl.BlockSpec((1, kp), lambda i: (0, 0))]
            flops += 3 * mp * kp
            bytes_acc += 2 * kp * 4
        out_shape += [jax.ShapeDtypeStruct((mp, cp), jnp.bfloat16),
                      jax.ShapeDtypeStruct((nt * 8, cp), jnp.float32),
                      jax.ShapeDtypeStruct((nt * 8, cp), jnp.float32)]
        out_specs += [pl.BlockSpec((tm, cp), lambda i: (i, 0)),
                      pl.BlockSpec((8, cp), lambda i: (i, 0)),
                      pl.BlockSpec((8, cp), lambda i: (i, 0))]
        flops += 2 * mp * kp * cp
        bytes_acc += p.size * 2 + w.size * 2 + mp * cp * 2 + 2 * nt * 8 * cp * 4

    outs = pl.pallas_call(
        functools.partial(_conv_stats_kernel, prologues=tuple(prologues), tm=tm),
        grid=(nt,),
        in_specs=in_specs,
        out_specs=out_specs,
        out_shape=out_shape,
        compiler_params=pltpu.CompilerParams(
            dimension_semantics=("parallel",),
            vmem_limit_bytes=_VMEM_LIMIT),
        cost_estimate=pl.CostEstimate(flops=flops, transcendentals=0,
                                      bytes_accessed=bytes_acc),
    )(*inputs)
    return [tuple(outs[3 * s: 3 * s + 3]) for s in range(len(streams))]


def fused_bn_apply(y_raw, scale, shift, tm, *, relu, out_dtype,
                   residual=None, res_scale=None, res_shift=None):
    """Pass B wrapper: tiled scale/shift (+ReLU) (+ fused residual add)."""
    mp, cp = y_raw.shape
    nt = mp // tm
    inputs = [y_raw, scale, shift]
    in_specs = [pl.BlockSpec((tm, cp), lambda i: (i, 0)),
                pl.BlockSpec((1, cp), lambda i: (0, 0)),
                pl.BlockSpec((1, cp), lambda i: (0, 0))]
    res_mode = "none"
    if residual is not None:
        inputs.append(residual)
        in_specs.append(pl.BlockSpec((tm, cp), lambda i: (i, 0)))
        if res_scale is not None:
            inputs += [res_scale, res_shift]
            in_specs += [pl.BlockSpec((1, cp), lambda i: (0, 0)),
                         pl.BlockSpec((1, cp), lambda i: (0, 0))]
            res_mode = "bn"
        else:
            res_mode = "raw"

    bytes_acc = sum(int(a.size) * a.dtype.itemsize for a in inputs)
    bytes_acc += mp * cp * jnp.dtype(out_dtype).itemsize
    return pl.pallas_call(
        functools.partial(_bn_apply_kernel, relu=relu, res_mode=res_mode),
        grid=(nt,),
        in_specs=in_specs,
        out_specs=pl.BlockSpec((tm, cp), lambda i: (i, 0)),
        out_shape=jax.ShapeDtypeStruct((mp, cp), out_dtype),
        compiler_params=pltpu.CompilerParams(
            dimension_semantics=("parallel",),
            vmem_limit_bytes=_VMEM_LIMIT),
        cost_estimate=pl.CostEstimate(flops=4 * mp * cp, transcendentals=0,
                                      bytes_accessed=bytes_acc),
    )(*inputs)


def _bn_fold(sum_part, sq_part, count, gamma_pad, beta_pad, eps=BN_EPS):
    """Global batch stats from per-tile partials; fold gamma/beta into per-channel
    scale/shift.  The tiny [C]-sized rsqrt stays outside the hot tile loop."""
    s = jnp.sum(sum_part, axis=0)
    q = jnp.sum(sq_part, axis=0)
    mean = s / count
    var = jnp.maximum(q / count - mean * mean, 0.0)   # clamp f32 cancellation (review)
    scale = gamma_pad * lax.rsqrt(var + eps)          # biased var = PyTorch training norm
    shift = beta_pad - mean * scale
    return scale.reshape(1, -1), shift.reshape(1, -1)


# ------------------------------- JAX glue --------------------------------------
def _im2col_3x3_padded(xp, stride):
    """im2col over an already spatially padded NHWC array (3x3 window).
    Returns ([N*Ho*Wo, 9*C], (N, Ho, Wo)); column order = (dy, dx, channel)."""
    n, hp, wp, c = xp.shape
    ho = (hp - 3) // stride + 1
    wo = (wp - 3) // stride + 1
    cols = [xp[:, dy:dy + stride * ho:stride, dx:dx + stride * wo:stride, :]
            for dy in range(3) for dx in range(3)]
    return jnp.concatenate(cols, axis=-1).reshape(n * ho * wo, 9 * c), (n, ho, wo)


def _w3x3_to_mat(w_oihw):
    """[Cout, Cin, 3, 3] -> [9*Cin, Cout] matching the im2col column order."""
    cout, cin = w_oihw.shape[0], w_oihw.shape[1]
    return jnp.transpose(w_oihw, (2, 3, 1, 0)).reshape(9 * cin, cout)


def residual_block_forward(x_nchw, params, downsample, out_dtype=jnp.float32,
                           force_pallas=False):
    Cin = x_nchw.shape[1]
    Cout = params["conv1_w"].shape[0]
    if not force_pallas and Cout < _MIN_PALLAS_CHANNELS:
        # At tiny channel counts the lane padding makes >70% of the MXU FLOPs and
        # HBM bytes zeros — XLA's native conv is the right tool below ~64 channels.
        return reference_forward(x_nchw, params, downsample).astype(out_dtype)

    # 256-wide output blocks when Cout >= 256 (v6e/v7x 2x256^2 MXU); 128 otherwise
    # (v5e's 4x128^2 MXU is already full at 128).  Each grid step processes the
    # full padded width, so the MXU N dimension is never half-fed.
    lane_out = 256 if Cout >= 256 else 128
    Cp = _round_up(Cout, lane_out)
    stride1 = 2 if downsample else 1

    x = jnp.transpose(x_nchw, (0, 2, 3, 1)).astype(jnp.bfloat16)   # NHWC, bf16 streams

    # ---------------- conv1 pass A: im2col + matmul + BN1 partial stats -------
    x_sp = jnp.pad(x, ((0, 0), (1, 1), (1, 1), (0, 0)))
    p1, (n, ho, wo) = _im2col_3x3_padded(x_sp, stride1)
    M = n * ho * wo
    tm, Mp, _nt = _choose_tiling(M)
    K1p = _round_up(p1.shape[1], 128)
    p1p = _pad2d(p1, Mp, K1p)
    w1p = _pad2d(_w3x3_to_mat(params["conv1_w"]), K1p, Cp).astype(jnp.bfloat16)

    (y1_raw, s1, q1), = fused_conv_stats([(p1p, w1p, None)], tm)
    sc1, sh1 = _bn_fold(s1, q1, M, _padc(params["bn1_g"], Cp), _padc(params["bn1_b"], Cp))

    # ---------------- conv2 pass A (+ fused downsample-shortcut stream) -------
    # BN1 + ReLU are folded into this pass's prologue.  The conv2 im2col border
    # (and any padded M rows) is filled with the per-channel "BN-neutral" value
    # -shift/scale so relu(neutral*scale + shift) == 0, i.e. it reproduces zero
    # padding of the post-BN activation.  (Only inexact if gamma is exactly 0.)
    sc1v, sh1v = sc1[0, :Cout], sh1[0, :Cout]
    neutral = jnp.where(sc1v != 0.0, -sh1v / jnp.where(sc1v != 0.0, sc1v, 1.0), 0.0)
    y1_nhwc = y1_raw[:M, :Cout].reshape(n, ho, wo, Cout)
    y1_sp = jnp.broadcast_to(neutral.astype(jnp.bfloat16), (n, ho + 2, wo + 2, Cout))
    y1_sp = y1_sp.at[:, 1:-1, 1:-1, :].set(y1_nhwc)
    p2, _ = _im2col_3x3_padded(y1_sp, 1)
    K2p = _round_up(p2.shape[1], 128)
    neutral9 = jnp.tile(neutral, 9)
    p2p = _pad2d(_pad_rows_with(p2, Mp, neutral9), Mp, K2p)
    w2p = _pad2d(_w3x3_to_mat(params["conv2_w"]), K2p, Cp).astype(jnp.bfloat16)
    scale9 = _pad2d(jnp.tile(sc1v, 9).reshape(1, -1), 1, K2p)
    shift9 = _pad2d(jnp.tile(sh1v, 9).reshape(1, -1), 1, K2p)
    g2, b2 = _padc(params["bn2_g"], Cp), _padc(params["bn2_b"], Cp)

    if downsample:
        # 1x1-stride-2 shortcut conv as a second matmul stream in the same grid.
        Cip = _round_up(Cin, 128)
        sc_in = x[:, ::2, ::2, :].reshape(M, Cin)
        sc_inp = _pad2d(sc_in, Mp, Cip)
        w_scp = _pad2d(params["sc_conv_w"][:, :, 0, 0].T, Cip, Cp).astype(jnp.bfloat16)

        (y2_raw, s2, q2), (r_raw, rs, rq) = fused_conv_stats(
            [(p2p, w2p, (scale9, shift9)), (sc_inp, w_scp, None)], tm)
        sc2, sh2 = _bn_fold(s2, q2, M, g2, b2)
        rsc, rsh = _bn_fold(rs, rq, M, _padc(params["sc_bn_g"], Cp),
                            _padc(params["sc_bn_b"], Cp))
        out = fused_bn_apply(y2_raw, sc2, sh2, tm, relu=True, out_dtype=out_dtype,
                             residual=r_raw, res_scale=rsc, res_shift=rsh)
    else:
        # Identity shortcut (Cin == Cout).  Residual is streamed in bf16 on purpose
        # (halves its HBM traffic; rounding stays well inside tolerance).
        res = _pad2d(x.reshape(M, Cin), Mp, Cp)
        (y2_raw, s2, q2), = fused_conv_stats([(p2p, w2p, (scale9, shift9))], tm)
        sc2, sh2 = _bn_fold(s2, q2, M, g2, b2)
        out = fused_bn_apply(y2_raw, sc2, sh2, tm, relu=True, out_dtype=out_dtype,
                             residual=res)

    out = out[:M, :Cout].reshape(n, ho, wo, Cout)
    return jnp.transpose(out, (0, 3, 1, 2))                          # back to NCHW


# ---------------------------- reference (pure JAX) -----------------------------
def _ref_conv(x, w, stride, pad):
    return lax.conv_general_dilated(
        x, w, (stride, stride), ((pad, pad), (pad, pad)),
        dimension_numbers=("NCHW", "OIHW", "NCHW"))


def _ref_bn(x, g, b):
    mean = jnp.mean(x, axis=(0, 2, 3), keepdims=True)
    var = jnp.mean((x - mean) ** 2, axis=(0, 2, 3), keepdims=True)
    return (x - mean) * lax.rsqrt(var + BN_EPS) * g.reshape(1, -1, 1, 1) + b.reshape(1, -1, 1, 1)


def reference_forward(x, params, downsample):
    s = 2 if downsample else 1
    y = jnp.maximum(_ref_bn(_ref_conv(x, params["conv1_w"], s, 1),
                            params["bn1_g"], params["bn1_b"]), 0.0)
    y = jnp.maximum(_ref_bn(_ref_conv(y, params["conv2_w"], 1, 1),
                            params["bn2_g"], params["bn2_b"]), 0.0)
    if downsample:
        sc = _ref_bn(_ref_conv(x, params["sc_conv_w"], 2, 0),
                     params["sc_bn_g"], params["sc_bn_b"])
    else:
        sc = x
    return y + sc


# ------------------------------- params init -----------------------------------
def init_params(key, in_channels, out_channels, downsample):
    ks = jax.random.split(key, 8)
    p = {
        "conv1_w": 0.2 * jax.random.normal(ks[0], (out_channels, in_channels, 3, 3), jnp.float32),
        "bn1_g": 1.0 + 0.1 * jax.random.normal(ks[1], (out_channels,), jnp.float32),
        "bn1_b": 0.1 * jax.random.normal(ks[2], (out_channels,), jnp.float32),
        "conv2_w": 0.2 * jax.random.normal(ks[3], (out_channels, out_channels, 3, 3), jnp.float32),
        "bn2_g": 1.0 + 0.1 * jax.random.normal(ks[4], (out_channels,), jnp.float32),
        "bn2_b": 0.1 * jax.random.normal(ks[5], (out_channels,), jnp.float32),
    }
    if downsample:
        p["sc_conv_w"] = 0.3 * jax.random.normal(
            ks[6], (out_channels, in_channels, 1, 1), jnp.float32)
        p["sc_bn_g"] = 1.0 + 0.1 * jax.random.normal(ks[7], (out_channels,), jnp.float32)
        p["sc_bn_b"] = jnp.zeros((out_channels,), jnp.float32)
    return p


# ----------------------------------- main ---------------------------------------
if __name__ == "__main__":
    key = jax.random.PRNGKey(0)
    kx, kp1, kp2 = jax.random.split(key, 3)
    x = jax.random.normal(kx, (2, 4, 16, 16), jnp.float32)   # NCHW, like PyTorch

    fwd = jax.jit(residual_block_forward,
                  static_argnames=("downsample", "out_dtype", "force_pallas"))

    # Case 1: identity shortcut, in=out=4 channels. force_pallas=True exercises the
    # Pallas path even though the toy channel count is below the lane-padding gate.
    params_a = init_params(kp1, 4, 4, downsample=False)
    out_a = jax.block_until_ready(fwd(x, params_a, downsample=False, force_pallas=True))
    ref_a = reference_forward(x, params_a, False)
    assert out_a.shape == (2, 4, 16, 16) and out_a.dtype == jnp.float32
    assert jnp.allclose(out_a, ref_a, atol=5e-2, rtol=5e-2), \
        float(jnp.max(jnp.abs(out_a - ref_a)))

    # Case 2: downsample shortcut (1x1-stride-2 conv + BN), 4 -> 8 channels.
    params_b = init_params(kp2, 4, 8, downsample=True)
    out_b = jax.block_until_ready(fwd(x, params_b, downsample=True, force_pallas=True))
    ref_b = reference_forward(x, params_b, True)
    assert out_b.shape == (2, 8, 8, 8)
    assert jnp.allclose(out_b, ref_b, atol=5e-2, rtol=5e-2), \
        float(jnp.max(jnp.abs(out_b - ref_b)))

    # bf16 output variant (use when the consumer is the next residual block:
    # halves pass-B store traffic).
    out_bf = jax.block_until_ready(
        fwd(x, params_b, downsample=True, out_dtype=jnp.bfloat16, force_pallas=True))
    assert out_bf.dtype == jnp.bfloat16
    assert jnp.allclose(out_bf.astype(jnp.float32), ref_b, atol=1e-1, rtol=1e-1)

    # Tiny-channel gate: without force_pallas, Cout < 64 falls back to XLA conv.
    out_fb = jax.block_until_ready(fwd(x, params_a, downsample=False))
    assert jnp.allclose(out_fb, ref_a, atol=1e-4, rtol=1e-4)

    print("KERNEL_OK")
</pallas_src>

<mosaic_0001>
module attributes {stable_mosaic.version = 11 : i64} {
  func.func @_conv_stats_kernel(%arg0: i32, %arg1: memref<256x128xbf16, #tpu.memory_space<vmem>>, %arg2: memref<128x128xbf16, #tpu.memory_space<vmem>>, %arg3: memref<256x128xbf16, #tpu.memory_space<vmem>>, %arg4: memref<8x128xf32, #tpu.memory_space<vmem>>, %arg5: memref<8x128xf32, #tpu.memory_space<vmem>>) attributes {dimension_semantics = [#tpu.dimension_semantics<parallel>], iteration_bounds = array<i64: 2>, scalar_prefetch = 0 : i64, scratch_operands = 0 : i64, tpu.core_type = #tpu.core_type<tc>, window_params = [{transform_indices = @transform_0, window_bounds = array<i64: 256, 128>}, {pipeline_mode = #tpu.pipeline_mode<synchronous>, transform_indices = @transform_1, window_bounds = array<i64: 128, 128>}, {transform_indices = @transform_2, window_bounds = array<i64: 256, 128>}, {transform_indices = @transform_3, window_bounds = array<i64: 8, 128>}, {transform_indices = @transform_4, window_bounds = array<i64: 8, 128>}]} {
    %c0 = arith.constant 0 : index
    %c0_0 = arith.constant 0 : index
    %0 = vector.load %arg1[%c0, %c0_0] : memref<256x128xbf16, #tpu.memory_space<vmem>>, vector<256x128xbf16>
    %c0_1 = arith.constant 0 : index
    %c0_2 = arith.constant 0 : index
    %1 = vector.load %arg2[%c0_1, %c0_2] : memref<128x128xbf16, #tpu.memory_space<vmem>>, vector<128x128xbf16>
    %cst = arith.constant dense<0.000000e+00> : vector<256x128xf32>
    %2 = tpu.matmul %0, %1, %cst {dimension_numbers = #tpu.dot_dimension_numbers<[1], [0], [0], [1], [0, 0, 1, 1], [], []>} : vector<256x128xbf16>, vector<128x128xbf16>, vector<256x128xf32> -> vector<256x128xf32>
    %3 = arith.truncf %2 : vector<256x128xf32> to vector<256x128xbf16>
    %c0_3 = arith.constant 0 : index
    %c0_4 = arith.constant 0 : index
    %4 = vector.load %arg3[%c0_3, %c0_4] : memref<256x128xbf16, #tpu.memory_space<vmem>>, vector<256x128xbf16>
    tpu.vector_store %arg3[%c0_3, %c0_4], %3 {strides = array<i32>} : memref<256x128xbf16, #tpu.memory_space<vmem>>, vector<256x128xbf16>,
    %cst_5 = arith.constant 0.000000e+00 : f32
    %5 = vector.broadcast %cst_5 : f32 to vector<8x128xf32>
    %cst_6 = arith.constant 0.000000e+00 : f32
    %6 = vector.broadcast %cst_6 : f32 to vector<8x128xf32>
    %7 = vector.extract_strided_slice %2 {offsets = [0, 0], sizes = [8, 128], strides = [1, 1]} : vector<256x128xf32> to vector<8x128xf32>
    %8 = arith.addf %5, %7 : vector<8x128xf32>
    %9 = arith.mulf %7, %7 : vector<8x128xf32>
    %10 = arith.addf %6, %9 : vector<8x128xf32>
    %11 = vector.extract_strided_slice %2 {offsets = [8, 0], sizes = [8, 128], strides = [1, 1]} : vector<256x128xf32> to vector<8x128xf32>
    %12 = arith.addf %8, %11 : vector<8x128xf32>
    %13 = arith.mulf %11, %11 : vector<8x128xf32>
    %14 = arith.addf %10, %13 : vector<8x128xf32>
    %15 = vector.extract_strided_slice %2 {offsets = [16, 0], sizes = [8, 128], strides = [1, 1]} : vector<256x128xf32> to vector<8x128xf32>
    %16 = arith.addf %12, %15 : vector<8x128xf32>
    %17 = arith.mulf %15, %15 : vector<8x128xf32>
    %18 = arith.addf %14, %17 : vector<8x128xf32>
    %19 = vector.extract_strided_slice %2 {offsets = [24, 0], sizes = [8, 128], strides = [1, 1]} : vector<256x128xf32> to vector<8x128xf32>
    %20 = arith.addf %16, %19 : vector<8x128xf32>
    %21 = arith.mulf %19, %19 : vector<8x128xf32>
    %22 = arith.addf %18, %21 : vector<8x128xf32>
    %23 = vector.extract_strided_slice %2 {offsets = [32, 0], sizes = [8, 128], strides = [1, 1]} : vector<256x128xf32> to vector<8x128xf32>
    %24 = arith.addf %20, %23 : vector<8x128xf32>
    %25 = arith.mulf %23, %23 : vector<8x128xf32>
    %26 = arith.addf %22, %25 : vector<8x128xf32>
    %27 = vector.extract_strided_slice %2 {offsets = [40, 0], sizes = [8, 128], strides = [1, 1]} : vector<256x128xf32> to vector<8x128xf32>
    %28 = arith.addf %24, %27 : vector<8x128xf32>
    %29 = arith.mulf %27, %27 : vector<8x128xf32>
    %30 = arith.addf %26, %29 : vector<8x128xf32>
    %31 = vector.extract_strided_slice %2 {offsets = [48, 0], sizes = [8, 128], strides = [1, 1]} : vector<256x128xf32> to vector<8x128xf32>
    %32 = arith.addf %28, %31 : vector<8x128xf32>
    %33 = arith.mulf %31, %31 : vector<8x128xf32>
    %34 = arith.addf %30, %33 : vector<8x128xf32>
    %35 = vector.extract_strided_slice %2 {offsets = [56, 0], sizes = [8, 128], strides = [1, 1]} : vector<256x128xf32> to vector<8x128xf32>
    %36 = arith.addf %32, %35 : vector<8x128xf32>
    %37 = arith.mulf %35, %35 : vector<8x128xf32>
    %38 = arith.addf %34, %37 : vector<8x128xf32>
    %39 = vector.extract_strided_slice %2 {offsets = [64, 0], sizes = [8, 128], strides = [1, 1]} : vector<256x128xf32> to vector<8x128xf32>
    %40 = arith.addf %36, %39 : vector<8x128xf32>
    %41 = arith.mulf %39, %39 : vector<8x128xf32>
    %42 = arith.addf %38, %41 : vector<8x128xf32>
    %43 = vector.extract_strided_slice %2 {offsets = [72, 0], sizes = [8, 128], strides = [1, 1]} : vector<256x128xf32> to vector<8x128xf32>
    %44 = arith.addf %40, %43 : vector<8x128xf32>
    %45 = arith.mulf %43, %43 : vector<8x128xf32>
    %46 = arith.addf %42, %45 : vector<8x128xf32>
    %47 = vector.extract_strided_slice %2 {offsets = [80, 0], sizes = [8, 128], strides = [1, 1]} : vector<256x128xf32> to vector<8x128xf32>
    %48 = arith.addf %44, %47 : vector<8x128xf32>
    %49 = arith.mulf %47, %47 : vector<8x128xf32>
    %50 = arith.addf %46, %49 : vector<8x128xf32>
    %51 = vector.extract_strided_slice %2 {offsets = [88, 0], sizes = [8, 128], strides = [1, 1]} : vector<256x128xf32> to vector<8x128xf32>
    %52 = arith.addf %48, %51 : vector<8x128xf32>
    %53 = arith.mulf %51, %51 : vector<8x128xf32>
    %54 = arith.addf %50, %53 : vector<8x128xf32>
    %55 = vector.extract_strided_slice %2 {offsets = [96, 0], sizes = [8, 128], strides = [1, 1]} : vector<256x128xf32> to vector<8x128xf32>
    %56 = arith.addf %52, %55 : vector<8x128xf32>
    %57 = arith.mulf %55, %55 : vector<8x128xf32>
    %58 = arith.addf %54, %57 : vector<8x128xf32>
    %59 = vector.extract_strided_slice %2 {offsets = [104, 0], sizes = [8, 128], strides = [1, 1]} : vector<256x128xf32> to vector<8x128xf32>
    %60 = arith.addf %56, %59 : vector<8x128xf32>
    %61 = arith.mulf %59, %59 : vector<8x128xf32>
    %62 = arith.addf %58, %61 : vector<8x128xf32>
    %63 = vector.extract_strided_slice %2 {offsets = [112, 0], sizes = [8, 128], strides = [1, 1]} : vector<256x128xf32> to vector<8x128xf32>
    %64 = arith.addf %60, %63 : vector<8x128xf32>
    %65 = arith.mulf %63, %63 : vector<8x128xf32>
    %66 = arith.addf %62, %65 : vector<8x128xf32>
    %67 = vector.extract_strided_slice %2 {offsets = [120, 0], sizes = [8, 128], strides = [1, 1]} : vector<256x128xf32> to vector<8x128xf32>
    %68 = arith.addf %64, %67 : vector<8x128xf32>
    %69 = arith.mulf %67, %67 : vector<8x128xf32>
    %70 = arith.addf %66, %69 : vector<8x128xf32>
    %71 = vector.extract_strided_slice %2 {offsets = [128, 0], sizes = [8, 128], strides = [1, 1]} : vector<256x128xf32> to vector<8x128xf32>
    %72 = arith.addf %68, %71 : vector<8x128xf32>
    %73 = arith.mulf %71, %71 : vector<8x128xf32>
    %74 = arith.addf %70, %73 : vector<8x128xf32>
    %75 = vector.extract_strided_slice %2 {offsets = [136, 0], sizes = [8, 128], strides = [1, 1]} : vector<256x128xf32> to vector<8x128xf32>
    %76 = arith.addf %72, %75 : vector<8x128xf32>
    %77 = arith.mulf %75, %75 : vector<8x128xf32>
    %78 = arith.addf %74, %77 : vector<8x128xf32>
    %79 = vector.extract_strided_slice %2 {offsets = [144, 0], sizes = [8, 128], strides = [1, 1]} : vector<256x128xf32> to vector<8x128xf32>
    %80 = arith.addf %76, %79 : vector<8x128xf32>
    %81 = arith.mulf %79, %79 : vector<8x128xf32>
    %82 = arith.addf %78, %81 : vector<8x128xf32>
    %83 = vector.extract_strided_slice %2 {offsets = [152, 0], sizes = [8, 128], strides = [1, 1]} : vector<256x128xf32> to vector<8x128xf32>
    %84 = arith.addf %80, %83 : vector<8x128xf32>
    %85 = arith.mulf %83, %83 : vector<8x128xf32>
    %86 = arith.addf %82, %85 : vector<8x128xf32>
    %87 = vector.extract_strided_slice %2 {offsets = [160, 0], sizes = [8, 128], strides = [1, 1]} : vector<256x128xf32> to vector<8x128xf32>
    %88 = arith.addf %84, %87 : vector<8x128xf32>
    %89 = arith.mulf %87, %87 : vector<8x128xf32>
    %90 = arith.addf %86, %89 : vector<8x128xf32>
    %91 = vector.extract_strided_slice %2 {offsets = [168, 0], sizes = [8, 128], strides = [1, 1]} : vector<256x128xf32> to vector<8x128xf32>
    %92 = arith.addf %88, %91 : vector<8x128xf32>
    %93 = arith.mulf %91, %91 : vector<8x128xf32>
    %94 = arith.addf %90, %93 : vector<8x128xf32>
    %95 = vector.extract_strided_slice %2 {offsets = [176, 0], sizes = [8, 128], strides = [1, 1]} : vector<256x128xf32> to vector<8x128xf32>
    %96 = arith.addf %92, %95 : vector<8x128xf32>
    %97 = arith.mulf %95, %95 : vector<8x128xf32>
    %98 = arith.addf %94, %97 : vector<8x128xf32>
    %99 = vector.extract_strided_slice %2 {offsets = [184, 0], sizes = [8, 128], strides = [1, 1]} : vector<256x128xf32> to vector<8x128xf32>
    %100 = arith.addf %96, %99 : vector<8x128xf32>
    %101 = arith.mulf %99, %99 : vector<8x128xf32>
    %102 = arith.addf %98, %101 : vector<8x128xf32>
    %103 = vector.extract_strided_slice %2 {offsets = [192, 0], sizes = [8, 128], strides = [1, 1]} : vector<256x128xf32> to vector<8x128xf32>
    %104 = arith.addf %100, %103 : vector<8x128xf32>
    %105 = arith.mulf %103, %103 : vector<8x128xf32>
    %106 = arith.addf %102, %105 : vector<8x128xf32>
    %107 = vector.extract_strided_slice %2 {offsets = [200, 0], sizes = [8, 128], strides = [1, 1]} : vector<256x128xf32> to vector<8x128xf32>
    %108 = arith.addf %104, %107 : vector<8x128xf32>
    %109 = arith.mulf %107, %107 : vector<8x128xf32>
    %110 = arith.addf %106, %109 : vector<8x128xf32>
    %111 = vector.extract_strided_slice %2 {offsets = [208, 0], sizes = [8, 128], strides = [1, 1]} : vector<256x128xf32> to vector<8x128xf32>
    %112 = arith.addf %108, %111 : vector<8x128xf32>
    %113 = arith.mulf %111, %111 : vector<8x128xf32>
    %114 = arith.addf %110, %113 : vector<8x128xf32>
    %115 = vector.extract_strided_slice %2 {offsets = [216, 0], sizes = [8, 128], strides = [1, 1]} : vector<256x128xf32> to vector<8x128xf32>
    %116 = arith.addf %112, %115 : vector<8x128xf32>
    %117 = arith.mulf %115, %115 : vector<8x128xf32>
    %118 = arith.addf %114, %117 : vector<8x128xf32>
    %119 = vector.extract_strided_slice %2 {offsets = [224, 0], sizes = [8, 128], strides = [1, 1]} : vector<256x128xf32> to vector<8x128xf32>
    %120 = arith.addf %116, %119 : vector<8x128xf32>
    %121 = arith.mulf %119, %119 : vector<8x128xf32>
    %122 = arith.addf %118, %121 : vector<8x128xf32>
    %123 = vector.extract_strided_slice %2 {offsets = [232, 0], sizes = [8, 128], strides = [1, 1]} : vector<256x128xf32> to vector<8x128xf32>
    %124 = arith.addf %120, %123 : vector<8x128xf32>
    %125 = arith.mulf %123, %123 : vector<8x128xf32>
    %126 = arith.addf %122, %125 : vector<8x128xf32>
    %127 = vector.extract_strided_slice %2 {offsets = [240, 0], sizes = [8, 128], strides = [1, 1]} : vector<256x128xf32> to vector<8x128xf32>
    %128 = arith.addf %124, %127 : vector<8x128xf32>
    %129 = arith.mulf %127, %127 : vector<8x128xf32>
    %130 = arith.addf %126, %129 : vector<8x128xf32>
    %131 = vector.extract_strided_slice %2 {offsets = [248, 0], sizes = [8, 128], strides = [1, 1]} : vector<256x128xf32> to vector<8x128xf32>
    %132 = arith.addf %128, %131 : vector<8x128xf32>
    %133 = arith.mulf %131, %131 : vector<8x128xf32>
    %134 = arith.addf %130, %133 : vector<8x128xf32>
    %c0_7 = arith.constant 0 : index
    %c0_8 = arith.constant 0 : index
    %135 = vector.load %arg4[%c0_7, %c0_8] : memref<8x128xf32, #tpu.memory_space<vmem>>, vector<8x128xf32>
    tpu.vector_store %arg4[%c0_7, %c0_8], %132 {strides = array<i32>} : memref<8x128xf32, #tpu.memory_space<vmem>>, vector<8x128xf32>,
    %c0_9 = arith.constant 0 : index
    %c0_10 = arith.constant 0 : index
    %136 = vector.load %arg5[%c0_9, %c0_10] : memref<8x128xf32, #tpu.memory_space<vmem>>, vector<8x128xf32>
    tpu.vector_store %arg5[%c0_9, %c0_10], %134 {strides = array<i32>} : memref<8x128xf32, #tpu.memory_space<vmem>>, vector<8x128xf32>,
    return
  }
  func.func @transform_0(%arg0: i32) -> (i32, i32) {
    %c0_i32 = arith.constant 0 : i32
    %c0_i32_0 = arith.constant 0 : i32
    return %arg0, %c0_i32 : i32, i32
  }
  func.func @transform_1(%arg0: i32) -> (i32, i32) {
    %c0_i32 = arith.constant 0 : i32
    %c0_i32_0 = arith.constant 0 : i32
    %c0_i32_1 = arith.constant 0 : i32
    return %c0_i32, %c0_i32_0 : i32, i32
  }
  func.func @transform_2(%arg0: i32) -> (i32, i32) {
    %c0_i32 = arith.constant 0 : i32
    %c0_i32_0 = arith.constant 0 : i32
    return %arg0, %c0_i32 : i32, i32
  }
  func.func @transform_3(%arg0: i32) -> (i32, i32) {
    %c0_i32 = arith.constant 0 : i32
    %c0_i32_0 = arith.constant 0 : i32
    return %arg0, %c0_i32 : i32, i32
  }
  func.func @transform_4(%arg0: i32) -> (i32, i32) {
    %c0_i32 = arith.constant 0 : i32
    %c0_i32_0 = arith.constant 0 : i32
    return %arg0, %c0_i32 : i32, i32
  }
}

module attributes {stable_mosaic.version = 11 : i64} {
  func.func @_bn_apply_kernel(%arg0: i32, %arg1: memref<256x128xbf16, #tpu.memory_space<vmem>>, %arg2: memref<1x128xf32, #tpu.memory_space<vmem>>, %arg3: memref<1x128xf32, #tpu.memory_space<vmem>>, %arg4: memref<256x128xbf16, #tpu.memory_space<vmem>>, %arg5: memref<256x128xf32, #tpu.memory_space<vmem>>) attributes {dimension_semantics = [#tpu.dimension_semantics<parallel>], iteration_bounds = array<i64: 2>, scalar_prefetch = 0 : i64, scratch_operands = 0 : i64, tpu.core_type = #tpu.core_type<tc>, window_params = [{transform_indices = @transform_0, window_bounds = array<i64: 256, 128>}, {pipeline_mode = #tpu.pipeline_mode<synchronous>, transform_indices = @transform_1, window_bounds = array<i64: 1, 128>}, {pipeline_mode = #tpu.pipeline_mode<synchronous>, transform_indices = @transform_2, window_bounds = array<i64: 1, 128>}, {transform_indices = @transform_3, window_bounds = array<i64: 256, 128>}, {transform_indices = @transform_4, window_bounds = array<i64: 256, 128>}]} {
    %c0 = arith.constant 0 : index
    %c0_0 = arith.constant 0 : index
    %0 = vector.load %arg1[%c0, %c0_0] : memref<256x128xbf16, #tpu.memory_space<vmem>>, vector<256x128xbf16>
    %1 = arith.extf %0 : vector<256x128xbf16> to vector<256x128xf32>
    %c0_1 = arith.constant 0 : index
    %c0_2 = arith.constant 0 : index
    %2 = vector.load %arg2[%c0_1, %c0_2] : memref<1x128xf32, #tpu.memory_space<vmem>>, vector<1x128xf32>
    %3 = vector.broadcast %2 : vector<1x128xf32> to vector<256x128xf32>
    %4 = arith.mulf %1, %3 : vector<256x128xf32>
    %c0_3 = arith.constant 0 : index
    %c0_4 = arith.constant 0 : index
    %5 = vector.load %arg3[%c0_3, %c0_4] : memref<1x128xf32, #tpu.memory_space<vmem>>, vector<1x128xf32>
    %6 = vector.broadcast %5 : vector<1x128xf32> to vector<256x128xf32>
    %7 = arith.addf %4, %6 : vector<256x128xf32>
    %cst = arith.constant 0.000000e+00 : f32
    %8 = vector.broadcast %cst : f32 to vector<256x128xf32>
    %9 = arith.maximumf %7, %8 : vector<256x128xf32>
    %c0_5 = arith.constant 0 : index
    %c0_6 = arith.constant 0 : index
    %10 = vector.load %arg4[%c0_5, %c0_6] : memref<256x128xbf16, #tpu.memory_space<vmem>>, vector<256x128xbf16>
    %11 = arith.extf %10 : vector<256x128xbf16> to vector<256x128xf32>
    %12 = arith.addf %9, %11 : vector<256x128xf32>
    %c0_7 = arith.constant 0 : index
    %c0_8 = arith.constant 0 : index
    %13 = vector.load %arg5[%c0_7, %c0_8] : memref<256x128xf32, #tpu.memory_space<vmem>>, vector<256x128xf32>
    tpu.vector_store %arg5[%c0_7, %c0_8], %12 {strides = array<i32>} : memref<256x128xf32, #tpu.memory_space<vmem>>, vector<256x128xf32>,
    return
  }
  func.func @transform_0(%arg0: i32) -> (i32, i32) {
    %c0_i32 = arith.constant 0 : i32
    %c0_i32_0 = arith.constant 0 : i32
    return %arg0, %c0_i32 : i32, i32
  }
  func.func @transform_1(%arg0: i32) -> (i32, i32) {
    %c0_i32 = arith.constant 0 : i32
    %c0_i32_0 = arith.constant 0 : i32
    %c0_i32_1 = arith.constant 0 : i32
    return %c0_i32, %c0_i32_0 : i32, i32
  }
  func.func @transform_2(%arg0: i32) -> (i32, i32) {
    %c0_i32 = arith.constant 0 : i32
    %c0_i32_0 = arith.constant 0 : i32
    %c0_i32_1 = arith.constant 0 : i32
    return %c0_i32, %c0_i32_0 : i32, i32
  }
  func.func @transform_3(%arg0: i32) -> (i32, i32) {
    %c0_i32 = arith.constant 0 : i32
    %c0_i32_0 = arith.constant 0 : i32
    return %arg0, %c0_i32 : i32, i32
  }
  func.func @transform_4(%arg0: i32) -> (i32, i32) {
    %c0_i32 = arith.constant 0 : i32
    %c0_i32_0 = arith.constant 0 : i32
    return %arg0, %c0_i32 : i32, i32
  }
}

module attributes {stable_mosaic.version = 11 : i64} {
  func.func @_conv_stats_kernel(%arg0: i32, %arg1: memref<256x128xbf16, #tpu.memory_space<vmem>>, %arg2: memref<128x128xbf16, #tpu.memory_space<vmem>>, %arg3: memref<1x128xf32, #tpu.memory_space<vmem>>, %arg4: memref<1x128xf32, #tpu.memory_space<vmem>>, %arg5: memref<256x128xbf16, #tpu.memory_space<vmem>>, %arg6: memref<8x128xf32, #tpu.memory_space<vmem>>, %arg7: memref<8x128xf32, #tpu.memory_space<vmem>>) attributes {dimension_semantics = [#tpu.dimension_semantics<parallel>], iteration_bounds = array<i64: 2>, scalar_prefetch = 0 : i64, scratch_operands = 0 : i64, tpu.core_type = #tpu.core_type<tc>, window_params = [{transform_indices = @transform_0, window_bounds = array<i64: 256, 128>}, {pipeline_mode = #tpu.pipeline_mode<synchronous>, transform_indices = @transform_1, window_bounds = array<i64: 128, 128>}, {pipeline_mode = #tpu.pipeline_mode<synchronous>, transform_indices = @transform_2, window_bounds = array<i64: 1, 128>}, {pipeline_mode = #tpu.pipeline_mode<synchronous>, transform_indices = @transform_3, window_bounds = array<i64: 1, 128>}, {transform_indices = @transform_4, window_bounds = array<i64: 256, 128>}, {transform_indices = @transform_5, window_bounds = array<i64: 8, 128>}, {transform_indices = @transform_6, window_bounds = array<i64: 8, 128>}]} {
    %c0 = arith.constant 0 : index
    %c0_0 = arith.constant 0 : index
    %0 = vector.load %arg1[%c0, %c0_0] : memref<256x128xbf16, #tpu.memory_space<vmem>>, vector<256x128xbf16>
    %1 = arith.extf %0 : vector<256x128xbf16> to vector<256x128xf32>
    %c0_1 = arith.constant 0 : index
    %c0_2 = arith.constant 0 : index
    %2 = vector.load %arg3[%c0_1, %c0_2] : memref<1x128xf32, #tpu.memory_space<vmem>>, vector<1x128xf32>
    %3 = vector.broadcast %2 : vector<1x128xf32> to vector<256x128xf32>
    %4 = arith.mulf %1, %3 : vector<256x128xf32>
    %c0_3 = arith.constant 0 : index
    %c0_4 = arith.constant 0 : index
    %5 = vector.load %arg4[%c0_3, %c0_4] : memref<1x128xf32, #tpu.memory_space<vmem>>, vector<1x128xf32>
    %6 = vector.broadcast %5 : vector<1x128xf32> to vector<256x128xf32>
    %7 = arith.addf %4, %6 : vector<256x128xf32>
    %cst = arith.constant 0.000000e+00 : f32
    %8 = vector.broadcast %cst : f32 to vector<256x128xf32>
    %9 = arith.maximumf %7, %8 : vector<256x128xf32>
    %10 = arith.truncf %9 : vector<256x128xf32> to vector<256x128xbf16>
    %c0_5 = arith.constant 0 : index
    %c0_6 = arith.constant 0 : index
    %11 = vector.load %arg2[%c0_5, %c0_6] : memref<128x128xbf16, #tpu.memory_space<vmem>>, vector<128x128xbf16>
    %cst_7 = arith.constant dense<0.000000e+00> : vector<256x128xf32>
    %12 = tpu.matmul %10, %11, %cst_7 {dimension_numbers = #tpu.dot_dimension_numbers<[1], [0], [0], [1], [0, 0, 1, 1], [], []>} : vector<256x128xbf16>, vector<128x128xbf16>, vector<256x128xf32> -> vector<256x128xf32>
    %13 = arith.truncf %12 : vector<256x128xf32> to vector<256x128xbf16>
    %c0_8 = arith.constant 0 : index
    %c0_9 = arith.constant 0 : index
    %14 = vector.load %arg5[%c0_8, %c0_9] : memref<256x128xbf16, #tpu.memory_space<vmem>>, vector<256x128xbf16>
    tpu.vector_store %arg5[%c0_8, %c0_9], %13 {strides = array<i32>} : memref<256x128xbf16, #tpu.memory_space<vmem>>, vector<256x128xbf16>,
    %cst_10 = arith.constant 0.000000e+00 : f32
    %15 = vector.broadcast %cst_10 : f32 to vector<8x128xf32>
    %cst_11 = arith.constant 0.000000e+00 : f32
    %16 = vector.broadcast %cst_11 : f32 to vector<8x128xf32>
    %17 = vector.extract_strided_slice %12 {offsets = [0, 0], sizes = [8, 128], strides = [1, 1]} : vector<256x128xf32> to vector<8x128xf32>
    %18 = arith.addf %15, %17 : vector<8x128xf32>
    %19 = arith.mulf %17, %17 : vector<8x128xf32>
    %20 = arith.addf %16, %19 : vector<8x128xf32>
    %21 = vector.extract_strided_slice %12 {offsets = [8, 0], sizes = [8, 128], strides = [1, 1]} : vector<256x128xf32> to vector<8x128xf32>
    %22 = arith.addf %18, %21 : vector<8x128xf32>
    %23 = arith.mulf %21, %21 : vector<8x128xf32>
    %24 = arith.addf %20, %23 : vector<8x128xf32>
    %25 = vector.extract_strided_slice %12 {offsets = [16, 0], sizes = [8, 128], strides = [1, 1]} : vector<256x128xf32> to vector<8x128xf32>
    %26 = arith.addf %22, %25 : vector<8x128xf32>
    %27 = arith.mulf %25, %25 : vector<8x128xf32>
    %28 = arith.addf %24, %27 : vector<8x128xf32>
    %29 = vector.extract_strided_slice %12 {offsets = [24, 0], sizes = [8, 128], strides = [1, 1]} : vector<256x128xf32> to vector<8x128xf32>
    %30 = arith.addf %26, %29 : vector<8x128xf32>
    %31 = arith.mulf %29, %29 : vector<8x128xf32>
    %32 = arith.addf %28, %31 : vector<8x128xf32>
    %33 = vector.extract_strided_slice %12 {offsets = [32, 0], sizes = [8, 128], strides = [1, 1]} : vector<256x128xf32> to vector<8x128xf32>
    %34 = arith.addf %30, %33 : vector<8x128xf32>
    %35 = arith.mulf %33, %33 : vector<8x128xf32>
    %36 = arith.addf %32, %35 : vector<8x128xf32>
    %37 = vector.extract_strided_slice %12 {offsets = [40, 0], sizes = [8, 128], strides = [1, 1]} : vector<256x128xf32> to vector<8x128xf32>
    %38 = arith.addf %34, %37 : vector<8x128xf32>
    %39 = arith.mulf %37, %37 : vector<8x128xf32>
    %40 = arith.addf %36, %39 : vector<8x128xf32>
    %41 = vector.extract_strided_slice %12 {offsets = [48, 0], sizes = [8, 128], strides = [1, 1]} : vector<256x128xf32> to vector<8x128xf32>
    %42 = arith.addf %38, %41 : vector<8x128xf32>
    %43 = arith.mulf %41, %41 : vector<8x128xf32>
    %44 = arith.addf %40, %43 : vector<8x128xf32>
    %45 = vector.extract_strided_slice %12 {offsets = [56, 0], sizes = [8, 128], strides = [1, 1]} : vector<256x128xf32> to vector<8x128xf32>
    %46 = arith.addf %42, %45 : vector<8x128xf32>
    %47 = arith.mulf %45, %45 : vector<8x128xf32>
    %48 = arith.addf %44, %47 : vector<8x128xf32>
    %49 = vector.extract_strided_slice %12 {offsets = [64, 0], sizes = [8, 128], strides = [1, 1]} : vector<256x128xf32> to vector<8x128xf32>
    %50 = arith.addf %46, %49 : vector<8x128xf32>
    %51 = arith.mulf %49, %49 : vector<8x128xf32>
    %52 = arith.addf %48, %51 : vector<8x128xf32>
    %53 = vector.extract_strided_slice %12 {offsets = [72, 0], sizes = [8, 128], strides = [1, 1]} : vector<256x128xf32> to vector<8x128xf32>
    %54 = arith.addf %50, %53 : vector<8x128xf32>
    %55 = arith.mulf %53, %53 : vector<8x128xf32>
    %56 = arith.addf %52, %55 : vector<8x128xf32>
    %57 = vector.extract_strided_slice %12 {offsets = [80, 0], sizes = [8, 128], strides = [1, 1]} : vector<256x128xf32> to vector<8x128xf32>
    %58 = arith.addf %54, %57 : vector<8x128xf32>
    %59 = arith.mulf %57, %57 : vector<8x128xf32>
    %60 = arith.addf %56, %59 : vector<8x128xf32>
    %61 = vector.extract_strided_slice %12 {offsets = [88, 0], sizes = [8, 128], strides = [1, 1]} : vector<256x128xf32> to vector<8x128xf32>
    %62 = arith.addf %58, %61 : vector<8x128xf32>
    %63 = arith.mulf %61, %61 : vector<8x128xf32>
    %64 = arith.addf %60, %63 : vector<8x128xf32>
    %65 = vector.extract_strided_slice %12 {offsets = [96, 0], sizes = [8, 128], strides = [1, 1]} : vector<256x128xf32> to vector<8x128xf32>
    %66 = arith.addf %62, %65 : vector<8x128xf32>
    %67 = arith.mulf %65, %65 : vector<8x128xf32>
    %68 = arith.addf %64, %67 : vector<8x128xf32>
    %69 = vector.extract_strided_slice %12 {offsets = [104, 0], sizes = [8, 128], strides = [1, 1]} : vector<256x128xf32> to vector<8x128xf32>
    %70 = arith.addf %66, %69 : vector<8x128xf32>
    %71 = arith.mulf %69, %69 : vector<8x128xf32>
    %72 = arith.addf %68, %71 : vector<8x128xf32>
    %73 = vector.extract_strided_slice %12 {offsets = [112, 0], sizes = [8, 128], strides = [1, 1]} : vector<256x128xf32> to vector<8x128xf32>
    %74 = arith.addf %70, %73 : vector<8x128xf32>
    %75 = arith.mulf %73, %73 : vector<8x128xf32>
    %76 = arith.addf %72, %75 : vector<8x128xf32>
    %77 = vector.extract_strided_slice %12 {offsets = [120, 0], sizes = [8, 128], strides = [1, 1]} : vector<256x128xf32> to vector<8x128xf32>
    %78 = arith.addf %74, %77 : vector<8x128xf32>
    %79 = arith.mulf %77, %77 : vector<8x128xf32>
    %80 = arith.addf %76, %79 : vector<8x128xf32>
    %81 = vector.extract_strided_slice %12 {offsets = [128, 0], sizes = [8, 128], strides = [1, 1]} : vector<256x128xf32> to vector<8x128xf32>
    %82 = arith.addf %78, %81 : vector<8x128xf32>
    %83 = arith.mulf %81, %81 : vector<8x128xf32>
    %84 = arith.addf %80, %83 : vector<8x128xf32>
    %85 = vector.extract_strided_slice %12 {offsets = [136, 0], sizes = [8, 128], strides = [1, 1]} : vector<256x128xf32> to vector<8x128xf32>
    %86 = arith.addf %82, %85 : vector<8x128xf32>
    %87 = arith.mulf %85, %85 : vector<8x128xf32>
    %88 = arith.addf %84, %87 : vector<8x128xf32>
    %89 = vector.extract_strided_slice %12 {offsets = [144, 0], sizes = [8, 128], strides = [1, 1]} : vector<256x128xf32> to vector<8x128xf32>
    %90 = arith.addf %86, %89 : vector<8x128xf32>
    %91 = arith.mulf %89, %89 : vector<8x128xf32>
    %92 = arith.addf %88, %91 : vector<8x128xf32>
    %93 = vector.extract_strided_slice %12 {offsets = [152, 0], sizes = [8, 128], strides = [1, 1]} : vector<256x128xf32> to vector<8x128xf32>
    %94 = arith.addf %90, %93 : vector<8x128xf32>
    %95 = arith.mulf %93, %93 : vector<8x128xf32>
    %96 = arith.addf %92, %95 : vector<8x128xf32>
    %97 = vector.extract_strided_slice %12 {offsets = [160, 0], sizes = [8, 128], strides = [1, 1]} : vector<256x128xf32> to vector<8x128xf32>
    %98 = arith.addf %94, %97 : vector<8x128xf32>
    %99 = arith.mulf %97, %97 : vector<8x128xf32>
    %100 = arith.addf %96, %99 : vector<8x128xf32>
    %101 = vector.extract_strided_slice %12 {offsets = [168, 0], sizes = [8, 128], strides = [1, 1]} : vector<256x128xf32> to vector<8x128xf32>
    %102 = arith.addf %98, %101 : vector<8x128xf32>
    %103 = arith.mulf %101, %101 : vector<8x128xf32>
    %104 = arith.addf %100, %103 : vector<8x128xf32>
    %105 = vector.extract_strided_slice %12 {offsets = [176, 0], sizes = [8, 128], strides = [1, 1]} : vector<256x128xf32> to vector<8x128xf32>
    %106 = arith.addf %102, %105 : vector<8x128xf32>
    %107 = arith.mulf %105, %105 : vector<8x128xf32>
    %108 = arith.addf %104, %107 : vector<8x128xf32>
    %109 = vector.extract_strided_slice %12 {offsets = [184, 0], sizes = [8, 128], strides = [1, 1]} : vector<256x128xf32> to vector<8x128xf32>
    %110 = arith.addf %106, %109 : vector<8x128xf32>
    %111 = arith.mulf %109, %109 : vector<8x128xf32>
    %112 = arith.addf %108, %111 : vector<8x128xf32>
    %113 = vector.extract_strided_slice %12 {offsets = [192, 0], sizes = [8, 128], strides = [1, 1]} : vector<256x128xf32> to vector<8x128xf32>
    %114 = arith.addf %110, %113 : vector<8x128xf32>
    %115 = arith.mulf %113, %113 : vector<8x128xf32>
    %116 = arith.addf %112, %115 : vector<8x128xf32>
    %117 = vector.extract_strided_slice %12 {offsets = [200, 0], sizes = [8, 128], strides = [1, 1]} : vector<256x128xf32> to vector<8x128xf32>
    %118 = arith.addf %114, %117 : vector<8x128xf32>
    %119 = arith.mulf %117, %117 : vector<8x128xf32>
    %120 = arith.addf %116, %119 : vector<8x128xf32>
    %121 = vector.extract_strided_slice %12 {offsets = [208, 0], sizes = [8, 128], strides = [1, 1]} : vector<256x128xf32> to vector<8x128xf32>
    %122 = arith.addf %118, %121 : vector<8x128xf32>
    %123 = arith.mulf %121, %121 : vector<8x128xf32>
    %124 = arith.addf %120, %123 : vector<8x128xf32>
    %125 = vector.extract_strided_slice %12 {offsets = [216, 0], sizes = [8, 128], strides = [1, 1]} : vector<256x128xf32> to vector<8x128xf32>
    %126 = arith.addf %122, %125 : vector<8x128xf32>
    %127 = arith.mulf %125, %125 : vector<8x128xf32>
    %128 = arith.addf %124, %127 : vector<8x128xf32>
    %129 = vector.extract_strided_slice %12 {offsets = [224, 0], sizes = [8, 128], strides = [1, 1]} : vector<256x128xf32> to vector<8x128xf32>
    %130 = arith.addf %126, %129 : vector<8x128xf32>
    %131 = arith.mulf %129, %129 : vector<8x128xf32>
    %132 = arith.addf %128, %131 : vector<8x128xf32>
    %133 = vector.extract_strided_slice %12 {offsets = [232, 0], sizes = [8, 128], strides = [1, 1]} : vector<256x128xf32> to vector<8x128xf32>
    %134 = arith.addf %130, %133 : vector<8x128xf32>
    %135 = arith.mulf %133, %133 : vector<8x128xf32>
    %136 = arith.addf %132, %135 : vector<8x128xf32>
    %137 = vector.extract_strided_slice %12 {offsets = [240, 0], sizes = [8, 128], strides = [1, 1]} : vector<256x128xf32> to vector<8x128xf32>
    %138 = arith.addf %134, %137 : vector<8x128xf32>
    %139 = arith.mulf %137, %137 : vector<8x128xf32>
    %140 = arith.addf %136, %139 : vector<8x128xf32>
    %141 = vector.extract_strided_slice %12 {offsets = [248, 0], sizes = [8, 128], strides = [1, 1]} : vector<256x128xf32> to vector<8x128xf32>
    %142 = arith.addf %138, %141 : vector<8x128xf32>
    %143 = arith.mulf %141, %141 : vector<8x128xf32>
    %144 = arith.addf %140, %143 : vector<8x128xf32>
    %c0_12 = arith.constant 0 : index
    %c0_13 = arith.constant 0 : index
    %145 = vector.load %arg6[%c0_12, %c0_13] : memref<8x128xf32, #tpu.memory_space<vmem>>, vector<8x128xf32>
    tpu.vector_store %arg6[%c0_12, %c0_13], %142 {strides = array<i32>} : memref<8x128xf32, #tpu.memory_space<vmem>>, vector<8x128xf32>,
    %c0_14 = arith.constant 0 : index
    %c0_15 = arith.constant 0 : index
    %146 = vector.load %arg7[%c0_14, %c0_15] : memref<8x128xf32, #tpu.memory_space<vmem>>, vector<8x128xf32>
    tpu.vector_store %arg7[%c0_14, %c0_15], %144 {strides = array<i32>} : memref<8x128xf32, #tpu.memory_space<vmem>>, vector<8x128xf32>,
    return
  }
  func.func @transform_0(%arg0: i32) -> (i32, i32) {
    %c0_i32 = arith.constant 0 : i32
    %c0_i32_0 = arith.constant 0 : i32
    return %arg0, %c0_i32 : i32, i32
  }
  func.func @transform_1(%arg0: i32) -> (i32, i32) {
    %c0_i32 = arith.constant 0 : i32
    %c0_i32_0 = arith.constant 0 : i32
    %c0_i32_1 = arith.constant 0 : i32
    return %c0_i32, %c0_i32_0 : i32, i32
  }
  func.func @transform_2(%arg0: i32) -> (i32, i32) {
    %c0_i32 = arith.constant 0 : i32
    %c0_i32_0 = arith.constant 0 : i32
    %c0_i32_1 = arith.constant 0 : i32
    return %c0_i32, %c0_i32_0 : i32, i32
  }
  func.func @transform_3(%arg0: i32) -> (i32, i32) {
    %c0_i32 = arith.constant 0 : i32
    %c0_i32_0 = arith.constant 0 : i32
    %c0_i32_1 = arith.constant 0 : i32
    return %c0_i32, %c0_i32_0 : i32, i32
  }
  func.func @transform_4(%arg0: i32) -> (i32, i32) {
    %c0_i32 = arith.constant 0 : i32
    %c0_i32_0 = arith.constant 0 : i32
    return %arg0, %c0_i32 : i32, i32
  }
  func.func @transform_5(%arg0: i32) -> (i32, i32) {
    %c0_i32 = arith.constant 0 : i32
    %c0_i32_0 = arith.constant 0 : i32
    return %arg0, %c0_i32 : i32, i32
  }
  func.func @transform_6(%arg0: i32) -> (i32, i32) {
    %c0_i32 = arith.constant 0 : i32
    %c0_i32_0 = arith.constant 0 : i32
    return %arg0, %c0_i32 : i32, i32
  }
}

</mosaic_0001>

<bundles_post_ra>
// kernel: tile.10
= control target key start
LH: loop header
LB: loop body
LE: loop exit
PB: predicated region body
PF: predicated region fallthrough
CT: control target
= control target key end

     0   :  { %s28_s0 = inlined_call_operand.vmem [shape: f32[4], index: 0, kind: input, shape index: {}]   ;;  %s29_s1 = inlined_call_operand.vmem [shape: f32[9,4], index: 1, kind: output, shape index: {}]  }
   0x1   :  { %v4_v0 = vld [vmem:[%s28_s0] ss:$0 sm:$0xff] }
   0x2   :  { %5 = vst [vmem:[%s29_s1] sm:$0xff] %v4_v0  ;;  %8 = vst [vmem:[%s29_s1 + $0x8] sm:$0xff] %v4_v0 }

// kernel: tile.11
= control target key start
LH: loop header
LB: loop body
LE: loop exit
PB: predicated region body
PF: predicated region fallthrough
CT: control target
= control target key end

     0   :  { %s75_s10 = smov 32   ;;  %s76_s11 = smov 24   ;;  %vm3_vm0 = vcmask 31744   ;;  %vm9_vm1 = vcmask 294144   ;;  %vm15_vm2 = vcmask 261344   ;;  %vm21_vm3 = vcmask 228544   ;;  %s123_s0 = inlined_call_operand.vmem [shape: f32[9,4], index: 0, kind: input, shape index: {}]   ;;  %s124_s1 = inlined_call_operand.vmem [shape: f32[1,36], index: 1, kind: output, shape index: {}]  }
   0x1   :  { %v59_v0 = vld [vmem:[%s123_s0 + $0x8] sm:$0x1]   ;;  %v61_v1 = vld [vmem:[%s123_s0 + $0x6] sm:$0x1]   ;;  %v60_v2 = vld [vmem:[%s123_s0 + $0x7] sm:$0x1]  }
   0x2   :  { %7 = vrot.lane.b32.xlu0 %v59_v0, %s75_s10  ;;  %19 = vrot.lane.b32.xlu1 %v61_v1, %s76_s11  ;;  %v62_v3 = vld [vmem:[%s123_s0 + $0x5] sm:$0x1]   ;;  %v2_v4 = vld [vmem:[%s123_s0] sm:$0x1]   ;;  %s77_s18 = smov 28   ;;  %s78_s19 = smov 20  }
   0x3   :  { %4 = vst.msk [vmem:[#allocation0] sm:$0x1] %vm3_vm0, %v2_v4   ;;  %v63_v5 = vld [vmem:[%s123_s0 + $0x4] sm:$0x1]   ;;  %v64_v6 = vld [vmem:[%s123_s0 + $0x3] sm:$0x1]  }
   0x4   :  { %s79_s24 = smov 16   ;;  %s80_s25 = smov 12   ;;  %v65_v7 = vld [vmem:[%s123_s0 + $0x2] sm:$0x1]   ;;  %v66_v8 = vld [vmem:[%s123_s0 + $0x1] sm:$0x1]  }
   0x5   :  { %s81_s0 = smov 8   ;;  %s82_s30 = smov 4   ;;  %vm27_vm4 = vcmask 195744   ;;  %vm33_vm5 = vcmask 162944   ;;  %vm39_vm6 = vcmask 130144   ;;  %vm45_vm7 = vcmask 97344  }
   0x6   :  { %13 = vrot.lane.b32.xlu0 %v60_v2, %s77_s18  ;;  %25 = vrot.lane.b32.xlu1 %v62_v3, %s78_s19  ;;  %vm51_vm8 = vcmask 64544  }
   0xa   :  { %31 = vrot.lane.b32.xlu0 %v63_v5, %s79_s24  ;;  %37 = vrot.lane.b32.xlu1 %v64_v6, %s80_s25 }
   0xe   :  { %43 = vrot.lane.b32.xlu0 %v65_v7, %s81_s0  ;;  %49 = vrot.lane.b32.xlu1 %v66_v8, %s82_s30 }
  0x74   :  { %v8_v9 = vpop.permute.xlu0 %7   ;;  %v20_v10 = vpop.permute.xlu1 %19  }
  0x75   :  { %10 = vst.msk [vmem:[#allocation0] sm:$0x1] %vm9_vm1, %v8_v9  }
  0x78   :  { %v14_v11 = vpop.permute.xlu0 %13   ;;  %v26_v12 = vpop.permute.xlu1 %25  }
  0x79   :  { %16 = vst.msk [vmem:[#allocation0] sm:$0x1] %vm15_vm2, %v14_v11  }
  0x7a   :  { %22 = vst.msk [vmem:[#allocation0] sm:$0x1] %vm21_vm3, %v20_v10  }
  0x7b   :  { %28 = vst.msk [vmem:[#allocation0] sm:$0x1] %vm27_vm4, %v26_v12  }
  0x7c   :  { %v32_v13 = vpop.permute.xlu0 %31   ;;  %v38_v14 = vpop.permute.xlu1 %37  }
  0x7d   :  { %34 = vst.msk [vmem:[#allocation0] sm:$0x1] %vm33_vm5, %v32_v13  }
  0x7e   :  { %40 = vst.msk [vmem:[#allocation0] sm:$0x1] %vm39_vm6, %v38_v14  }
  0x80   :  { %v44_v15 = vpop.permute.xlu0 %43   ;;  %v50_v16 = vpop.permute.xlu1 %49  }
  0x81   :  { %46 = vst.msk [vmem:[#allocation0] sm:$0x1] %vm45_vm7, %v44_v15  }
  0x82   :  { %52 = vst.msk [vmem:[#allocation0] sm:$0x1] %vm51_vm8, %v50_v16  }
  0x89   :  { %v56_v17 = vld [vmem:[#allocation0] sm:$0x1] }
  0x8a   :  { %58 = vst [vmem:[%s124_s1] sm:$0x1] %v56_v17 }

// kernel: residual_block_forward.3
= control target key start
LH: loop header
LB: loop body
LE: loop exit
PB: predicated region body
PF: predicated region fallthrough
CT: control target
= control target key end

     0   :  { %10 = vsyncpa [#allocation3], 0  ;;  %s2086_s0 = inlined_call_operand.hbm [shape: bf16[512,128], index: 0, kind: input, shape index: {}]   ;;  %s2087_s1 = inlined_call_operand.hbm [shape: bf16[128,128], index: 1, kind: input, shape index: {}]   ;;  %s2088_s2 = inlined_call_operand.hbm [shape: bf16[512,128], index: 2, kind: output, shape index: {0}]   ;;  %s2089_s3 = inlined_call_operand.hbm [shape: f32[16,128], index: 3, kind: output, shape index: {1}]   ;;  %s2090_s4 = inlined_call_operand.hbm [shape: f32[16,128], index: 4, kind: output, shape index: {2}]  }
   0x1   :  { %12 = vsyncpa [#allocation3 + $0x1], 0 }
   0x2   :  { %13 = vsyncpa [#allocation6], 0 }
   0x3   :  { %14 = vsyncpa [#allocation4], 0 }
   0x4   :  { %16 = vsyncpa [#allocation4 + $0x1], 0 }
   0x5   :  { %17 = vsyncpa [#allocation9], 0 }
   0x6   :  { %19 = vsyncpa [#allocation9 + $0x1], 0  ;;  %s1671_s15 = smov 0   ;;  %s1673_s16 = smov 0  }
   0x7   :  { %s1675_s17 = smov 0   ;;  %s1677_s18 = smov 0  }
   0x8 LB: > { %s1692_s19 = sadd.s32 4294967295, %s1635_s18   ;;  %s1057_s20 = sadd.s32 4294967294, %s1635_s18   ;;  %s1635_s18 = sphi %s1677_s18, %s2110_s18   ;;  %s1631_s17 = sphi %s1675_s17, %s2109_s17   ;;  %s1627_s16 = sphi %s1673_s16, %s2108_s16   ;;  %s1623_s15 = sphi %s1671_s15, %s2107_s15  }
   0x9   : > { %p45_p0 = scmp.ne.s32.totalorder %s1627_s16, %s1623_s15  ;;  %p2091_p1 = scmp.eq.s32.totalorder %s1692_s19, 0 }
   0xa   : > { %p96_p3 = scmp.eq.s32.totalorder %s1057_s20, 1  ;;  %p1058_p5 = scmp.ge.s32.totalorder %s1635_s18, 1 }
   0xb   : > { %p1703_p4 = por %p2091_p1, %p45_p0  ;;  %p155_p7 = scmp.lt.s32.totalorder %s1635_s18, 3 }
   0xc   : > { %p1708_p6 = por %p96_p3, %p45_p0  ;;  %s1637_s24 = smov [#allocation5]  }
   0xd   : > { %s2094_s21 = scalar_select %p1703_p4, 1, 0 }
   0xe   : > { %s2095_s22 = scalar_select %p1708_p6, 1, 0 }
   0xf   : > { %p1713_p8 = pnand %p1058_p5, %p155_p7  ;;  %s167_s25 = sshll.u32 %s1637_s24, 4  ;;  %s1717_s25 = int_to_ptr.vmem [resolvable:$true] %s167_s25 }
  0x10   : > { %s1729_s27 = sadd.s32 1, %s1635_s18   ;;  %s32_s28 = sadd.s32 1, %s1631_s17 }
  0x11   : > { %s2096_s23 = scalar_select %p1713_p8, 1, 0 }
  0x12   : > { %p1364_p9 = pneg %p1713_p8  ;;  %s29_s29 = ssub.s32 %s1635_s18, %s1729_s27 }
  0x13   : > { %s1447_s6 = scalar_lea.hbm %s2087_s1, 1024 }
  0x14   : > { %p1724_p11 = pnand %p1364_p9, %p2091_p1  ;;  %p1448_p12 = scmp.ne.s32.totalorder %s2087_s1, %s1447_s6 }
  0x15   : > { %p1454_p5 = scmp.lt.u32.totalorder %s1447_s6, %s2087_s1 }
  0x16   : > { %p1449_p13 = pneg %p1724_p11 }
  0x18   : > { %p1450_p0 = pnand %p1449_p13, %p1448_p12 }
  0x1a   : > { %p1451_p3 = pneg %p1450_p0 }
  0x1c   : > { %p1456_p7 = pnand %p1454_p5, %p1451_p3 }
  0x1e   : > { %1459 = shalt.err (!%p1456_p7)
}
  0x1f   : > { %s1460_s11 = scalar_lea.vmem %s1717_s25, 1024  ;;  %p1468_p2 = scmp.lt.s32.totalorder %s1717_s25, %s1717_s25 }
  0x20   : > { %p1461_p9 = scmp.ne.s32.totalorder %s1717_s25, %s1460_s11  ;;  %p1469_p6 = scmp.lt.s32.totalorder %s1460_s11, %s1460_s11 }
  0x22   : > { %p1463_p10 = pnand %p1461_p9, %p1449_p13  ;;  %p1470_p4 = por %p1469_p6, %p1468_p2 }
  0x24   : > { %p1464_p1 = pneg %p1463_p10 }
  0x26   : > { %p1471_p8 = pnand %p1470_p4, %p1464_p1 }
  0x28   : > { %1474 = shalt.err (!%p1471_p8)
}
  0x29   : > { %s1638_s12 = smov 64   ;;  %s1639_s13 = smov 4  }
  0x2a   : > { %1367 = dma.hbm_to_vmem [thread:$0]  (!%p1724_p11), %s2087_s1, 1024, %s1717_s25, [#allocation6], %s1638_s12, %s1638_s12, %s1639_s13  }
  0x2b   : > { %p30_p1 = scmp.eq.s32.totalorder %s29_s29, 0  ;;  %p39_p2 = scmp.ne.s32.totalorder %s1631_s17, %s1627_s16 }
  0x2c   : > { %p40_p4 = scmp.eq.s32.totalorder %s1635_s18, 0  ;;  %p1383_p6 = scmp.lt.s32.totalorder %s1635_s18, 2 }
  0x2d   : > { %s1763_s30 = scalar_select %p30_p1, %s1631_s17, %s32_s28  }
  0x2e   : > { %p41_p8 = por %p40_p4, %p39_p2  ;;  %p2098_p10 = scmp.eq.s32.totalorder %s1692_s19, 1 }
  0x2f   : > { %s181_s26 = sand.u32 1, %s1631_s17   ;;  %s1135_s6 = sshll.u32 %s1635_s18, 11 }
  0x30   : > { %p1767_p12 = por %p2098_p10, %p39_p2  ;;  %s1061_s7 = sshll.u32 %s181_s26, 7 }
  0x31   : > { %s1776_s10 = scalar_lea.hbm %s2086_s0, %s1135_s6  ;;  %s185_s25 = scalar_lea.vmem [#allocation2], %s1061_s7 }
  0x32   : > { %s192_s28 = sshll.u32 %s185_s25, 4  ;;  %p1778_p11 = pnand %p1383_p6, %p41_p8  ;;  %s1782_s28 = int_to_ptr.vmem [resolvable:$true] %s192_s28 }
  0x33   : > { %s1784_s11 = scalar_lea.sflag [#allocation3], %s181_s26  ;;  %s1475_s14 = scalar_lea.hbm %s1776_s10, 2048 }
  0x34   : > { %p1476_p13 = scmp.ne.s32.totalorder %s1776_s10, %s1475_s14  ;;  %p1477_p0 = pneg %p1778_p11 }
  0x35   : > { %s1480_s7 = scalar_lea.hbm %s2086_s0, 4096  ;;  %p1481_p7 = scmp.lt.u32.totalorder %s1776_s10, %s2086_s0 }
  0x36   : > { %p1478_p3 = pnand %p1477_p0, %p1476_p13  ;;  %p1482_p9 = scmp.lt.u32.totalorder %s1480_s7, %s1475_s14 }
  0x37   : > { %p1484_p2 = scmp.lt.u32.totalorder %s1475_s14, %s1776_s10 }
  0x38   : > { %p1479_p5 = pneg %p1478_p3  ;;  %p1483_p1 = por %p1482_p9, %p1481_p7 }
  0x3a   : > { %p1485_p4 = por %p1484_p2, %p1483_p1 }
  0x3c   : > { %p1486_p6 = pnand %p1485_p4, %p1479_p5 }
  0x3e   : > { %1489 = shalt.err (!%p1486_p6)
}
  0x3f   : > { %s1490_s26 = scalar_lea.vmem %s1782_s28, 2048  ;;  %s1640_s25 = smov [#allocation2]  }
  0x40   : > { %p1491_p8 = scmp.ne.s32.totalorder %s1782_s28, %s1490_s26  ;;  %s1495_s24 = sshll.u32 %s1640_s25, 4  ;;  %s1496_s24 = int_to_ptr.vmem [resolvable:$false] %s1495_s24 }
  0x41   : > { %s1497_s6 = scalar_lea.vmem %s1496_s24, 4096  ;;  %p1498_p3 = scmp.lt.s32.totalorder %s1782_s28, %s1496_s24 }
  0x42   : > { %p1493_p10 = pnand %p1491_p8, %p1477_p0  ;;  %p1499_p7 = scmp.lt.s32.totalorder %s1497_s6, %s1490_s26 }
  0x44   : > { %p1494_p13 = pneg %p1493_p10  ;;  %p1500_p9 = por %p1499_p7, %p1498_p3 }
  0x46   : > { %p1501_p1 = pnand %p1500_p9, %p1494_p13 }
  0x48   : > { %1504 = shalt.err (!%p1501_p1)
}
  0x49   : > { %1371 = dma.hbm_to_vmem [thread:$0]  (!%p1778_p11), %s1776_s10, 2048, %s1782_s28, %s1784_s11, %s1638_s12, %s1638_s12, %s1639_s13  }
  0x4a   : > { %p2101_p0 = scmp.ne.s32.totalorder %s2096_s23, 0 }
  0x4b   : > { %s1818_s14 = sand.u32 (!%p2101_p0), 1, %s1627_s16   ;;  %p2102_p5 = scmp.ne.s32.totalorder (!%p2101_p0), %s2094_s21, 0 }
  0x4c   : > { %204 = sbr.rel (%p2101_p0) target bundleno = 444 (0x1bc), region = 28  ;;  %s1065_s7 = sshll.u32 (!%p2101_p0), %s1818_s14, 7 }
  0x4d   : > { %s207_s8 = scalar_lea.sflag (!%p2101_p0), [#allocation3], %s1818_s14  ;;  %s1824_s29 = scalar_lea.vmem (!%p2101_p0), [#allocation2], %s1065_s7 }
  0x53   : > { %1606 = dma.done.wait (%p2102_p5), %s207_s8, 2048  }
  0x54   : > { %1608 = vsyncadd (%p2102_p5), %s207_s8, 4294965248  ;;  %p2103_p11 = scmp.eq.s32.totalorder %s1692_s19, 0 }
  0x56   : > { %1610 = dma.done.wait (%p2103_p11), [#allocation6], 1024   ;;  %p2104_p2 = pmov %p2103_p11 }
  0x57   : > { %v1423_v0 = vld [vmem:[#allocation5] sm:$0xff]   ;;  %v1424_v1 = vld [vmem:[#allocation5 + $0x8] sm:$0xff]   ;;  %v1425_v2 = vld [vmem:[#allocation5 + $0x10] sm:$0xff]   ;;  %s1864_s21 = scalar_lea.vmem [#allocation7], %s1065_s7  ;;  %s1168_s23 = sshll.u32 %s1692_s19, 11 }
  0x58   : > { %1612 = vsyncadd (%p2104_p2), [#allocation6], 4294966272  ;;  %1288 = vmatprep.subr.bf16.mxu0 %v1423_v0  ;;  %1336 = vmatprep.subr.bf16.mxu1 %v1423_v0  ;;  %v1426_v3 = vld [vmem:[#allocation5 + $0x18] sm:$0xff]   ;;  %v1431_v4 = vld [vmem:[%s1824_s29] sm:$0xff]   ;;  %s887_s12 = sshll.u32 %s1864_s21, 4  ;;  %s1917_s28 = scalar_lea.hbm %s2088_s2, %s1168_s23  ;;  %s1919_s12 = int_to_ptr.vmem [resolvable:$true] %s887_s12 }
  0x59   : > { %1289 = vmatpush3.bf16.msra.mxu0 %v1423_v0  ;;  %1344 = vmatpush3.bf16.msra.mxu1 %v1423_v0  ;;  %v1427_v5 = vld [vmem:[#allocation5 + $0x20] sm:$0xff]   ;;  %v1428_v6 = vld [vmem:[#allocation5 + $0x28] sm:$0xff]   ;;  %v1429_v8 = vld [vmem:[#allocation5 + $0x30] sm:$0xff]   ;;  %s864_s11 = scalar_lea.sflag [#allocation4], %s1818_s14  ;;  %s1505_s9 = scalar_lea.vmem %s1919_s12, 2048 }
  0x5a   : > { %1290 = vmatprep.subr.bf16.mxu0 %v1424_v1  ;;  %1337 = vmatprep.subr.bf16.mxu1 %v1424_v1  ;;  %v1439_v7 = vld [vmem:[%s1824_s29 + $0x40] sm:$0xff]   ;;  %v1430_v9 = vld [vmem:[#allocation5 + $0x38] sm:$0xff]   ;;  %v1432_v10 = vld [vmem:[%s1824_s29 + $0x8] sm:$0xff]   ;;  %p1506_p4 = scmp.ne.s32.totalorder %s1919_s12, %s1505_s9  ;;  %s1641_s26 = smov [#allocation7]  }
  0x5b   : > { %1304 = vmatprep.mubr.bf16.mxu0 %v1431_v4  ;;  %1320 = vmatprep.mubr.bf16.mxu1 %v1439_v7  ;;  %v1440_v11 = vld [vmem:[%s1824_s29 + $0x48] sm:$0xff]   ;;  %v1433_v12 = vld [vmem:[%s1824_s29 + $0x10] sm:$0xff]   ;;  %v1434_v14 = vld [vmem:[%s1824_s29 + $0x18] sm:$0xff]   ;;  %s1509_s25 = sshll.u32 %s1641_s26, 4  ;;  %s1510_s25 = int_to_ptr.vmem [resolvable:$false] %s1509_s25 }
  0x5c   : > { %v1441_v13 = vld [vmem:[%s1824_s29 + $0x50] sm:$0xff]   ;;  %v1442_v15 = vld [vmem:[%s1824_s29 + $0x58] sm:$0xff]   ;;  %v1435_v16 = vld [vmem:[%s1824_s29 + $0x20] sm:$0xff]   ;;  %p1507_p6 = pnand %p1506_p4, %p1767_p12  ;;  %s1511_s24 = scalar_lea.vmem %s1510_s25, 4096 }
  0x5d   : > { %1291 = vmatpush3.bf16.msra.mxu0 %v1424_v1  ;;  %1345 = vmatpush3.bf16.msra.mxu1 %v1424_v1  ;;  %v1443_v17 = vld [vmem:[%s1824_s29 + $0x60] sm:$0xff]   ;;  %v1436_v18 = vld [vmem:[%s1824_s29 + $0x28] sm:$0xff]   ;;  %v1437_v20 = vld [vmem:[%s1824_s29 + $0x30] sm:$0xff]   ;;  %p1512_p10 = scmp.lt.s32.totalorder %s1919_s12, %s1510_s25  ;;  %p1513_p13 = scmp.lt.s32.totalorder %s1511_s24, %s1505_s9 }
  0x5e   : > { %1292 = vmatprep.subr.bf16.mxu0 %v1425_v2  ;;  %1338 = vmatprep.subr.bf16.mxu1 %v1425_v2  ;;  %v1444_v19 = vld [vmem:[%s1824_s29 + $0x68] sm:$0xff]   ;;  %v1445_v21 = vld [vmem:[%s1824_s29 + $0x70] sm:$0xff]   ;;  %v1438_v22 = vld [vmem:[%s1824_s29 + $0x38] sm:$0xff]   ;;  %p1508_p8 = pneg %p1507_p6 }
  0x5f   : > { %v1446_v23 = vld [vmem:[%s1824_s29 + $0x78] sm:$0xff]   ;;  %p1514_p3 = por %p1513_p13, %p1512_p10 }
  0x61   : > { %1293 = vmatpush3.bf16.msra.mxu0 %v1425_v2  ;;  %1346 = vmatpush3.bf16.msra.mxu1 %v1425_v2  ;;  %p1515_p7 = pnand %p1514_p3, %p1508_p8 }
  0x62   : > { %1294 = vmatprep.subr.bf16.mxu0 %v1426_v3  ;;  %1339 = vmatprep.subr.bf16.mxu1 %v1426_v3 }
  0x65   : > { %1295 = vmatpush3.bf16.msra.mxu0 %v1426_v3  ;;  %1347 = vmatpush3.bf16.msra.mxu1 %v1426_v3 }
  0x66   : > { %1296 = vmatprep.subr.bf16.mxu0 %v1427_v5  ;;  %1340 = vmatprep.subr.bf16.mxu1 %v1427_v5 }
  0x69   : > { %1297 = vmatpush3.bf16.msra.mxu0 %v1427_v5  ;;  %1348 = vmatpush3.bf16.msra.mxu1 %v1427_v5 }
  0x6a   : > { %1298 = vmatprep.subr.bf16.mxu0 %v1428_v6  ;;  %1341 = vmatprep.subr.bf16.mxu1 %v1428_v6 }
  0x6d   : > { %1299 = vmatpush3.bf16.msra.mxu0 %v1428_v6  ;;  %1349 = vmatpush3.bf16.msra.mxu1 %v1428_v6 }
  0x6e   : > { %1300 = vmatprep.subr.bf16.mxu0 %v1429_v8  ;;  %1342 = vmatprep.subr.bf16.mxu1 %v1429_v8 }
  0x71   : > { %1301 = vmatpush3.bf16.msra.mxu0 %v1429_v8  ;;  %1350 = vmatpush3.bf16.msra.mxu1 %v1429_v8 }
  0x72   : > { %1302 = vmatprep.subr.bf16.mxu0 %v1430_v9  ;;  %1343 = vmatprep.subr.bf16.mxu1 %v1430_v9 }
  0x75   : > { %1303 = vmatpush3.bf16.msra.mxu0 %v1430_v9  ;;  %1351 = vmatpush3.bf16.msra.mxu1 %v1430_v9 }
  0x78   : > { %1305 = vmatmul.mubr.bf16.vlgmr.msra.gmra.mrb[0].mxu0 %v1432_v10  ;;  %1321 = vmatmul.mubr.bf16.vlgmr.msra.gmra.mrb[0].mxu1 %v1440_v11 }
  0x79   : > { %1308 = vmatprep.mubr.bf16.mxu0 %v1433_v12  ;;  %1324 = vmatprep.mubr.bf16.mxu1 %v1441_v13 }
  0x80   : > { %1309 = vmatmul.mubr.bf16.gmra.mrb[4].mxu0 %v1434_v14  ;;  %1325 = vmatmul.mubr.bf16.gmra.mrb[4].mxu1 %v1442_v15 }
  0x81   : > { %1312 = vmatprep.mubr.bf16.mxu0 %v1435_v16  ;;  %1328 = vmatprep.mubr.bf16.mxu1 %v1443_v17 }
  0x88   : > { %1313 = vmatmul.mubr.bf16.gmra.mrb[8].mxu0 %v1436_v18  ;;  %1329 = vmatmul.mubr.bf16.gmra.mrb[8].mxu1 %v1444_v19 }
  0x89   : > { %1316 = vmatprep.mubr.bf16.mxu0 %v1437_v20  ;;  %1332 = vmatprep.mubr.bf16.mxu1 %v1445_v21 }
  0x90   : > { %1317 = vmatmul.mubr.bf16.gmra.mrb[12].mxu0 %v1438_v22  ;;  %1333 = vmatmul.mubr.bf16.gmra.mrb[12].mxu1 %v1446_v23 }
 0x14b   : > { %v1306_v24 = vpop.f32.mrb[0].mxu0  ;;  %v1850_v25 = vpop.f32.mrb[0].mxu1 }
 0x14c   : > { %v478_v26 = vpop.f32.mrb[1].mxu0  ;;  %v1852_v27 = vpop.f32.mrb[1].mxu1  ;;  %v772_v39 = vmul.f32 %v1306_v24, %v1306_v24 }
 0x14d   : > { %v1307_v28 = vpop.f32.mrb[2].mxu0  ;;  %v1854_v29 = vpop.f32.mrb[2].mxu1  ;;  %v766_v30 = vmul.f32 %v478_v26, %v478_v26 }
 0x14e   : > { %v1177_v31 = vpack.c.bf16 %v1307_v28, %v1306_v24  ;;  %v481_v32 = vpop.f32.mrb[3].mxu0  ;;  %v1217_v33 = vpack.c.bf16 %v1854_v29, %v1850_v25  ;;  %v1858_v34 = vpop.f32.mrb[3].mxu1  ;;  %v775_v42 = vmul.f32 %v1307_v28, %v1307_v28 }
 0x14f   : > { %v1172_v35 = vpack.c.bf16 %v481_v32, %v478_v26  ;;  %v768_v36 = vadd.f32 %v481_v32, %v478_v26  ;;  %v769_v37 = vmul.f32 %v481_v32, %v481_v32  ;;  %v1212_v38 = vpack.c.bf16 %v1858_v34, %v1852_v27 }
 0x150   : > { %1249 = vst [vmem:[%s1864_s21 + $0x8] sm:$0xff] %v1177_v31   ;;  %1257 = vst [vmem:[%s1864_s21 + $0x48] sm:$0xff] %v1217_v33  }
 0x151   : > { %1173 = vst [vmem:[%s1864_s21] sm:$0xff] %v1172_v35   ;;  %v770_v40 = vadd.f32 %v769_v37, %v766_v30  ;;  %v771_v41 = vadd.f32 %v1306_v24, %v768_v36  ;;  %1256 = vst [vmem:[%s1864_s21 + $0x40] sm:$0xff] %v1212_v38  }
 0x153   : > { %v773_v43 = vadd.f32 %v772_v39, %v770_v40  ;;  %v1310_v44 = vpop.f32.mrb[4].mxu0  ;;  %v774_v45 = vadd.f32 %v1307_v28, %v771_v41  ;;  %v1870_v46 = vpop.f32.mrb[4].mxu1 }
 0x154   : > { %v494_v47 = vpop.f32.mrb[5].mxu0  ;;  %v1872_v48 = vpop.f32.mrb[5].mxu1  ;;  %v784_v63 = vmul.f32 %v1310_v44, %v1310_v44 }
 0x155   : > { %v776_v49 = vadd.f32 %v775_v42, %v773_v43  ;;  %v777_v50 = vadd.f32 %v774_v45, %v494_v47  ;;  %v778_v51 = vmul.f32 %v494_v47, %v494_v47  ;;  %v1311_v52 = vpop.f32.mrb[6].mxu0  ;;  %v1874_v53 = vpop.f32.mrb[6].mxu1 }
 0x156   : > { %v1187_v54 = vpack.c.bf16 %v1311_v52, %v1310_v44  ;;  %v497_v55 = vpop.f32.mrb[7].mxu0  ;;  %v1227_v56 = vpack.c.bf16 %v1874_v53, %v1870_v46  ;;  %v1878_v57 = vpop.f32.mrb[7].mxu1  ;;  %v787_v2 = vmul.f32 %v1311_v52, %v1311_v52 }
 0x157   : > { %v779_v58 = vadd.f32 %v778_v51, %v776_v49  ;;  %v1182_v59 = vpack.c.bf16 %v497_v55, %v494_v47  ;;  %v780_v60 = vadd.f32 %v777_v50, %v497_v55  ;;  %v781_v61 = vmul.f32 %v497_v55, %v497_v55 }
 0x158   : > { %1251 = vst [vmem:[%s1864_s21 + $0x18] sm:$0xff] %v1187_v54   ;;  %1259 = vst [vmem:[%s1864_s21 + $0x58] sm:$0xff] %v1227_v56   ;;  %v1222_v62 = vpack.c.bf16 %v1878_v57, %v1872_v48 }
 0x159   : > { %1250 = vst [vmem:[%s1864_s21 + $0x10] sm:$0xff] %v1182_v59   ;;  %v782_v0 = vadd.f32 %v781_v61, %v779_v58  ;;  %v783_v1 = vadd.f32 %v1310_v44, %v780_v60  ;;  %v814_v61 = vmul.f32 %v1852_v27, %v1852_v27 }
 0x15a   : > { %1258 = vst [vmem:[%s1864_s21 + $0x50] sm:$0xff] %v1222_v62  }
 0x15b   : > { %v785_v3 = vadd.f32 %v784_v63, %v782_v0  ;;  %v1314_v4 = vpop.f32.mrb[8].mxu0  ;;  %v786_v5 = vadd.f32 %v1311_v52, %v783_v1  ;;  %v1886_v6 = vpop.f32.mrb[8].mxu1 }
 0x15c   : > { %v510_v7 = vpop.f32.mrb[9].mxu0  ;;  %v1888_v8 = vpop.f32.mrb[9].mxu1  ;;  %v796_v23 = vmul.f32 %v1314_v4, %v1314_v4 }
 0x15d   : > { %v788_v9 = vadd.f32 %v787_v2, %v785_v3  ;;  %v789_v10 = vadd.f32 %v786_v5, %v510_v7  ;;  %v790_v11 = vmul.f32 %v510_v7, %v510_v7  ;;  %v1315_v12 = vpop.f32.mrb[10].mxu0  ;;  %v1890_v13 = vpop.f32.mrb[10].mxu1 }
 0x15e   : > { %v1197_v14 = vpack.c.bf16 %v1315_v12, %v1314_v4  ;;  %v513_v15 = vpop.f32.mrb[11].mxu0  ;;  %v1237_v16 = vpack.c.bf16 %v1890_v13, %v1886_v6  ;;  %v1894_v17 = vpop.f32.mrb[11].mxu1  ;;  %v799_v28 = vmul.f32 %v1315_v12, %v1315_v12 }
 0x15f   : > { %v791_v18 = vadd.f32 %v790_v11, %v788_v9  ;;  %v1192_v19 = vpack.c.bf16 %v513_v15, %v510_v7  ;;  %v792_v20 = vadd.f32 %v789_v10, %v513_v15  ;;  %v793_v21 = vmul.f32 %v513_v15, %v513_v15 }
 0x160   : > { %1253 = vst [vmem:[%s1864_s21 + $0x28] sm:$0xff] %v1197_v14   ;;  %1261 = vst [vmem:[%s1864_s21 + $0x68] sm:$0xff] %v1237_v16   ;;  %v1232_v22 = vpack.c.bf16 %v1894_v17, %v1888_v8 }
 0x161   : > { %1252 = vst [vmem:[%s1864_s21 + $0x20] sm:$0xff] %v1192_v19   ;;  %v794_v24 = vadd.f32 %v793_v21, %v791_v18  ;;  %v795_v26 = vadd.f32 %v1314_v4, %v792_v20 }
 0x162   : > { %1260 = vst [vmem:[%s1864_s21 + $0x60] sm:$0xff] %v1232_v22  }
 0x163   : > { %v797_v30 = vadd.f32 %v796_v23, %v794_v24  ;;  %v1318_v31 = vpop.f32.mrb[12].mxu0  ;;  %v798_v32 = vadd.f32 %v1315_v12, %v795_v26  ;;  %v1902_v33 = vpop.f32.mrb[12].mxu1 }
 0x164   : > { %v526_v35 = vpop.f32.mrb[13].mxu0  ;;  %v1904_v36 = vpop.f32.mrb[13].mxu1  ;;  %v808_v54 = vmul.f32 %v1318_v31, %v1318_v31 }
 0x165   : > { %v800_v37 = vadd.f32 %v799_v28, %v797_v30  ;;  %v801_v38 = vadd.f32 %v798_v32, %v526_v35  ;;  %v802_v39 = vmul.f32 %v526_v35, %v526_v35  ;;  %v1319_v40 = vpop.f32.mrb[14].mxu0  ;;  %v1908_v41 = vpop.f32.mrb[14].mxu1 }
 0x166   : > { %v1207_v42 = vpack.c.bf16 %v1319_v40, %v1318_v31  ;;  %v529_v43 = vpop.f32.mrb[15].mxu0  ;;  %v1247_v44 = vpack.c.bf16 %v1908_v41, %v1902_v33  ;;  %v1912_v45 = vpop.f32.mrb[15].mxu1  ;;  %v811_v58 = vmul.f32 %v1319_v40, %v1319_v40 }
 0x167   : > { %v803_v47 = vadd.f32 %v802_v39, %v800_v37  ;;  %v1202_v49 = vpack.c.bf16 %v529_v43, %v526_v35  ;;  %v804_v50 = vadd.f32 %v801_v38, %v529_v43  ;;  %v805_v51 = vmul.f32 %v529_v43, %v529_v43 }
 0x168   : > { %1255 = vst [vmem:[%s1864_s21 + $0x38] sm:$0xff] %v1207_v42   ;;  %1263 = vst [vmem:[%s1864_s21 + $0x78] sm:$0xff] %v1247_v44   ;;  %v1242_v52 = vpack.c.bf16 %v1912_v45, %v1904_v36 }
 0x169   : > { %1254 = vst [vmem:[%s1864_s21 + $0x30] sm:$0xff] %v1202_v49   ;;  %v806_v55 = vadd.f32 %v805_v51, %v803_v47  ;;  %v807_v56 = vadd.f32 %v1318_v31, %v804_v50 }
 0x16a   : > { %1262 = vst [vmem:[%s1864_s21 + $0x70] sm:$0xff] %v1242_v52  }
 0x16b   : > { %v809_v59 = vadd.f32 %v808_v54, %v806_v55  ;;  %v810_v60 = vadd.f32 %v1319_v40, %v807_v56 }
 0x16c   : > { %1518 = shalt.err (!%p1515_p7)
}
 0x16d   : > { %s1519_s6 = scalar_lea.hbm %s1917_s28, 2048  ;;  %s1523_s29 = scalar_lea.hbm %s2088_s2, 4096 }
 0x16e   : > { %p1520_p9 = scmp.ne.s32.totalorder %s1917_s28, %s1519_s6  ;;  %p1524_p5 = scmp.lt.u32.totalorder %s1917_s28, %s2088_s2 }
 0x16f   : > { %p1525_p11 = scmp.lt.u32.totalorder %s1523_s29, %s1519_s6  ;;  %p1527_p4 = scmp.lt.u32.totalorder %s1519_s6, %s1917_s28 }
 0x170   : > { %p1521_p1 = pnand %p1520_p9, %p1767_p12 }
 0x171   : > { %p1526_p2 = por %p1525_p11, %p1524_p5 }
 0x172   : > { %p1522_p0 = pneg %p1521_p1 }
 0x173   : > { %p1528_p6 = por %p1527_p4, %p1526_p2 }
 0x175   : > { %p1529_p8 = pnand %p1528_p6, %p1522_p0 }
 0x177   : > { %1532 = shalt.err (!%p1529_p8)
}
 0x178   : > { %s1642_s13 = smov 64   ;;  %s1643_s10 = smov 4   ;;  %v812_v62 = vadd.f32 %v811_v58, %v809_v59  ;;  %v813_v63 = vadd.f32 %v810_v60, %v1852_v27  ;;  %v817_v2 = vmul.f32 %v1858_v34, %v1858_v34  ;;  %v820_v3 = vmul.f32 %v1850_v25, %v1850_v25 }
 0x179   : > { %1358 = dma.vmem_to_hbm [thread:$0]  (%p1767_p12), %s1919_s12, 2048, %s1917_s28, %s864_s11, %s1642_s13, %s1642_s13, %s1643_s10   ;;  %v823_v7 = vmul.f32 %v1854_v29, %v1854_v29  ;;  %v826_v27 = vmul.f32 %v1872_v48, %v1872_v48  ;;  %v829_v15 = vmul.f32 %v1878_v57, %v1878_v57  ;;  %v844_v24 = vmul.f32 %v1886_v6, %v1886_v6 }
 0x17a   : > { %v815_v0 = vadd.f32 %v814_v61, %v812_v62  ;;  %v816_v1 = vadd.f32 %v813_v63, %v1858_v34  ;;  %s1068_s12 = sshll.u32 %s1818_s14, 3  ;;  %v847_v28 = vmul.f32 %v1890_v13, %v1890_v13  ;;  %v850_v31 = vmul.f32 %v1904_v36, %v1904_v36  ;;  %s868_s28 = sand.u32 1, %s1692_s19  }
 0x17b   : > { %v853_v38 = vmul.f32 %v1912_v45, %v1912_v45  ;;  %s1131_s14 = sshll.u32 %s1692_s19, 7  ;;  %s241_s11 = scalar_lea.vmem [#allocation8], %s1068_s12 }
 0x17c   : > { %v818_v4 = vadd.f32 %v817_v2, %v815_v0  ;;  %v819_v5 = vadd.f32 %v1850_v25, %v816_v1  ;;  %v832_v25 = vmul.f32 %v1870_v46, %v1870_v46  ;;  %s903_s9 = sshll.u32 %s241_s11, 4  ;;  %s1999_s26 = scalar_lea.vmem [#allocation10], %s1068_s12  ;;  %s2010_s9 = int_to_ptr.vmem [resolvable:$true] %s903_s9 }
 0x17d   : > { %s916_s25 = sshll.u32 %s1999_s26, 4  ;;  %s2008_s6 = scalar_lea.hbm %s2089_s3, %s1131_s14  ;;  %s2017_s25 = int_to_ptr.vmem [resolvable:$true] %s916_s25 }
 0x17e   : > { %v821_v9 = vadd.f32 %v820_v3, %v818_v4  ;;  %v822_v10 = vadd.f32 %v1854_v29, %v819_v5  ;;  %v835_v29 = vmul.f32 %v1874_v53, %v1874_v53  ;;  %s2015_s29 = scalar_lea.hbm %s2090_s4, %s1131_s14  ;;  %s2019_s21 = scalar_lea.sflag [#allocation9], %s868_s28 }
 0x17f   : > { %s1533_s23 = scalar_lea.vmem %s2010_s9, 128  ;;  %s1644_s13 = smov [#allocation8]  }
 0x180   : > { %v824_v11 = vadd.f32 %v823_v7, %v821_v9  ;;  %v825_v12 = vadd.f32 %v822_v10, %v1872_v48  ;;  %v838_v48 = vmul.f32 %v1888_v8, %v1888_v8  ;;  %p1534_p10 = scmp.ne.s32.totalorder %s2010_s9, %s1533_s23  ;;  %s1537_s10 = sshll.u32 %s1644_s13, 4  ;;  %s1538_s10 = int_to_ptr.vmem [resolvable:$false] %s1537_s10 }
 0x181   : > { %s1539_s12 = scalar_lea.vmem %s1538_s10, 256  ;;  %p1540_p7 = scmp.lt.s32.totalorder %s2010_s9, %s1538_s10 }
 0x182   : > { %v827_v14 = vadd.f32 %v826_v27, %v824_v11  ;;  %v828_v34 = vadd.f32 %v825_v12, %v1878_v57  ;;  %p1535_p13 = pnand %p1534_p10, %p1767_p12  ;;  %p1541_p9 = scmp.lt.s32.totalorder %s1539_s12, %s1533_s23 }
 0x184   : > { %v830_v16 = vadd.f32 %v829_v15, %v827_v14  ;;  %v831_v18 = vadd.f32 %v1870_v46, %v828_v34  ;;  %v841_v46 = vmul.f32 %v1894_v17, %v1894_v17  ;;  %p1536_p3 = pneg %p1535_p13  ;;  %p1542_p1 = por %p1541_p9, %p1540_p7 }
 0x186   : > { %v833_v19 = vadd.f32 %v832_v25, %v830_v16  ;;  %v834_v20 = vadd.f32 %v1874_v53, %v831_v18  ;;  %p1543_p0 = pnand %p1542_p1, %p1536_p3 }
 0x188   : > { %v836_v21 = vadd.f32 %v835_v29, %v833_v19  ;;  %v837_v22 = vadd.f32 %v834_v20, %v1888_v8 }
 0x18a   : > { %v839_v57 = vadd.f32 %v838_v48, %v836_v21  ;;  %v840_v23 = vadd.f32 %v837_v22, %v1894_v17 }
 0x18c   : > { %v842_v26 = vadd.f32 %v841_v46, %v839_v57  ;;  %v843_v53 = vadd.f32 %v1886_v6, %v840_v23  ;;  %v856_v6 = vmul.f32 %v1902_v33, %v1902_v33 }
 0x18e   : > { %v845_v30 = vadd.f32 %v844_v24, %v842_v26  ;;  %v846_v8 = vadd.f32 %v1890_v13, %v843_v53 }
 0x190   : > { %v848_v32 = vadd.f32 %v847_v28, %v845_v30  ;;  %v849_v35 = vadd.f32 %v846_v8, %v1904_v36  ;;  %v859_v36 = vmul.f32 %v1908_v41, %v1908_v41 }
 0x192   : > { %v851_v17 = vadd.f32 %v850_v31, %v848_v32  ;;  %v852_v37 = vadd.f32 %v849_v35, %v1912_v45 }
 0x194   : > { %v854_v13 = vadd.f32 %v853_v38, %v851_v17  ;;  %v855_v39 = vadd.f32 %v1902_v33, %v852_v37 }
 0x196   : > { %v857_v40 = vadd.f32 %v856_v6, %v854_v13  ;;  %v858_v42 = vadd.f32 %v1908_v41, %v855_v39 }
 0x198   : > { %v860_v33 = vadd.f32 %v859_v36, %v857_v40  ;;  %861 = vst [vmem:[%s241_s11] sm:$0xff] %v858_v42 }
 0x199   : > { %1546 = shalt.err (!%p1543_p0)
}
 0x19a   : > { %s1547_s28 = scalar_lea.hbm %s2008_s6, 128  ;;  %s1551_s19 = scalar_lea.hbm %s2089_s3, 256 }
 0x19b   : > { %p1548_p5 = scmp.ne.s32.totalorder %s2008_s6, %s1547_s28  ;;  %p1552_p4 = scmp.lt.u32.totalorder %s2008_s6, %s2089_s3 }
 0x19c   : > { %p1553_p6 = scmp.lt.u32.totalorder %s1551_s19, %s1547_s28  ;;  %p1555_p10 = scmp.lt.u32.totalorder %s1547_s28, %s2008_s6 }
 0x19d   : > { %p1549_p11 = pnand %p1548_p5, %p1767_p12 }
 0x19e   : > { %p1554_p8 = por %p1553_p6, %p1552_p4 }
 0x19f   : > { %p1550_p2 = pneg %p1549_p11 }
 0x1a0   : > { %p1556_p13 = por %p1555_p10, %p1554_p8 }
 0x1a2   : > { %p1557_p3 = pnand %p1556_p13, %p1550_p2 }
 0x1a4   : > { %1560 = shalt.err (!%p1557_p3)
}
 0x1a5   : > { %1359 = dma.vmem_to_hbm [thread:$0]  (%p1767_p12), %s2010_s9, 128, %s2008_s6, %s2019_s21   ;;  %862 = vst [vmem:[%s1999_s26] sm:$0xff] %v860_v33 }
 0x1a6   : > { %s1561_s8 = scalar_lea.vmem %s2017_s25, 128  ;;  %s1645_s23 = smov [#allocation10]  }
 0x1a7   : > { %p1562_p7 = scmp.ne.s32.totalorder %s2017_s25, %s1561_s8  ;;  %s1565_s13 = sshll.u32 %s1645_s23, 4  ;;  %s1566_s13 = int_to_ptr.vmem [resolvable:$false] %s1565_s13 }
 0x1a8   : > { %s1567_s10 = scalar_lea.vmem %s1566_s13, 256  ;;  %p1568_p0 = scmp.lt.s32.totalorder %s2017_s25, %s1566_s13 }
 0x1a9   : > { %p1563_p9 = pnand %p1562_p7, %p1767_p12  ;;  %p1569_p5 = scmp.lt.s32.totalorder %s1567_s10, %s1561_s8 }
 0x1ab   : > { %p1564_p1 = pneg %p1563_p9  ;;  %p1570_p11 = por %p1569_p5, %p1568_p0 }
 0x1ad   : > { %p1571_p2 = pnand %p1570_p11, %p1564_p1 }
 0x1af   : > { %1574 = shalt.err (!%p1571_p2)
}
 0x1b0   : > { %s1575_s9 = scalar_lea.hbm %s2015_s29, 128  ;;  %s1579_s12 = scalar_lea.hbm %s2090_s4, 256 }
 0x1b1   : > { %p1576_p4 = scmp.ne.s32.totalorder %s2015_s29, %s1575_s9  ;;  %p1580_p10 = scmp.lt.u32.totalorder %s2015_s29, %s2090_s4 }
 0x1b2   : > { %p1581_p13 = scmp.lt.u32.totalorder %s1579_s12, %s1575_s9  ;;  %p1583_p7 = scmp.lt.u32.totalorder %s1575_s9, %s2015_s29 }
 0x1b3   : > { %p1577_p6 = pnand %p1576_p4, %p1767_p12 }
 0x1b4   : > { %p1582_p3 = por %p1581_p13, %p1580_p10 }
 0x1b5   : > { %p1578_p8 = pneg %p1577_p6 }
 0x1b6   : > { %p1584_p9 = por %p1583_p7, %p1582_p3 }
 0x1b8   : > { %p1585_p1 = pnand %p1584_p9, %p1578_p8 }
 0x1ba   : > { %1588 = shalt.err (!%p1585_p1)
}
 0x1bb   : > { %1360 = dma.vmem_to_hbm [thread:$0]  (%p1767_p12), %s2017_s25, 128, %s2015_s29, %s2019_s21  }
 0x1bc PF: > { %s928_s11 = sand.u32 1, %s1623_s15   ;;  %p2105_p0 = scmp.ne.s32.totalorder %s2095_s22, 0 }
 0x1bd   : > { %p2106_p5 = scmp.ge.s32.totalorder %s1635_s18, 2  ;;  %s929_s19 = scalar_lea.sflag [#allocation4], %s928_s11 }
 0x1bf   : > { %p1373_p11 = pnand %p2106_p5, %p2105_p0 }
 0x1c1   : > { %1614 = dma.done.wait (!%p1373_p11), %s929_s19, 2048  }
 0x1c2   : > { %1616 = vsyncadd (!%p1373_p11), %s929_s19, 4294965248  ;;  %s937_s24 = sand.u32 1, %s1057_s20  }
 0x1c3   : > { %s938_s7 = scalar_lea.sflag [#allocation9], %s937_s24 }
 0x1c4   : > { %1618 = dma.done.wait (!%p1373_p11), %s938_s7, 256  }
 0x1c5   : > { %1620 = vsyncadd (!%p1373_p11), %s938_s7, 4294967040  ;;  %p22_p12 = scmp.ge.s32.totalorder %s1729_s27, 4   ;;  %s2107_s15 = smov %s1627_s16 }
 0x1c6   : > { %s2108_s16 = smov %s1631_s17  ;;  %s2109_s17 = smov %s1763_s30 }
 0x1c7   : > { %s2110_s18 = smov %s1729_s27  ;;  %24 = sbr.rel (!%p22_p12) target bundleno = 8 (0x8), region = 109 }
 0x1ce   :  { %952 = vsyncpa [#allocation3], 1 }
 0x1cf   :  { %954 = vsyncpa [#allocation3 + $0x1], 1 }
 0x1d0   :  { %955 = vsyncpa [#allocation6], 1 }
 0x1d1   :  { %956 = vsyncpa [#allocation4], 1 }
 0x1d2   :  { %958 = vsyncpa [#allocation4 + $0x1], 1 }
 0x1d3   :  { %959 = vsyncpa [#allocation9], 1 }
 0x1d4   :  { %961 = vsyncpa [#allocation9 + $0x1], 1 }

// kernel: residual_block_forward.4
= control target key start
LH: loop header
LB: loop body
LE: loop exit
PB: predicated region body
PF: predicated region fallthrough
CT: control target
= control target key end

     0   :  { %12 = vsyncpa [#allocation3], 0  ;;  %s2548_s0 = inlined_call_operand.hbm [shape: bf16[512,128], index: 0, kind: input, shape index: {}]   ;;  %s2549_s1 = inlined_call_operand.hbm [shape: bf16[128,128], index: 1, kind: input, shape index: {}]   ;;  %s2550_s2 = inlined_call_operand.hbm [shape: f32[1,128], index: 2, kind: input, shape index: {}]   ;;  %s2551_s3 = inlined_call_operand.hbm [shape: f32[1,128], index: 3, kind: input, shape index: {}]   ;;  %s2552_s4 = inlined_call_operand.hbm [shape: bf16[512,128], index: 4, kind: output, shape index: {0}]   ;;  %s2553_s5 = inlined_call_operand.hbm [shape: f32[16,128], index: 5, kind: output, shape index: {1}]   ;;  %s2554_s6 = inlined_call_operand.hbm [shape: f32[16,128], index: 6, kind: output, shape index: {2}]  }
   0x1   :  { %14 = vsyncpa [#allocation3 + $0x1], 0 }
   0x2   :  { %15 = vsyncpa [#allocation6], 0 }
   0x3   :  { %16 = vsyncpa [#allocation9], 0 }
   0x4   :  { %17 = vsyncpa [#allocation4], 0 }
   0x5   :  { %19 = vsyncpa [#allocation4 + $0x1], 0 }
   0x6   :  { %20 = vsyncpa [#allocation12], 0 }
   0x7   :  { %22 = vsyncpa [#allocation12 + $0x1], 0  ;;  %s1976_s21 = smov 0   ;;  %s1978_s22 = smov 0  }
   0x8   :  { %s1980_s23 = smov 0   ;;  %s1982_s24 = smov 0  }
   0x9 LB: > { %s1997_s25 = sadd.s32 4294967295, %s1928_s24   ;;  %s2556_s26 = sadd.s32 4294967294, %s1928_s24   ;;  %s1928_s24 = sphi %s1982_s24, %s2579_s24   ;;  %s1924_s23 = sphi %s1980_s23, %s2578_s23   ;;  %s1920_s22 = sphi %s1978_s22, %s2577_s22   ;;  %s1916_s21 = sphi %s1976_s21, %s2576_s21  }
   0xa   : > { %p48_p0 = scmp.ne.s32.totalorder %s1920_s22, %s1916_s21  ;;  %p2555_p1 = scmp.eq.s32.totalorder %s1997_s25, 0 }
   0xb   : > { %p141_p3 = scmp.eq.s32.totalorder %s2556_s26, 1  ;;  %p1218_p5 = scmp.ge.s32.totalorder %s1928_s24, 1 }
   0xc   : > { %p2008_p4 = por %p2555_p1, %p48_p0  ;;  %p200_p7 = scmp.lt.s32.totalorder %s1928_s24, 3 }
   0xd   : > { %p2013_p6 = por %p141_p3, %p48_p0  ;;  %s1930_s30 = smov [#allocation5]  }
   0xe   : > { %s2559_s27 = scalar_select %p2008_p4, 1, 0 }
   0xf   : > { %s2560_s28 = scalar_select %p2013_p6, 1, 0 }
  0x10   : > { %p2018_p8 = pnand %p1218_p5, %p200_p7  ;;  %s212_s7 = sshll.u32 %s1930_s30, 4  ;;  %s2022_s7 = int_to_ptr.vmem [resolvable:$true] %s212_s7 }
  0x11   : > { %s1931_s9 = smov [#allocation7]   ;;  %s1932_s11 = smov [#allocation8]  }
  0x12   : > { %s2561_s29 = scalar_select %p2018_p8, 1, 0 }
  0x13   : > { %p1601_p9 = pneg %p2018_p8  ;;  %s226_s10 = sshll.u32 %s1931_s9, 4  ;;  %s2033_s10 = int_to_ptr.vmem [resolvable:$true] %s226_s10 }
  0x14   : > { %s2035_s12 = sshll.u32 %s1932_s11, 4  ;;  %s1680_s15 = scalar_lea.hbm %s2549_s1, 1024  ;;  %s238_s12 = int_to_ptr.vmem [resolvable:$true] %s2035_s12 }
  0x15   : > { %p2029_p11 = pnand %p1601_p9, %p2555_p1  ;;  %p1681_p12 = scmp.ne.s32.totalorder %s2549_s1, %s1680_s15 }
  0x16   : > { %p1687_p5 = scmp.lt.u32.totalorder %s1680_s15, %s2549_s1 }
  0x17   : > { %p2045_p13 = pneg %p2029_p11 }
  0x19   : > { %p1683_p0 = pnand %p2045_p13, %p1681_p12 }
  0x1b   : > { %p1684_p3 = pneg %p1683_p0 }
  0x1d   : > { %p1689_p7 = pnand %p1687_p5, %p1684_p3 }
  0x1f   : > { %1692 = shalt.err (!%p1689_p7)
}
  0x20   : > { %s1693_s30 = scalar_lea.vmem %s2022_s7, 1024  ;;  %p1701_p2 = scmp.lt.s32.totalorder %s2022_s7, %s2022_s7 }
  0x21   : > { %p1694_p9 = scmp.ne.s32.totalorder %s2022_s7, %s1693_s30  ;;  %p1702_p6 = scmp.lt.s32.totalorder %s1693_s30, %s1693_s30 }
  0x23   : > { %p1696_p10 = pnand %p1694_p9, %p2045_p13  ;;  %p1703_p12 = por %p1702_p6, %p1701_p2 }
  0x25   : > { %p1697_p1 = pneg %p1696_p10 }
  0x27   : > { %p1704_p0 = pnand %p1703_p12, %p1697_p1 }
  0x29   : > { %1707 = shalt.err (!%p1704_p0)
}
  0x2a   : > { %s1933_s9 = smov 64   ;;  %s1934_s11 = smov 4  }
  0x2b   : > { %1604 = dma.hbm_to_vmem [thread:$0]  (!%p2029_p11), %s2549_s1, 1024, %s2022_s7, [#allocation6], %s1933_s9, %s1933_s9, %s1934_s11  }
  0x2c   : > { %s1708_s17 = scalar_lea.hbm %s2550_s2, 16 }
  0x2d   : > { %p1709_p1 = scmp.ne.s32.totalorder %s2550_s2, %s1708_s17  ;;  %p1715_p10 = scmp.lt.u32.totalorder %s1708_s17, %s2550_s2 }
  0x2f   : > { %p1711_p2 = pnand %p1709_p1, %p2045_p13 }
  0x31   : > { %p1712_p6 = pneg %p1711_p2 }
  0x33   : > { %p1717_p3 = pnand %p1715_p10, %p1712_p6 }
  0x35   : > { %1720 = shalt.err (!%p1717_p3)
}
  0x36   : > { %s1721_s7 = scalar_lea.vmem %s2033_s10, 16  ;;  %s1728_s13 = scalar_lea.vmem %s2033_s10, 32 }
  0x37   : > { %p1722_p5 = scmp.ne.s32.totalorder %s2033_s10, %s1721_s7  ;;  %p1729_p12 = scmp.lt.s32.totalorder %s2033_s10, %s2033_s10 }
  0x38   : > { %p1730_p0 = scmp.lt.s32.totalorder %s1728_s13, %s1721_s7 }
  0x39   : > { %p1724_p7 = pnand %p1722_p5, %p2045_p13 }
  0x3a   : > { %p1731_p1 = por %p1730_p0, %p1729_p12 }
  0x3b   : > { %p1725_p9 = pneg %p1724_p7 }
  0x3d   : > { %p1732_p2 = pnand %p1731_p1, %p1725_p9 }
  0x3f   : > { %1735 = shalt.err (!%p1732_p2)
}
  0x40   : > { %1607 = dma.hbm_to_vmem [thread:$0]  (!%p2029_p11), %s2550_s2, 16, %s2033_s10, [#allocation6]  }
  0x41   : > { %s1736_s17 = scalar_lea.hbm %s2551_s3, 16 }
  0x42   : > { %p1737_p6 = scmp.ne.s32.totalorder %s2551_s3, %s1736_s17  ;;  %p1743_p5 = scmp.lt.u32.totalorder %s1736_s17, %s2551_s3 }
  0x44   : > { %p1739_p10 = pnand %p1737_p6, %p2045_p13 }
  0x46   : > { %p1740_p3 = pneg %p1739_p10 }
  0x48   : > { %p1745_p7 = pnand %p1743_p5, %p1740_p3 }
  0x4a   : > { %1748 = shalt.err (!%p1745_p7)
}
  0x4b   : > { %s1749_s13 = scalar_lea.vmem %s238_s12, 16  ;;  %s1756_s10 = scalar_lea.vmem %s238_s12, 32 }
  0x4c   : > { %p1750_p9 = scmp.ne.s32.totalorder %s238_s12, %s1749_s13  ;;  %p1757_p1 = scmp.lt.s32.totalorder %s238_s12, %s238_s12 }
  0x4d   : > { %p1758_p2 = scmp.lt.s32.totalorder %s1756_s10, %s1749_s13 }
  0x4e   : > { %p1752_p12 = pnand %p1750_p9, %p2045_p13 }
  0x4f   : > { %p1759_p4 = por %p1758_p2, %p1757_p1 }
  0x50   : > { %p1753_p0 = pneg %p1752_p12 }
  0x52   : > { %p1760_p8 = pnand %p1759_p4, %p1753_p0 }
  0x54   : > { %1763 = shalt.err (!%p1760_p8)
}
  0x55   : > { %1610 = dma.hbm_to_vmem [thread:$0]  (!%p2029_p11), %s2551_s3, 16, %s238_s12, [#allocation9]  }
  0x56   : > { %s2113_s18 = sadd.s32 1, %s1928_s24   ;;  %s35_s8 = sadd.s32 1, %s1924_s23 }
  0x57   : > { %s32_s15 = ssub.s32 %s1928_s24, %s2113_s18  ;;  %p42_p8 = scmp.ne.s32.totalorder %s1924_s23, %s1920_s22 }
  0x58   : > { %p33_p4 = scmp.eq.s32.totalorder %s32_s15, 0  ;;  %p43_p13 = scmp.eq.s32.totalorder %s1928_s24, 0 }
  0x59   : > { %p1628_p6 = scmp.lt.s32.totalorder %s1928_s24, 2  ;;  %p2564_p3 = scmp.eq.s32.totalorder %s1997_s25, 1 }
  0x5a   : > { %s2123_s16 = scalar_select %p33_p4, %s1924_s23, %s35_s8  }
  0x5b   : > { %p44_p10 = por %p43_p13, %p42_p8  ;;  %p2127_p5 = por %p2564_p3, %p42_p8 }
  0x5c   : > { %s248_s19 = sand.u32 1, %s1924_s23   ;;  %s1285_s20 = sshll.u32 %s1928_s24, 11 }
  0x5d   : > { %s1223_s12 = sshll.u32 %s248_s19, 7  ;;  %s2136_s13 = scalar_lea.hbm %s2548_s0, %s1285_s20 }
  0x5e   : > { %s252_s10 = scalar_lea.vmem [#allocation2], %s1223_s12  ;;  %p2138_p11 = pnand %p1628_p6, %p44_p10 }
  0x5f   : > { %s259_s26 = sshll.u32 %s252_s10, 4  ;;  %s2144_s15 = scalar_lea.sflag [#allocation3], %s248_s19  ;;  %s2142_s26 = int_to_ptr.vmem [resolvable:$true] %s259_s26 }
  0x60   : > { %s1764_s8 = scalar_lea.hbm %s2136_s13, 2048  ;;  %p1766_p9 = pneg %p2138_p11 }
  0x61   : > { %p1765_p7 = scmp.ne.s32.totalorder %s2136_s13, %s1764_s8  ;;  %s1769_s30 = scalar_lea.hbm %s2548_s0, 4096 }
  0x62   : > { %p1770_p1 = scmp.lt.u32.totalorder %s2136_s13, %s2548_s0  ;;  %p1771_p2 = scmp.lt.u32.totalorder %s1769_s30, %s1764_s8 }
  0x63   : > { %p1767_p12 = pnand %p1766_p9, %p1765_p7  ;;  %p1773_p8 = scmp.lt.u32.totalorder %s1764_s8, %s2136_s13 }
  0x64   : > { %p1772_p4 = por %p1771_p2, %p1770_p1 }
  0x65   : > { %p1768_p0 = pneg %p1767_p12 }
  0x66   : > { %p1774_p13 = por %p1773_p8, %p1772_p4 }
  0x68   : > { %p1775_p6 = pnand %p1774_p13, %p1768_p0 }
  0x6a   : > { %1778 = shalt.err (!%p1775_p6)
}
  0x6b   : > { %s1779_s19 = scalar_lea.vmem %s2142_s26, 2048  ;;  %s1935_s20 = smov [#allocation2]  }
  0x6c   : > { %p1780_p10 = scmp.ne.s32.totalorder %s2142_s26, %s1779_s19  ;;  %s1784_s12 = sshll.u32 %s1935_s20, 4  ;;  %s1785_s12 = int_to_ptr.vmem [resolvable:$false] %s1784_s12 }
  0x6d   : > { %s1786_s7 = scalar_lea.vmem %s1785_s12, 4096  ;;  %p1787_p12 = scmp.lt.s32.totalorder %s2142_s26, %s1785_s12 }
  0x6e   : > { %p1782_p3 = pnand %p1780_p10, %p1766_p9  ;;  %p1788_p1 = scmp.lt.s32.totalorder %s1786_s7, %s1779_s19 }
  0x70   : > { %p1783_p7 = pneg %p1782_p3  ;;  %p1789_p2 = por %p1788_p1, %p1787_p12 }
  0x72   : > { %p1790_p4 = pnand %p1789_p2, %p1783_p7 }
  0x74   : > { %1793 = shalt.err (!%p1790_p4)
}
  0x75   : > { %1614 = dma.hbm_to_vmem [thread:$0]  (!%p2138_p11), %s2136_s13, 2048, %s2142_s26, %s2144_s15, %s1933_s9, %s1933_s9, %s1934_s11  }
  0x76   : > { %p2567_p9 = scmp.ne.s32.totalorder %s2561_s29, 0 }
  0x77   : > { %s2178_s8 = sand.u32 (!%p2567_p9), 1, %s1920_s22   ;;  %p2568_p0 = scmp.ne.s32.totalorder (!%p2567_p9), %s2559_s27, 0 }
  0x78   : > { %271 = sbr.rel (%p2567_p9) target bundleno = 492 (0x1ec), region = 36  ;;  %s1227_s30 = sshll.u32 (!%p2567_p9), %s2178_s8, 7 }
  0x79   : > { %s274_s10 = scalar_lea.sflag (!%p2567_p9), [#allocation3], %s2178_s8  ;;  %s2184_s14 = scalar_lea.vmem (!%p2567_p9), [#allocation2], %s1227_s30 }
  0x7f   : > { %1895 = dma.done.wait (%p2568_p0), %s274_s10, 2048  }
  0x80   : > { %1897 = vsyncadd (%p2568_p0), %s274_s10, 4294965248  ;;  %p2569_p11 = scmp.eq.s32.totalorder %s1997_s25, 0 }
  0x82   : > { %1899 = dma.done.wait (%p2569_p11), [#allocation6], 1040   ;;  %p2570_p8 = pmov %p2569_p11 }
  0x84   : > { %1901 = vsyncadd (%p2570_p8), [#allocation6], 4294966256  ;;  %p2571_p13 = pmov %p2570_p8 }
  0x85   : > { %p2572_p6 = pmov %p2570_p8 }
  0x86   : > { %1903 = dma.done.wait (%p2571_p13), [#allocation9], 16  }
  0x87   : > { %1905 = vsyncadd (%p2572_p6), [#allocation9], 4294967280  ;;  %v1672_v0 = vld [vmem:[#allocation5] sm:$0xff]   ;;  %v1673_v1 = vld [vmem:[#allocation5 + $0x8] sm:$0xff]   ;;  %s2316_s27 = scalar_lea.vmem [#allocation10], %s1227_s30  ;;  %s1318_s29 = sshll.u32 %s1997_s25, 11 }
  0x88   : > { %1517 = vmatprep.subr.bf16.mxu0 %v1672_v0  ;;  %1565 = vmatprep.subr.bf16.mxu1 %v1672_v0  ;;  %v1674_v2 = vld [vmem:[#allocation5 + $0x10] sm:$0xff]   ;;  %v1675_v3 = vld [vmem:[#allocation5 + $0x18] sm:$0xff]   ;;  %v1320_v4 = vld [vmem:[%s2184_s14] sm:$0xff]   ;;  %s1028_s9 = sshll.u32 %s2316_s27, 4  ;;  %s2383_s26 = scalar_lea.hbm %s2552_s4, %s1318_s29  ;;  %s2385_s9 = int_to_ptr.vmem [resolvable:$true] %s1028_s9 }
  0x89   : > { %1518 = vmatpush3.bf16.msra.mxu0 %v1672_v0  ;;  %1573 = vmatpush3.bf16.msra.mxu1 %v1672_v0  ;;  %v2199_v5 = vld [vmem:[#allocation7] ss:$0 sm:$0xff]  ;;  %v1321_v6 = vunpack.c.l.bf16 %v1320_v4  ;;  %v1322_v7 = vunpack.c.h.bf16 %v1320_v4  ;;  %v1463_v8 = vld [vmem:[%s2184_s14 + $0x8] sm:$0xff]   ;;  %v1464_v9 = vld [vmem:[%s2184_s14 + $0x10] sm:$0xff]   ;;  %s1005_s15 = scalar_lea.sflag [#allocation4], %s2178_s8  ;;  %s1794_s19 = scalar_lea.vmem %s2385_s9, 2048 }
  0x8a   : > { %1519 = vmatprep.subr.bf16.mxu0 %v1673_v1  ;;  %1566 = vmatprep.subr.bf16.mxu1 %v1673_v1  ;;  %v1465_v10 = vld [vmem:[%s2184_s14 + $0x18] sm:$0xff]   ;;  %v2204_v11 = vld [vmem:[#allocation8] ss:$0 sm:$0xff]  ;;  %v1325_v12 = vunpack.c.l.bf16 %v1463_v8  ;;  %v1326_v13 = vunpack.c.h.bf16 %v1463_v8  ;;  %v1329_v14 = vunpack.c.l.bf16 %v1464_v9  ;;  %v1330_v15 = vunpack.c.h.bf16 %v1464_v9  ;;  %v1467_v33 = vld [vmem:[%s2184_s14 + $0x28] sm:$0xff]   ;;  %p1795_p10 = scmp.ne.s32.totalorder %s2385_s9, %s1794_s19  ;;  %s1936_s20 = smov [#allocation10]  }
  0x8b   : > { %v402_v16 = vmul.f32 %v1321_v6, %v2199_v5  ;;  %v403_v17 = vmul.f32 %v1322_v7, %v2199_v5  ;;  %v1333_v18 = vunpack.c.l.bf16 %v1465_v10  ;;  %v1334_v19 = vunpack.c.h.bf16 %v1465_v10  ;;  %v1676_v20 = vld [vmem:[#allocation5 + $0x20] sm:$0xff]   ;;  %v1677_v34 = vld [vmem:[#allocation5 + $0x28] sm:$0xff]   ;;  %v1468_v42 = vld [vmem:[%s2184_s14 + $0x30] sm:$0xff]   ;;  %s1798_s12 = sshll.u32 %s1936_s20, 4  ;;  %s1799_s12 = int_to_ptr.vmem [resolvable:$false] %s1798_s12 }
  0x8c   : > { %v404_v21 = vmul.f32 %v1325_v12, %v2199_v5  ;;  %v405_v22 = vmul.f32 %v1326_v13, %v2199_v5  ;;  %v406_v23 = vmul.f32 %v1329_v14, %v2199_v5  ;;  %v407_v24 = vmul.f32 %v1330_v15, %v2199_v5  ;;  %v1466_v29 = vld [vmem:[%s2184_s14 + $0x20] sm:$0xff]   ;;  %v2227_v48 = vld [vmem:[%s2184_s14 + $0x38] sm:$0xff]   ;;  %v1678_v49 = vld [vmem:[#allocation5 + $0x30] sm:$0xff]   ;;  %p1796_p3 = pnand %p1795_p10, %p2127_p5  ;;  %s1800_s7 = scalar_lea.vmem %s1799_s12, 4096 }
  0x8d   : > { %1520 = vmatpush3.bf16.msra.mxu0 %v1673_v1  ;;  %1574 = vmatpush3.bf16.msra.mxu1 %v1673_v1  ;;  %v441_v25 = vadd.f32 %v2204_v11, %v402_v16  ;;  %v442_v26 = vadd.f32 %v2204_v11, %v403_v17  ;;  %v408_v27 = vmul.f32 %v1333_v18, %v2199_v5  ;;  %v1337_v41 = vunpack.c.l.bf16 %v1466_v29  ;;  %v1470_v60 = vld [vmem:[%s2184_s14 + $0x40] sm:$0xff]   ;;  %v1679_v63 = vld [vmem:[#allocation5 + $0x38] sm:$0xff]   ;;  %v1472_v9 = vld [vmem:[%s2184_s14 + $0x50] sm:$0xff]   ;;  %p1801_p12 = scmp.lt.s32.totalorder %s2385_s9, %s1799_s12  ;;  %p1802_p1 = scmp.lt.s32.totalorder %s1800_s7, %s1794_s19 }
  0x8e   : > { %1521 = vmatprep.subr.bf16.mxu0 %v1674_v2  ;;  %1567 = vmatprep.subr.bf16.mxu1 %v1674_v2  ;;  %v409_v28 = vmul.f32 %v1334_v19, %v2199_v5  ;;  %v443_v32 = vadd.f32 %v2204_v11, %v404_v21  ;;  %v444_v35 = vadd.f32 %v2204_v11, %v405_v22  ;;  %v1338_v43 = vunpack.c.h.bf16 %v1466_v29  ;;  %v1473_v19 = vld [vmem:[%s2184_s14 + $0x58] sm:$0xff]   ;;  %p1797_p7 = pneg %p1796_p3 }
  0x8f   : > { %v473_v30 = vmax.f32 %v441_v25, 0.0  ;;  %v474_v31 = vmax.f32 %v442_v26, 0.0  ;;  %v445_v36 = vadd.f32 %v2204_v11, %v406_v23  ;;  %v446_v37 = vadd.f32 %v2204_v11, %v407_v24  ;;  %p1803_p2 = por %p1802_p1, %p1801_p12 }
  0x90   : > { %v447_v39 = vadd.f32 %v2204_v11, %v408_v27  ;;  %v448_v40 = vadd.f32 %v2204_v11, %v409_v28  ;;  %v1341_v44 = vunpack.c.l.bf16 %v1467_v33  ;;  %v475_v45 = vmax.f32 %v443_v32, 0.0  ;;  %v1474_v32 = vld [vmem:[%s2184_s14 + $0x60] sm:$0xff]  }
  0x91   : > { %1522 = vmatpush3.bf16.msra.mxu0 %v1674_v2  ;;  %1575 = vmatpush3.bf16.msra.mxu1 %v1674_v2  ;;  %v505_v38 = vpack.c.bf16 %v474_v31, %v473_v30  ;;  %v410_v46 = vmul.f32 %v1337_v41, %v2199_v5  ;;  %v1342_v47 = vunpack.c.h.bf16 %v1467_v33  ;;  %v476_v50 = vmax.f32 %v444_v35, 0.0  ;;  %p1804_p4 = pnand %p1803_p2, %p1797_p7 }
  0x92   : > { %1523 = vmatprep.subr.bf16.mxu0 %v1675_v3  ;;  %1568 = vmatprep.subr.bf16.mxu1 %v1675_v3  ;;  %v477_v51 = vmax.f32 %v445_v36, 0.0  ;;  %v478_v52 = vmax.f32 %v446_v37, 0.0  ;;  %v1345_v53 = vunpack.c.l.bf16 %v1468_v42  ;;  %v479_v54 = vmax.f32 %v447_v39, 0.0 }
  0x93   : > { %1533 = vmatprep.mubr.bf16.mxu0 %v505_v38  ;;  %v480_v55 = vmax.f32 %v448_v40, 0.0  ;;  %v411_v56 = vmul.f32 %v1338_v43, %v2199_v5  ;;  %v412_v57 = vmul.f32 %v1341_v44, %v2199_v5  ;;  %v1346_v58 = vunpack.c.h.bf16 %v1468_v42 }
  0x94   : > { %v1349_v59 = vunpack.c.l.bf16 %v2227_v48  ;;  %v2234_v61 = vadd.f32 %v2204_v11, %v410_v46  ;;  %v413_v62 = vmul.f32 %v1342_v47, %v2199_v5  ;;  %v506_v0 = vpack.c.bf16 %v476_v50, %v475_v45  ;;  %v1475_v45 = vld [vmem:[%s2184_s14 + $0x68] sm:$0xff]  }
  0x95   : > { %1524 = vmatpush3.bf16.msra.mxu0 %v1675_v3  ;;  %1576 = vmatpush3.bf16.msra.mxu1 %v1675_v3  ;;  %v507_v1 = vpack.c.bf16 %v478_v52, %v477_v51  ;;  %v414_v2 = vmul.f32 %v1345_v53, %v2199_v5  ;;  %v1471_v3 = vld [vmem:[%s2184_s14 + $0x48] sm:$0xff]   ;;  %v2239_v4 = vpack.c.bf16 %v480_v55, %v479_v54  ;;  %v1350_v7 = vunpack.c.h.bf16 %v2227_v48  ;;  %v1476_v55 = vld [vmem:[%s2184_s14 + $0x70] sm:$0xff]  }
  0x96   : > { %1525 = vmatprep.subr.bf16.mxu0 %v1676_v20  ;;  %1569 = vmatprep.subr.bf16.mxu1 %v1676_v20  ;;  %v2242_v6 = vadd.f32 %v2204_v11, %v411_v56  ;;  %v1353_v8 = vunpack.c.l.bf16 %v1470_v60  ;;  %v2247_v10 = vadd.f32 %v2204_v11, %v412_v57  ;;  %v2250_v12 = vmul.f32 %v1346_v58, %v2199_v5 }
  0x97   : > { %v2253_v13 = vmul.f32 %v1349_v59, %v2199_v5  ;;  %v1354_v14 = vunpack.c.h.bf16 %v1470_v60  ;;  %v481_v15 = vmax.f32 %v2234_v61, 0.0  ;;  %v2257_v16 = vadd.f32 %v2204_v11, %v413_v62 }
  0x98   : > { %v418_v17 = vmul.f32 %v1353_v8, %v2199_v5  ;;  %v1357_v18 = vunpack.c.l.bf16 %v1471_v3  ;;  %v1358_v22 = vunpack.c.h.bf16 %v1471_v3  ;;  %v1361_v23 = vunpack.c.l.bf16 %v1472_v9 }
  0x99   : > { %1526 = vmatpush3.bf16.msra.mxu0 %v1676_v20  ;;  %1577 = vmatpush3.bf16.msra.mxu1 %v1676_v20  ;;  %v2262_v20 = vadd.f32 %v2204_v11, %v414_v2  ;;  %v419_v21 = vmul.f32 %v1354_v14, %v2199_v5  ;;  %v482_v24 = vmax.f32 %v2242_v6, 0.0  ;;  %v1362_v27 = vunpack.c.h.bf16 %v1472_v9 }
  0x9a   : > { %1527 = vmatprep.subr.bf16.mxu0 %v1677_v34  ;;  %1570 = vmatprep.subr.bf16.mxu1 %v1677_v34  ;;  %v457_v25 = vadd.f32 %v2204_v11, %v418_v17  ;;  %v420_v26 = vmul.f32 %v1357_v18, %v2199_v5  ;;  %v421_v29 = vmul.f32 %v1358_v22, %v2199_v5  ;;  %v1365_v31 = vunpack.c.l.bf16 %v1473_v19  ;;  %v1477_v17 = vld [vmem:[%s2184_s14 + $0x78] sm:$0xff]  }
  0x9b   : > { %v458_v28 = vadd.f32 %v2204_v11, %v419_v21  ;;  %v422_v30 = vmul.f32 %v1361_v23, %v2199_v5  ;;  %v423_v35 = vmul.f32 %v1362_v27, %v2199_v5  ;;  %v1366_v36 = vunpack.c.h.bf16 %v1473_v19 }
  0x9c   : > { %v489_v33 = vmax.f32 %v457_v25, 0.0  ;;  %v460_v38 = vadd.f32 %v2204_v11, %v421_v29  ;;  %v424_v40 = vmul.f32 %v1365_v31, %v2199_v5  ;;  %v1369_v44 = vunpack.c.l.bf16 %v1474_v32 }
  0x9d   : > { %1528 = vmatpush3.bf16.msra.mxu0 %v1677_v34  ;;  %1578 = vmatpush3.bf16.msra.mxu1 %v1677_v34  ;;  %v459_v34 = vadd.f32 %v2204_v11, %v420_v26  ;;  %v490_v37 = vmax.f32 %v458_v28, 0.0  ;;  %v461_v39 = vadd.f32 %v2204_v11, %v422_v30  ;;  %v462_v42 = vadd.f32 %v2204_v11, %v423_v35 }
  0x9e   : > { %1529 = vmatprep.subr.bf16.mxu0 %v1678_v49  ;;  %1571 = vmatprep.subr.bf16.mxu1 %v1678_v49  ;;  %v425_v43 = vmul.f32 %v1366_v36, %v2199_v5  ;;  %v492_v47 = vmax.f32 %v460_v38, 0.0  ;;  %v463_v50 = vadd.f32 %v2204_v11, %v424_v40  ;;  %v1370_v53 = vunpack.c.h.bf16 %v1474_v32 }
  0x9f   : > { %v491_v41 = vmax.f32 %v459_v34, 0.0  ;;  %v513_v46 = vpack.c.bf16 %v490_v37, %v489_v33  ;;  %v494_v51 = vmax.f32 %v462_v42, 0.0  ;;  %v426_v54 = vmul.f32 %v1369_v44, %v2199_v5 }
  0xa0   : > { %v464_v52 = vadd.f32 %v2204_v11, %v425_v43  ;;  %v495_v57 = vmax.f32 %v463_v50, 0.0  ;;  %v1373_v58 = vunpack.c.l.bf16 %v1475_v45  ;;  %v1374_v59 = vunpack.c.h.bf16 %v1475_v45 }
  0xa1   : > { %1530 = vmatpush3.bf16.msra.mxu0 %v1678_v49  ;;  %1579 = vmatpush3.bf16.msra.mxu1 %v1678_v49  ;;  %v493_v49 = vmax.f32 %v461_v39, 0.0  ;;  %v514_v56 = vpack.c.bf16 %v492_v47, %v491_v41  ;;  %v427_v62 = vmul.f32 %v1370_v53, %v2199_v5  ;;  %v1377_v2 = vunpack.c.l.bf16 %v1476_v55 }
  0xa2   : > { %1531 = vmatprep.subr.bf16.mxu0 %v1679_v63  ;;  %1572 = vmatprep.subr.bf16.mxu1 %v1679_v63  ;;  %v496_v61 = vmax.f32 %v464_v52, 0.0  ;;  %v1378_v3 = vunpack.c.h.bf16 %v1476_v55  ;;  %v509_v6 = vpack.c.bf16 %v482_v24, %v481_v15  ;;  %v454_v8 = vadd.f32 %v2204_v11, %v2250_v12 }
  0xa3   : > { %1549 = vmatprep.mubr.bf16.mxu1 %v513_v46  ;;  %v515_v60 = vpack.c.bf16 %v494_v51, %v493_v49  ;;  %v466_v9 = vadd.f32 %v2204_v11, %v427_v62  ;;  %v483_v18 = vmax.f32 %v2247_v10, 0.0  ;;  %v417_v19 = vmul.f32 %v1350_v7, %v2199_v5 }
  0xa4   : > { %v430_v21 = vmul.f32 %v1377_v2, %v2199_v5  ;;  %v431_v22 = vmul.f32 %v1378_v3, %v2199_v5  ;;  %v484_v15 = vmax.f32 %v2257_v16, 0.0  ;;  %v485_v23 = vmax.f32 %v2262_v20, 0.0 }
  0xa5   : > { %1532 = vmatpush3.bf16.msra.mxu0 %v1679_v63  ;;  %1580 = vmatpush3.bf16.msra.mxu1 %v1679_v63  ;;  %v465_v63 = vadd.f32 %v2204_v11, %v426_v54  ;;  %v516_v12 = vpack.c.bf16 %v496_v61, %v495_v57  ;;  %v498_v24 = vmax.f32 %v466_v9, 0.0  ;;  %v1381_v26 = vunpack.c.l.bf16 %v1477_v17 }
  0xa6   : > { %v1382_v27 = vunpack.c.h.bf16 %v1477_v17  ;;  %v486_v48 = vmax.f32 %v454_v8, 0.0  ;;  %v469_v28 = vadd.f32 %v2204_v11, %v430_v21  ;;  %v470_v29 = vadd.f32 %v2204_v11, %v431_v22 }
  0xa7   : > { %v497_v14 = vmax.f32 %v465_v63, 0.0  ;;  %v510_v16 = vpack.c.bf16 %v484_v15, %v483_v18  ;;  %v455_v20 = vadd.f32 %v2204_v11, %v2253_v13  ;;  %v456_v30 = vadd.f32 %v2204_v11, %v417_v19 }
  0xa8   : > { %1534 = vmatmul.mubr.bf16.vlgmr.msra.gmra.mrb[0].mxu0 %v506_v0  ;;  %1550 = vmatmul.mubr.bf16.vlgmr.msra.gmra.mrb[0].mxu1 %v514_v56  ;;  %v428_v0 = vmul.f32 %v1373_v58, %v2199_v5  ;;  %v432_v32 = vmul.f32 %v1381_v26, %v2199_v5  ;;  %v433_v33 = vmul.f32 %v1382_v27, %v2199_v5  ;;  %v501_v35 = vmax.f32 %v469_v28, 0.0 }
  0xa9   : > { %1537 = vmatprep.mubr.bf16.mxu0 %v507_v1  ;;  %v429_v1 = vmul.f32 %v1374_v59, %v2199_v5  ;;  %1553 = vmatprep.mubr.bf16.mxu1 %v515_v60  ;;  %v517_v7 = vpack.c.bf16 %v498_v24, %v497_v14  ;;  %v511_v34 = vpack.c.bf16 %v486_v48, %v485_v23  ;;  %v502_v36 = vmax.f32 %v470_v29, 0.0 }
  0xaa   : > { %v467_v25 = vadd.f32 %v2204_v11, %v428_v0  ;;  %v487_v37 = vmax.f32 %v455_v20, 0.0  ;;  %v488_v38 = vmax.f32 %v456_v30, 0.0  ;;  %v471_v40 = vadd.f32 %v2204_v11, %v432_v32 }
  0xab   : > { %v468_v10 = vadd.f32 %v2204_v11, %v429_v1  ;;  %v472_v13 = vadd.f32 %v2204_v11, %v433_v33  ;;  %v519_v41 = vpack.c.bf16 %v502_v36, %v501_v35 }
  0xac   : > { %v512_v42 = vpack.c.bf16 %v488_v38, %v487_v37  ;;  %v503_v43 = vmax.f32 %v471_v40, 0.0 }
  0xad   : > { %v500_v31 = vmax.f32 %v468_v10, 0.0  ;;  %v504_v44 = vmax.f32 %v472_v13, 0.0 }
  0xaf   : > { %v520_v5 = vpack.c.bf16 %v504_v44, %v503_v43 }
  0xb0   : > { %1538 = vmatmul.mubr.bf16.gmra.mrb[4].mxu0 %v2239_v4  ;;  %1554 = vmatmul.mubr.bf16.gmra.mrb[4].mxu1 %v516_v12  ;;  %v499_v4 = vmax.f32 %v467_v25, 0.0 }
  0xb1   : > { %1541 = vmatprep.mubr.bf16.mxu0 %v509_v6  ;;  %1557 = vmatprep.mubr.bf16.mxu1 %v517_v7 }
  0xb2   : > { %v518_v39 = vpack.c.bf16 %v500_v31, %v499_v4 }
  0xb8   : > { %1542 = vmatmul.mubr.bf16.gmra.mrb[8].mxu0 %v510_v16  ;;  %1558 = vmatmul.mubr.bf16.gmra.mrb[8].mxu1 %v518_v39 }
  0xb9   : > { %1545 = vmatprep.mubr.bf16.mxu0 %v511_v34  ;;  %1561 = vmatprep.mubr.bf16.mxu1 %v519_v41 }
  0xc0   : > { %1546 = vmatmul.mubr.bf16.gmra.mrb[12].mxu0 %v512_v42  ;;  %1562 = vmatmul.mubr.bf16.gmra.mrb[12].mxu1 %v520_v5 }
 0x17b   : > { %v1535_v45 = vpop.f32.mrb[0].mxu0  ;;  %v2312_v54 = vpop.f32.mrb[0].mxu1 }
 0x17c   : > { %v619_v46 = vpop.f32.mrb[1].mxu0  ;;  %v2319_v55 = vpop.f32.mrb[1].mxu1  ;;  %v913_v56 = vmul.f32 %v1535_v45, %v1535_v45 }
 0x17d   : > { %v1536_v47 = vpop.f32.mrb[2].mxu0  ;;  %v907_v51 = vmul.f32 %v619_v46, %v619_v46  ;;  %v2322_v59 = vpop.f32.mrb[2].mxu1 }
 0x17e   : > { %v1391_v49 = vpack.c.bf16 %v1536_v47, %v1535_v45  ;;  %v622_v50 = vpop.f32.mrb[3].mxu0  ;;  %v1431_v60 = vpack.c.bf16 %v2322_v59, %v2312_v54  ;;  %v2326_v61 = vpop.f32.mrb[3].mxu1  ;;  %v916_v62 = vmul.f32 %v1536_v47, %v1536_v47 }
 0x17f   : > { %v1386_v52 = vpack.c.bf16 %v622_v50, %v619_v46  ;;  %v909_v53 = vadd.f32 %v622_v50, %v619_v46  ;;  %v910_v11 = vmul.f32 %v622_v50, %v622_v50  ;;  %v1426_v2 = vpack.c.bf16 %v2326_v61, %v2319_v55 }
 0x180   : > { %1478 = vst [vmem:[%s2316_s27 + $0x8] sm:$0xff] %v1391_v49   ;;  %1486 = vst [vmem:[%s2316_s27 + $0x48] sm:$0xff] %v1431_v60  }
 0x181   : > { %1387 = vst [vmem:[%s2316_s27] sm:$0xff] %v1386_v52   ;;  %v911_v57 = vadd.f32 %v910_v11, %v907_v51  ;;  %v912_v58 = vadd.f32 %v1535_v45, %v909_v53  ;;  %1485 = vst [vmem:[%s2316_s27 + $0x40] sm:$0xff] %v1426_v2  }
 0x183   : > { %v914_v63 = vadd.f32 %v913_v56, %v911_v57  ;;  %v1539_v0 = vpop.f32.mrb[4].mxu0  ;;  %v915_v1 = vadd.f32 %v1536_v47, %v912_v58  ;;  %v2332_v23 = vpop.f32.mrb[4].mxu1 }
 0x184   : > { %v635_v3 = vpop.f32.mrb[5].mxu0  ;;  %v2335_v12 = vpop.f32.mrb[5].mxu1  ;;  %v925_v24 = vmul.f32 %v1539_v0, %v1539_v0 }
 0x185   : > { %v917_v6 = vadd.f32 %v916_v62, %v914_v63  ;;  %v918_v8 = vadd.f32 %v915_v1, %v635_v3  ;;  %v919_v9 = vmul.f32 %v635_v3, %v635_v3  ;;  %v1540_v14 = vpop.f32.mrb[6].mxu0  ;;  %v2338_v26 = vpop.f32.mrb[6].mxu1 }
 0x186   : > { %v1401_v17 = vpack.c.bf16 %v1540_v14, %v1539_v0  ;;  %v638_v18 = vpop.f32.mrb[7].mxu0  ;;  %v1441_v27 = vpack.c.bf16 %v2338_v26, %v2332_v23  ;;  %v2342_v48 = vpop.f32.mrb[7].mxu1  ;;  %v928_v7 = vmul.f32 %v1540_v14, %v1540_v14 }
 0x187   : > { %v920_v19 = vadd.f32 %v919_v9, %v917_v6  ;;  %v1396_v21 = vpack.c.bf16 %v638_v18, %v635_v3  ;;  %v921_v22 = vadd.f32 %v918_v8, %v638_v18  ;;  %v922_v15 = vmul.f32 %v638_v18, %v638_v18 }
 0x188   : > { %1480 = vst [vmem:[%s2316_s27 + $0x18] sm:$0xff] %v1401_v17   ;;  %v1436_v20 = vpack.c.bf16 %v2342_v48, %v2335_v12  ;;  %1488 = vst [vmem:[%s2316_s27 + $0x58] sm:$0xff] %v1441_v27   ;;  %v955_v17 = vmul.f32 %v2319_v55, %v2319_v55 }
 0x189   : > { %1479 = vst [vmem:[%s2316_s27 + $0x10] sm:$0xff] %v1396_v21   ;;  %v923_v25 = vadd.f32 %v922_v15, %v920_v19  ;;  %v924_v10 = vadd.f32 %v1539_v0, %v921_v22 }
 0x18a   : > { %1487 = vst [vmem:[%s2316_s27 + $0x50] sm:$0xff] %v1436_v20  }
 0x18b   : > { %v926_v28 = vadd.f32 %v925_v24, %v923_v25  ;;  %v1543_v29 = vpop.f32.mrb[8].mxu0  ;;  %v927_v16 = vadd.f32 %v1540_v14, %v924_v10  ;;  %v2348_v40 = vpop.f32.mrb[8].mxu1 }
 0x18c   : > { %v651_v30 = vpop.f32.mrb[9].mxu0  ;;  %v2351_v13 = vpop.f32.mrb[9].mxu1  ;;  %v937_v41 = vmul.f32 %v1543_v29, %v1543_v29 }
 0x18d   : > { %v929_v4 = vadd.f32 %v928_v7, %v926_v28  ;;  %v930_v31 = vadd.f32 %v927_v16, %v651_v30  ;;  %v931_v32 = vmul.f32 %v651_v30, %v651_v30  ;;  %v1544_v33 = vpop.f32.mrb[10].mxu0  ;;  %v2354_v44 = vpop.f32.mrb[10].mxu1 }
 0x18e   : > { %v1411_v34 = vpack.c.bf16 %v1544_v33, %v1543_v29  ;;  %v654_v35 = vpop.f32.mrb[11].mxu0  ;;  %v1451_v5 = vpack.c.bf16 %v2354_v44, %v2348_v40  ;;  %v2358_v45 = vpop.f32.mrb[11].mxu1  ;;  %v940_v46 = vmul.f32 %v1544_v33, %v1544_v33 }
 0x18f   : > { %v932_v36 = vadd.f32 %v931_v32, %v929_v4  ;;  %v1406_v37 = vpack.c.bf16 %v654_v35, %v651_v30  ;;  %v933_v38 = vadd.f32 %v930_v31, %v654_v35  ;;  %v934_v39 = vmul.f32 %v654_v35, %v654_v35 }
 0x190   : > { %1482 = vst [vmem:[%s2316_s27 + $0x28] sm:$0xff] %v1411_v34   ;;  %v1446_v51 = vpack.c.bf16 %v2358_v45, %v2351_v13  ;;  %1490 = vst [vmem:[%s2316_s27 + $0x68] sm:$0xff] %v1451_v5  }
 0x191   : > { %1481 = vst [vmem:[%s2316_s27 + $0x20] sm:$0xff] %v1406_v37   ;;  %v935_v42 = vadd.f32 %v934_v39, %v932_v36  ;;  %v936_v43 = vadd.f32 %v1543_v29, %v933_v38 }
 0x192   : > { %1489 = vst [vmem:[%s2316_s27 + $0x60] sm:$0xff] %v1446_v51  }
 0x193   : > { %v938_v47 = vadd.f32 %v937_v41, %v935_v42  ;;  %v1547_v49 = vpop.f32.mrb[12].mxu0  ;;  %v939_v50 = vadd.f32 %v1544_v33, %v936_v43  ;;  %v2364_v2 = vpop.f32.mrb[12].mxu1 }
 0x194   : > { %v667_v52 = vpop.f32.mrb[13].mxu0  ;;  %v2369_v3 = vpop.f32.mrb[13].mxu1  ;;  %v949_v6 = vmul.f32 %v1547_v49, %v1547_v49 }
 0x195   : > { %v941_v53 = vadd.f32 %v940_v46, %v938_v47  ;;  %v942_v11 = vadd.f32 %v939_v50, %v667_v52  ;;  %v943_v56 = vmul.f32 %v667_v52, %v667_v52  ;;  %v1548_v57 = vpop.f32.mrb[14].mxu0  ;;  %v2372_v14 = vpop.f32.mrb[14].mxu1 }
 0x196   : > { %v1421_v58 = vpack.c.bf16 %v1548_v57, %v1547_v49  ;;  %v670_v60 = vpop.f32.mrb[15].mxu0  ;;  %v1461_v18 = vpack.c.bf16 %v2372_v14, %v2364_v2  ;;  %v2378_v19 = vpop.f32.mrb[15].mxu1  ;;  %v952_v21 = vmul.f32 %v1548_v57, %v1548_v57 }
 0x197   : > { %v944_v62 = vadd.f32 %v943_v56, %v941_v53  ;;  %v1416_v63 = vpack.c.bf16 %v670_v60, %v667_v52  ;;  %v945_v0 = vadd.f32 %v942_v11, %v670_v60  ;;  %v946_v1 = vmul.f32 %v670_v60, %v670_v60 }
 0x198   : > { %1484 = vst [vmem:[%s2316_s27 + $0x38] sm:$0xff] %v1421_v58   ;;  %v1456_v24 = vpack.c.bf16 %v2378_v19, %v2369_v3  ;;  %1492 = vst [vmem:[%s2316_s27 + $0x78] sm:$0xff] %v1461_v18  }
 0x199   : > { %1483 = vst [vmem:[%s2316_s27 + $0x30] sm:$0xff] %v1416_v63   ;;  %v947_v8 = vadd.f32 %v946_v1, %v944_v62  ;;  %v948_v9 = vadd.f32 %v1547_v49, %v945_v0 }
 0x19a   : > { %1491 = vst [vmem:[%s2316_s27 + $0x70] sm:$0xff] %v1456_v24  }
 0x19b   : > { %v950_v22 = vadd.f32 %v949_v6, %v947_v8  ;;  %v951_v15 = vadd.f32 %v1548_v57, %v948_v9 }
 0x19d   : > { %v953_v25 = vadd.f32 %v952_v21, %v950_v22  ;;  %v954_v10 = vadd.f32 %v951_v15, %v2319_v55 }
 0x19e   : > { %1807 = shalt.err (!%p1804_p4)
}
 0x19f   : > { %s1808_s30 = scalar_lea.hbm %s2383_s26, 2048  ;;  %s1812_s27 = scalar_lea.hbm %s2552_s4, 4096 }
 0x1a0   : > { %p1809_p9 = scmp.ne.s32.totalorder %s2383_s26, %s1808_s30  ;;  %p1813_p8 = scmp.lt.u32.totalorder %s2383_s26, %s2552_s4 }
 0x1a1   : > { %p1814_p13 = scmp.lt.u32.totalorder %s1812_s27, %s1808_s30  ;;  %p1816_p10 = scmp.lt.u32.totalorder %s1808_s30, %s2383_s26 }
 0x1a2   : > { %p1810_p0 = pnand %p1809_p9, %p2127_p5 }
 0x1a3   : > { %p1815_p6 = por %p1814_p13, %p1813_p8 }
 0x1a4   : > { %p1811_p11 = pneg %p1810_p0 }
 0x1a5   : > { %p1817_p3 = por %p1816_p10, %p1815_p6 }
 0x1a7   : > { %p1818_p7 = pnand %p1817_p3, %p1811_p11 }
 0x1a9   : > { %1821 = shalt.err (!%p1818_p7)
}
 0x1aa   : > { %s1937_s13 = smov 64   ;;  %s1938_s19 = smov 4   ;;  %v956_v55 = vadd.f32 %v955_v17, %v953_v25  ;;  %v957_v27 = vadd.f32 %v954_v10, %v2326_v61  ;;  %v958_v7 = vmul.f32 %v2326_v61, %v2326_v61  ;;  %v961_v28 = vmul.f32 %v2312_v54, %v2312_v54 }
 0x1ab   : > { %1595 = dma.vmem_to_hbm [thread:$0]  (%p2127_p5), %s2385_s9, 2048, %s2383_s26, %s1005_s15, %s1937_s13, %s1937_s13, %s1938_s19   ;;  %v964_v20 = vmul.f32 %v2322_v59, %v2322_v59  ;;  %v967_v31 = vmul.f32 %v2335_v12, %v2335_v12  ;;  %v970_v35 = vmul.f32 %v2342_v48, %v2342_v48  ;;  %v985_v5 = vmul.f32 %v2348_v40, %v2348_v40 }
 0x1ac   : > { %v959_v29 = vadd.f32 %v958_v7, %v956_v55  ;;  %v960_v16 = vadd.f32 %v2312_v54, %v957_v27  ;;  %v973_v54 = vmul.f32 %v2332_v23, %v2332_v23  ;;  %s1232_s9 = sshll.u32 %s2178_s8, 3  ;;  %v988_v47 = vmul.f32 %v2354_v44, %v2354_v44  ;;  %s1009_s26 = sand.u32 1, %s1997_s25  }
 0x1ad   : > { %v991_v50 = vmul.f32 %v2369_v3, %v2369_v3  ;;  %v994_v11 = vmul.f32 %v2378_v19, %v2378_v19  ;;  %s1281_s8 = sshll.u32 %s1997_s25, 7  ;;  %s320_s15 = scalar_lea.vmem [#allocation11], %s1232_s9  ;;  %v1000_v57 = vmul.f32 %v2372_v14, %v2372_v14 }
 0x1ae   : > { %v962_v30 = vadd.f32 %v961_v28, %v959_v29  ;;  %v963_v4 = vadd.f32 %v2322_v59, %v960_v16  ;;  %v976_v59 = vmul.f32 %v2338_v26, %v2338_v26  ;;  %s1044_s20 = sshll.u32 %s320_s15, 4  ;;  %s2461_s12 = scalar_lea.vmem [#allocation13], %s1232_s9  ;;  %s2472_s20 = int_to_ptr.vmem [resolvable:$true] %s1044_s20 }
 0x1af   : > { %s1057_s7 = sshll.u32 %s2461_s12, 4  ;;  %s2470_s10 = scalar_lea.hbm %s2553_s5, %s1281_s8  ;;  %s2479_s7 = int_to_ptr.vmem [resolvable:$true] %s1057_s7 }
 0x1b0   : > { %v965_v32 = vadd.f32 %v964_v20, %v962_v30  ;;  %v966_v33 = vadd.f32 %v963_v4, %v2335_v12  ;;  %v979_v12 = vmul.f32 %v2351_v13, %v2351_v13  ;;  %s2477_s29 = scalar_lea.hbm %s2554_s6, %s1281_s8  ;;  %s2481_s11 = scalar_lea.sflag [#allocation12], %s1009_s26 }
 0x1b1   : > { %s1822_s13 = scalar_lea.vmem %s2472_s20, 128  ;;  %s1939_s19 = smov [#allocation11]  }
 0x1b2   : > { %v968_v34 = vadd.f32 %v967_v31, %v965_v32  ;;  %v969_v61 = vadd.f32 %v966_v33, %v2342_v48  ;;  %p1823_p12 = scmp.ne.s32.totalorder %s2472_s20, %s1822_s13  ;;  %s1826_s9 = sshll.u32 %s1939_s19, 4  ;;  %s1827_s9 = int_to_ptr.vmem [resolvable:$false] %s1826_s9 }
 0x1b3   : > { %s1828_s25 = scalar_lea.vmem %s1827_s9, 256  ;;  %p1829_p4 = scmp.lt.s32.totalorder %s2472_s20, %s1827_s9 }
 0x1b4   : > { %v971_v36 = vadd.f32 %v970_v35, %v968_v34  ;;  %v972_v37 = vadd.f32 %v2332_v23, %v969_v61  ;;  %v982_v23 = vmul.f32 %v2358_v45, %v2358_v45  ;;  %p1824_p1 = pnand %p1823_p12, %p2127_p5  ;;  %p1830_p9 = scmp.lt.s32.totalorder %s1828_s25, %s1822_s13 }
 0x1b6   : > { %v974_v38 = vadd.f32 %v973_v54, %v971_v36  ;;  %v975_v39 = vadd.f32 %v2338_v26, %v972_v37  ;;  %p1825_p2 = pneg %p1824_p1  ;;  %p1831_p0 = por %p1830_p9, %p1829_p4 }
 0x1b8   : > { %v977_v41 = vadd.f32 %v976_v59, %v974_v38  ;;  %v978_v42 = vadd.f32 %v975_v39, %v2351_v13  ;;  %p1832_p11 = pnand %p1831_p0, %p1825_p2 }
 0x1ba   : > { %v980_v48 = vadd.f32 %v979_v12, %v977_v41  ;;  %v981_v43 = vadd.f32 %v978_v42, %v2358_v45 }
 0x1bc   : > { %v983_v46 = vadd.f32 %v982_v23, %v980_v48  ;;  %v984_v26 = vadd.f32 %v2348_v40, %v981_v43  ;;  %v997_v40 = vmul.f32 %v2364_v2, %v2364_v2 }
 0x1be   : > { %v986_v49 = vadd.f32 %v985_v5, %v983_v46  ;;  %v987_v13 = vadd.f32 %v2354_v44, %v984_v26 }
 0x1c0   : > { %v989_v51 = vadd.f32 %v988_v47, %v986_v49  ;;  %v990_v52 = vadd.f32 %v987_v13, %v2369_v3 }
 0x1c2   : > { %v992_v45 = vadd.f32 %v991_v50, %v989_v51  ;;  %v993_v53 = vadd.f32 %v990_v52, %v2378_v19 }
 0x1c4   : > { %v995_v44 = vadd.f32 %v994_v11, %v992_v45  ;;  %v996_v56 = vadd.f32 %v2364_v2, %v993_v53 }
 0x1c6   : > { %v998_v58 = vadd.f32 %v997_v40, %v995_v44  ;;  %v999_v60 = vadd.f32 %v2372_v14, %v996_v56 }
 0x1c8   : > { %v1001_v62 = vadd.f32 %v1000_v57, %v998_v58  ;;  %1002 = vst [vmem:[%s320_s15] sm:$0xff] %v999_v60 }
 0x1c9   : > { %1835 = shalt.err (!%p1832_p11)
}
 0x1ca   : > { %s1836_s26 = scalar_lea.hbm %s2470_s10, 128  ;;  %s1840_s30 = scalar_lea.hbm %s2553_s5, 256 }
 0x1cb   : > { %p1837_p8 = scmp.ne.s32.totalorder %s2470_s10, %s1836_s26  ;;  %p1841_p10 = scmp.lt.u32.totalorder %s2470_s10, %s2553_s5 }
 0x1cc   : > { %p1842_p3 = scmp.lt.u32.totalorder %s1840_s30, %s1836_s26  ;;  %p1844_p12 = scmp.lt.u32.totalorder %s1836_s26, %s2470_s10 }
 0x1cd   : > { %p1838_p13 = pnand %p1837_p8, %p2127_p5 }
 0x1ce   : > { %p1843_p7 = por %p1842_p3, %p1841_p10 }
 0x1cf   : > { %p1839_p6 = pneg %p1838_p13 }
 0x1d0   : > { %p1845_p1 = por %p1844_p12, %p1843_p7 }
 0x1d2   : > { %p1846_p2 = pnand %p1845_p1, %p1839_p6 }
 0x1d4   : > { %1849 = shalt.err (!%p1846_p2)
}
 0x1d5   : > { %1596 = dma.vmem_to_hbm [thread:$0]  (%p2127_p5), %s2472_s20, 128, %s2470_s10, %s2481_s11   ;;  %1003 = vst [vmem:[%s2461_s12] sm:$0xff] %v1001_v62 }
 0x1d6   : > { %s1850_s13 = scalar_lea.vmem %s2479_s7, 128  ;;  %s1940_s19 = smov [#allocation13]  }
 0x1d7   : > { %p1851_p4 = scmp.ne.s32.totalorder %s2479_s7, %s1850_s13  ;;  %s1854_s9 = sshll.u32 %s1940_s19, 4  ;;  %s1855_s9 = int_to_ptr.vmem [resolvable:$false] %s1854_s9 }
 0x1d8   : > { %s1856_s25 = scalar_lea.vmem %s1855_s9, 256  ;;  %p1857_p11 = scmp.lt.s32.totalorder %s2479_s7, %s1855_s9 }
 0x1d9   : > { %p1852_p9 = pnand %p1851_p4, %p2127_p5  ;;  %p1858_p8 = scmp.lt.s32.totalorder %s1856_s25, %s1850_s13 }
 0x1db   : > { %p1853_p0 = pneg %p1852_p9  ;;  %p1859_p13 = por %p1858_p8, %p1857_p11 }
 0x1dd   : > { %p1860_p6 = pnand %p1859_p13, %p1853_p0 }
 0x1df   : > { %1863 = shalt.err (!%p1860_p6)
}
 0x1e0   : > { %s1864_s20 = scalar_lea.hbm %s2477_s29, 128  ;;  %s1868_s26 = scalar_lea.hbm %s2554_s6, 256 }
 0x1e1   : > { %p1865_p10 = scmp.ne.s32.totalorder %s2477_s29, %s1864_s20  ;;  %p1869_p12 = scmp.lt.u32.totalorder %s2477_s29, %s2554_s6 }
 0x1e2   : > { %p1870_p1 = scmp.lt.u32.totalorder %s1868_s26, %s1864_s20  ;;  %p1872_p4 = scmp.lt.u32.totalorder %s1864_s20, %s2477_s29 }
 0x1e3   : > { %p1866_p3 = pnand %p1865_p10, %p2127_p5 }
 0x1e4   : > { %p1871_p2 = por %p1870_p1, %p1869_p12 }
 0x1e5   : > { %p1867_p7 = pneg %p1866_p3 }
 0x1e6   : > { %p1873_p9 = por %p1872_p4, %p1871_p2 }
 0x1e8   : > { %p1874_p0 = pnand %p1873_p9, %p1867_p7 }
 0x1ea   : > { %1877 = shalt.err (!%p1874_p0)
}
 0x1eb   : > { %1597 = dma.vmem_to_hbm [thread:$0]  (%p2127_p5), %s2479_s7, 128, %s2477_s29, %s2481_s11  }
 0x1ec PF: > { %s1069_s30 = sand.u32 1, %s1916_s21   ;;  %p2573_p11 = scmp.ne.s32.totalorder %s2560_s28, 0 }
 0x1ed   : > { %p2574_p8 = scmp.ge.s32.totalorder %s1928_s24, 2  ;;  %s1070_s14 = scalar_lea.sflag [#allocation4], %s1069_s30 }
 0x1ef   : > { %p1616_p13 = pnand %p2574_p8, %p2573_p11 }
 0x1f1   : > { %1907 = dma.done.wait (!%p1616_p13), %s1070_s14, 2048  }
 0x1f2   : > { %1909 = vsyncadd (!%p1616_p13), %s1070_s14, 4294965248  ;;  %s2575_s27 = sadd.s32 4294967294, %s1928_s24  }
 0x1f3   : > { %s1078_s13 = sand.u32 1, %s2575_s27  }
 0x1f4   : > { %s1079_s19 = scalar_lea.sflag [#allocation12], %s1078_s13 }
 0x1f5   : > { %1911 = dma.done.wait (!%p1616_p13), %s1079_s19, 256  }
 0x1f6   : > { %1913 = vsyncadd (!%p1616_p13), %s1079_s19, 4294967040  ;;  %p25_p5 = scmp.ge.s32.totalorder %s2113_s18, 4   ;;  %s2576_s21 = smov %s1920_s22 }
 0x1f7   : > { %s2577_s22 = smov %s1924_s23  ;;  %s2578_s23 = smov %s2123_s16 }
 0x1f8   : > { %s2579_s24 = smov %s2113_s18  ;;  %27 = sbr.rel (!%p25_p5) target bundleno = 9 (0x9), region = 125 }
 0x1ff   :  { %1093 = vsyncpa [#allocation3], 1 }
 0x200   :  { %1095 = vsyncpa [#allocation3 + $0x1], 1 }
 0x201   :  { %1096 = vsyncpa [#allocation6], 1 }
 0x202   :  { %1097 = vsyncpa [#allocation9], 1 }
 0x203   :  { %1098 = vsyncpa [#allocation4], 1 }
 0x204   :  { %1100 = vsyncpa [#allocation4 + $0x1], 1 }
 0x205   :  { %1101 = vsyncpa [#allocation12], 1 }
 0x206   :  { %1103 = vsyncpa [#allocation12 + $0x1], 1 }

// kernel: residual_block_forward.5
= control target key start
LH: loop header
LB: loop body
LE: loop exit
PB: predicated region body
PF: predicated region fallthrough
CT: control target
= control target key end

     0   :  { %s1633_s0 = inlined_call_operand.hbm [shape: bf16[512,128], index: 0, kind: input, shape index: {}]   ;;  %s1634_s1 = inlined_call_operand.hbm [shape: f32[1,128], index: 1, kind: input, shape index: {}]   ;;  %s1635_s2 = inlined_call_operand.hbm [shape: f32[1,128], index: 2, kind: input, shape index: {}]   ;;  %s1636_s3 = inlined_call_operand.hbm [shape: bf16[512,128], index: 3, kind: input, shape index: {}]   ;;  %s1637_s4 = inlined_call_operand.hbm [shape: f32[512,128], index: 4, kind: output, shape index: {}]  }
   0x1   :  { %1643 = sst [smem:[#allocation15_spill]] %s1633_s0 }
   0x2   :  { %9 = vsyncpa [#allocation3], 0 }
   0x3   :  { %11 = vsyncpa [#allocation3 + $0x1], 0 }
   0x4   :  { %12 = vsyncpa [#allocation6], 0 }
   0x5   :  { %13 = vsyncpa [#allocation9], 0 }
   0x6   :  { %15 = vsyncpa [#allocation9 + $0x1], 0 }
   0x7   :  { %16 = vsyncpa [#allocation4], 0 }
   0x8   :  { %18 = vsyncpa [#allocation4 + $0x1], 0  ;;  %s1202_s15 = smov 0   ;;  %s1204_s16 = smov 0  }
   0x9   :  { %s1206_s17 = smov 0   ;;  %s1208_s18 = smov 0  }
   0xa LB: > { %s1223_s19 = sadd.s32 4294967295, %s1166_s18   ;;  %s715_s20 = sadd.s32 4294967294, %s1166_s18   ;;  %s1166_s18 = sphi %s1208_s18, %s1664_s18   ;;  %s1162_s17 = sphi %s1206_s17, %s1663_s17   ;;  %s1158_s16 = sphi %s1204_s16, %s1662_s16   ;;  %s1154_s15 = sphi %s1202_s15, %s1661_s15  }
   0xb   : > { %s1227_s21 = sadd.s32 1, %s1166_s18   ;;  %s31_s22 = sadd.s32 1, %s1162_s17 }
   0xc   : > { %s28_s23 = ssub.s32 %s1166_s18, %s1227_s21  ;;  %p38_p0 = scmp.ne.s32.totalorder %s1162_s17, %s1158_s16 }
   0xd   : > { %p29_p1 = scmp.eq.s32.totalorder %s28_s23, 0  ;;  %p39_p2 = scmp.eq.s32.totalorder %s1166_s18, 0 }
   0xe   : > { %p44_p3 = scmp.ne.s32.totalorder %s1158_s16, %s1154_s15  ;;  %p1638_p4 = scmp.eq.s32.totalorder %s1223_s19, 0 }
   0xf   : > { %s1239_s24 = scalar_select %p29_p1, %s1162_s17, %s31_s22  }
  0x10   : > { %p1241_p5 = por %p39_p2, %p38_p0  ;;  %p1247_p6 = por %p1638_p4, %p44_p3 }
  0x11   : > { %p136_p7 = scmp.eq.s32.totalorder %s1223_s19, 1  ;;  %p142_p8 = scmp.eq.s32.totalorder %s715_s20, 1 }
  0x12   : > { %s1645_s26 = scalar_select %p1247_p6, 1, 0 }
  0x13   : > { %p716_p9 = scmp.ge.s32.totalorder %s1166_s18, 1  ;;  %p149_p10 = scmp.lt.s32.totalorder %s1166_s18, 3 }
  0x14   : > { %p1254_p11 = por %p136_p7, %p38_p0  ;;  %p1258_p12 = por %p142_p8, %p44_p3 }
  0x15   : > { %p1262_p13 = pnand %p716_p9, %p149_p10  ;;  %s1168_s30 = smov [#allocation5]  }
  0x16   : > { %s1646_s27 = scalar_select %p1254_p11, 1, 0 }
  0x17   : > { %s1647_s28 = scalar_select %p1258_p12, 1, 0 }
  0x18   : > { %s1648_s29 = scalar_select %p1262_p13, 1, 0 }
  0x19   : > { %p914_p2 = pneg %p1262_p13  ;;  %s162_s5 = sshll.u32 %s1168_s30, 4  ;;  %s163_s5 = int_to_ptr.vmem [resolvable:$true] %s162_s5 }
  0x1a   : > { %p934_p4 = scmp.lt.s32.totalorder %s1166_s18, 2  ;;  %p1649_p0 = scmp.eq.s32.totalorder %s1223_s19, 0 }
  0x1b   : > { %s1169_s8 = smov [#allocation7]   ;;  %s976_s12 = scalar_lea.hbm %s1634_s1, 16 }
  0x1c   : > { %p1272_p7 = pnand %p914_p2, %p1649_p0  ;;  %p1278_p3 = pnand %p934_p4, %p1241_p5 }
  0x1d   : > { %s173_s9 = sshll.u32 %s1169_s8, 4  ;;  %p977_p8 = scmp.ne.s32.totalorder %s1634_s1, %s976_s12  ;;  %s1282_s9 = int_to_ptr.vmem [resolvable:$true] %s173_s9 }
  0x1e   : > { %s1651_s7 = scalar_select %p1278_p3, 1, 0 }
  0x1f   : > { %p978_p9 = pneg %p1272_p7  ;;  %p983_p10 = scmp.lt.u32.totalorder %s976_s12, %s1634_s1 }
  0x21   : > { %p979_p4 = pnand %p978_p9, %p977_p8 }
  0x23   : > { %p980_p5 = pneg %p979_p4 }
  0x25   : > { %p985_p2 = pnand %p983_p10, %p980_p5 }
  0x27   : > { %988 = shalt.err (!%p985_p2)
}
  0x28   : > { %s989_s23 = scalar_lea.vmem %s163_s5, 16  ;;  %s996_s25 = scalar_lea.vmem %s163_s5, 32 }
  0x29   : > { %p990_p0 = scmp.ne.s32.totalorder %s163_s5, %s989_s23  ;;  %p997_p11 = scmp.lt.s32.totalorder %s163_s5, %s163_s5 }
  0x2a   : > { %p998_p6 = scmp.lt.s32.totalorder %s996_s25, %s989_s23 }
  0x2b   : > { %p992_p1 = pnand %p990_p0, %p978_p9 }
  0x2c   : > { %p999_p13 = por %p998_p6, %p997_p11 }
  0x2d   : > { %p993_p12 = pneg %p992_p1 }
  0x2f   : > { %p1000_p3 = pnand %p999_p13, %p993_p12 }
  0x31   : > { %1003 = shalt.err (!%p1000_p3)
}
  0x32   : > { %917 = dma.hbm_to_vmem [thread:$0]  (!%p1272_p7), %s1634_s1, 16, %s163_s5, [#allocation6]  }
  0x33   : > { %s1307_s10 = sand.u32 1, %s1162_s17   ;;  %s1004_s13 = scalar_lea.hbm %s1635_s2, 16 }
  0x34   : > { %p1005_p6 = scmp.ne.s32.totalorder %s1635_s2, %s1004_s13  ;;  %p1011_p13 = scmp.lt.u32.totalorder %s1004_s13, %s1635_s2 }
  0x36   : > { %p1007_p11 = pnand %p1005_p6, %p978_p9 }
  0x38   : > { %p1008_p12 = pneg %p1007_p11 }
  0x3a   : > { %p1013_p1 = pnand %p1011_p13, %p1008_p12 }
  0x3c   : > { %1016 = shalt.err (!%p1013_p1)
}
  0x3d   : > { %s1017_s5 = scalar_lea.vmem %s1282_s9, 16  ;;  %s1024_s25 = scalar_lea.vmem %s1282_s9, 32 }
  0x3e   : > { %p1018_p3 = scmp.ne.s32.totalorder %s1282_s9, %s1017_s5  ;;  %p1025_p5 = scmp.lt.s32.totalorder %s1282_s9, %s1282_s9 }
  0x3f   : > { %p1026_p10 = scmp.lt.s32.totalorder %s1024_s25, %s1017_s5 }
  0x40   : > { %p1020_p8 = pnand %p1018_p3, %p978_p9 }
  0x41   : > { %p1027_p2 = por %p1026_p10, %p1025_p5 }
  0x42   : > { %p1021_p4 = pneg %p1020_p8 }
  0x44   : > { %p1028_p0 = pnand %p1027_p2, %p1021_p4 }
  0x46   : > { %1031 = shalt.err (!%p1028_p0)
}
  0x47   : > { %920 = dma.hbm_to_vmem [thread:$0]  (!%p1272_p7), %s1635_s2, 16, %s1282_s9, [#allocation6]  }
  0x48   : > { %s720_s11 = sshll.u32 %s1307_s10, 7  ;;  %s739_s12 = sshll.u32 %s1166_s18, 11 }
  0x49   : > { %s1652_s0 = sld [smem:[#allocation15_spill]]  ;;  %s188_s6 = scalar_lea.vmem [#allocation2], %s720_s11 }
  0x4a   : > { %s195_s22 = sshll.u32 %s188_s6, 4  ;;  %s185_s23 = scalar_lea.sflag [#allocation3], %s1307_s10  ;;  %s1346_s22 = int_to_ptr.vmem [resolvable:$true] %s195_s22 }
  0x4b   : > { %p1653_p9 = scmp.ne.s32.totalorder %s1651_s7, 0 }
  0x4d   : > { %p1034_p6 = pneg %p1653_p9 }
  0x4f   : > { %s1342_s20 = scalar_lea.hbm %s1652_s0, %s739_s12  ;;  %s1037_s30 = scalar_lea.hbm %s1652_s0, 4096 }
  0x50   : > { %s1032_s5 = scalar_lea.hbm %s1342_s20, 2048  ;;  %p1038_p13 = scmp.lt.u32.totalorder %s1342_s20, %s1652_s0 }
  0x51   : > { %p1033_p7 = scmp.ne.s32.totalorder %s1342_s20, %s1032_s5  ;;  %p1039_p1 = scmp.lt.u32.totalorder %s1037_s30, %s1032_s5 }
  0x52   : > { %p1041_p8 = scmp.lt.u32.totalorder %s1032_s5, %s1342_s20 }
  0x53   : > { %p1035_p11 = pnand %p1034_p6, %p1033_p7  ;;  %p1040_p3 = por %p1039_p1, %p1038_p13 }
  0x55   : > { %p1036_p12 = pneg %p1035_p11  ;;  %p1042_p4 = por %p1041_p8, %p1040_p3 }
  0x57   : > { %p1043_p5 = pnand %p1042_p4, %p1036_p12 }
  0x59   : > { %1046 = shalt.err (!%p1043_p5)
}
  0x5a   : > { %s1047_s14 = scalar_lea.vmem %s1346_s22, 2048  ;;  %s1170_s6 = smov [#allocation2]  }
  0x5b   : > { %p1048_p10 = scmp.ne.s32.totalorder %s1346_s22, %s1047_s14  ;;  %s1052_s9 = sshll.u32 %s1170_s6, 4  ;;  %s1053_s9 = int_to_ptr.vmem [resolvable:$false] %s1052_s9 }
  0x5c   : > { %s1054_s25 = scalar_lea.vmem %s1053_s9, 4096  ;;  %p1055_p7 = scmp.lt.s32.totalorder %s1346_s22, %s1053_s9 }
  0x5d   : > { %p1050_p2 = pnand %p1048_p10, %p1034_p6  ;;  %p1056_p11 = scmp.lt.s32.totalorder %s1054_s25, %s1047_s14 }
  0x5f   : > { %p1051_p0 = pneg %p1050_p2  ;;  %p1057_p13 = por %p1056_p11, %p1055_p7 }
  0x61   : > { %p1058_p1 = pnand %p1057_p13, %p1051_p0 }
  0x63   : > { %1061 = shalt.err (!%p1058_p1)
}
  0x64   : > { %s1171_s5 = smov 64   ;;  %s1172_s30 = smov 4  }
  0x65   : > { %924 = dma.hbm_to_vmem [thread:$0]  (!%p1653_p9), %s1342_s20, 2048, %s1346_s22, %s185_s23, %s1171_s5, %s1171_s5, %s1172_s30  }
  0x66   : > { %s1384_s14 = scalar_lea.hbm %s1636_s3, %s739_s12  ;;  %s209_s6 = scalar_lea.vmem [#allocation8], %s720_s11 }
  0x67   : > { %s216_s9 = sshll.u32 %s209_s6, 4  ;;  %s206_s25 = scalar_lea.sflag [#allocation9], %s1307_s10  ;;  %s1388_s9 = int_to_ptr.vmem [resolvable:$true] %s216_s9 }
  0x68   : > { %s1062_s0 = scalar_lea.hbm %s1384_s14, 2048  ;;  %s1067_s12 = scalar_lea.hbm %s1636_s3, 4096 }
  0x69   : > { %p1063_p12 = scmp.ne.s32.totalorder %s1384_s14, %s1062_s0  ;;  %p1068_p4 = scmp.lt.u32.totalorder %s1384_s14, %s1636_s3 }
  0x6a   : > { %p1069_p5 = scmp.lt.u32.totalorder %s1067_s12, %s1062_s0  ;;  %p1071_p2 = scmp.lt.u32.totalorder %s1062_s0, %s1384_s14 }
  0x6b   : > { %p1065_p3 = pnand %p1063_p12, %p1034_p6 }
  0x6c   : > { %p1070_p10 = por %p1069_p5, %p1068_p4 }
  0x6d   : > { %p1066_p8 = pneg %p1065_p3 }
  0x6e   : > { %p1072_p0 = por %p1071_p2, %p1070_p10 }
  0x70   : > { %p1073_p7 = pnand %p1072_p0, %p1066_p8 }
  0x72   : > { %1076 = shalt.err (!%p1073_p7)
}
  0x73   : > { %s1077_s11 = scalar_lea.vmem %s1388_s9, 2048  ;;  %s1173_s13 = smov [#allocation8]  }
  0x74   : > { %p1078_p11 = scmp.ne.s32.totalorder %s1388_s9, %s1077_s11  ;;  %s1082_s6 = sshll.u32 %s1173_s13, 4  ;;  %s1083_s6 = int_to_ptr.vmem [resolvable:$false] %s1082_s6 }
  0x75   : > { %s1084_s20 = scalar_lea.vmem %s1083_s6, 4096  ;;  %p1085_p12 = scmp.lt.s32.totalorder %s1388_s9, %s1083_s6 }
  0x76   : > { %p1080_p13 = pnand %p1078_p11, %p1034_p6  ;;  %p1086_p3 = scmp.lt.s32.totalorder %s1084_s20, %s1077_s11 }
  0x78   : > { %p1081_p1 = pneg %p1080_p13  ;;  %p1087_p4 = por %p1086_p3, %p1085_p12 }
  0x7a   : > { %p1088_p5 = pnand %p1087_p4, %p1081_p1 }
  0x7c   : > { %1091 = shalt.err (!%p1088_p5)
}
  0x7d   : > { %927 = dma.hbm_to_vmem [thread:$0]  (!%p1653_p9), %s1384_s14, 2048, %s1388_s9, %s206_s25, %s1171_s5, %s1171_s5, %s1172_s30  }
  0x7e   : > { %p1654_p6 = scmp.ne.s32.totalorder %s1648_s29, 0 }
  0x7f   : > { %s1422_s0 = sand.u32 (!%p1654_p6), 1, %s1158_s16   ;;  %p1655_p8 = scmp.ne.s32.totalorder (!%p1654_p6), %s1645_s26, 0 }
  0x80   : > { %228 = sbr.rel (%p1654_p6) target bundleno = 211 (0xd3), region = 36  ;;  %s727_s22 = sshll.u32 (!%p1654_p6), %s1422_s0, 7 }
  0x81   : > { %s231_s12 = scalar_lea.sflag (!%p1654_p6), [#allocation3], %s1422_s0  ;;  %s1426_s7 = scalar_lea.vmem (!%p1654_p6), [#allocation2], %s727_s22 }
  0x87   : > { %1137 = dma.done.wait (%p1655_p8), %s231_s12, 2048  }
  0x88   : > { %1139 = vsyncadd (%p1655_p8), %s231_s12, 4294965248  ;;  %p1656_p9 = scmp.eq.s32.totalorder %s1223_s19, 0 }
  0x8a   : > { %1141 = dma.done.wait (%p1656_p9), [#allocation6], 32   ;;  %p1657_p10 = pmov %p1656_p9 }
  0x8b   : > { %s248_s29 = scalar_lea.sflag [#allocation9], %s1422_s0  ;;  %s1437_s10 = scalar_lea.vmem [#allocation8], %s727_s22 }
  0x8c   : > { %1143 = vsyncadd (%p1657_p10), [#allocation6], 4294967264 }
  0x8d   : > { %1145 = dma.done.wait (%p1655_p8), %s248_s29, 2048  }
  0x8e   : > { %1147 = vsyncadd (%p1655_p8), %s248_s29, 4294965248  ;;  %v743_v0 = vld [vmem:[%s1426_s7] sm:$0xff]   ;;  %v870_v5 = vld [vmem:[%s1426_s7 + $0x8] sm:$0xff]   ;;  %s731_s26 = sshll.u32 %s1422_s0, 8  ;;  %s741_s30 = sshll.u32 %s1223_s19, 12 }
  0x8f   : > { %v1444_v1 = vld [vmem:[#allocation5] ss:$0 sm:$0xff]  ;;  %v744_v2 = vunpack.c.l.bf16 %v743_v0  ;;  %v807_v3 = vld [vmem:[%s1437_s10] sm:$0xff]   ;;  %v745_v4 = vunpack.c.h.bf16 %v743_v0  ;;  %v885_v6 = vld [vmem:[%s1437_s10 + $0x8] sm:$0xff]   ;;  %v748_v10 = vunpack.c.l.bf16 %v870_v5  ;;  %v749_v16 = vunpack.c.h.bf16 %v870_v5  ;;  %s1475_s5 = scalar_lea.vmem [#allocation10], %s731_s26  ;;  %s1585_s23 = scalar_lea.hbm %s1637_s4, %s741_s30 }
  0x90   : > { %v1449_v7 = vld [vmem:[#allocation7] ss:$0 sm:$0xff]  ;;  %v808_v8 = vunpack.c.l.bf16 %v807_v3  ;;  %v809_v9 = vunpack.c.h.bf16 %v807_v3  ;;  %v812_v11 = vunpack.c.l.bf16 %v885_v6  ;;  %v871_v12 = vld [vmem:[%s1426_s7 + $0x10] sm:$0xff]   ;;  %v813_v17 = vunpack.c.h.bf16 %v885_v6  ;;  %v872_v18 = vld [vmem:[%s1426_s7 + $0x18] sm:$0xff]   ;;  %s600_s14 = sshll.u32 %s1475_s5, 4  ;;  %s587_s8 = scalar_lea.sflag [#allocation4], %s1422_s0  ;;  %s1587_s14 = int_to_ptr.vmem [resolvable:$true] %s600_s14 }
  0x91   : > { %v886_v13 = vld [vmem:[%s1437_s10 + $0x10] sm:$0xff]   ;;  %v355_v14 = vmul.f32 %v744_v2, %v1444_v1  ;;  %v356_v15 = vmul.f32 %v745_v4, %v1444_v1  ;;  %v357_v19 = vmul.f32 %v748_v10, %v1444_v1  ;;  %v752_v20 = vunpack.c.l.bf16 %v871_v12  ;;  %v1458_v23 = vld [vmem:[%s1437_s10 + $0x18] sm:$0xff]   ;;  %v888_v49 = vld [vmem:[%s1437_s10 + $0x20] sm:$0xff]   ;;  %s1092_s19 = scalar_lea.vmem %s1587_s14, 4096  ;;  %p1658_p0 = scmp.ne.s32.totalorder %s1646_s27, 0 }
  0x92   : > { %v816_v21 = vunpack.c.l.bf16 %v886_v13  ;;  %v753_v22 = vunpack.c.h.bf16 %v871_v12  ;;  %v358_v26 = vmul.f32 %v749_v16, %v1444_v1  ;;  %v817_v27 = vunpack.c.h.bf16 %v886_v13  ;;  %v873_v40 = vld [vmem:[%s1426_s7 + $0x20] sm:$0xff]   ;;  %v874_v53 = vld [vmem:[%s1426_s7 + $0x28] sm:$0xff]   ;;  %v875_v63 = vld [vmem:[%s1426_s7 + $0x30] sm:$0xff]   ;;  %p1093_p2 = scmp.ne.s32.totalorder %s1587_s14, %s1092_s19  ;;  %s1174_s11 = smov [#allocation10]  }
  0x93   : > { %v394_v24 = vadd.f32 %v1449_v7, %v355_v14  ;;  %v395_v25 = vadd.f32 %v1449_v7, %v356_v15  ;;  %v396_v28 = vadd.f32 %v1449_v7, %v357_v19  ;;  %v359_v29 = vmul.f32 %v752_v20, %v1444_v1  ;;  %v889_v58 = vld [vmem:[%s1437_s10 + $0x28] sm:$0xff]   ;;  %v890_v10 = vld [vmem:[%s1437_s10 + $0x30] sm:$0xff]   ;;  %s1096_s13 = sshll.u32 %s1174_s11, 4  ;;  %s1097_s13 = int_to_ptr.vmem [resolvable:$false] %s1096_s13 }
  0x94   : > { %v360_v30 = vmul.f32 %v753_v22, %v1444_v1  ;;  %v756_v31 = vunpack.c.l.bf16 %v872_v18  ;;  %v397_v34 = vadd.f32 %v1449_v7, %v358_v26  ;;  %v820_v35 = vunpack.c.l.bf16 %v1458_v23  ;;  %v876_v15 = vld [vmem:[%s1426_s7 + $0x38] sm:$0xff]   ;;  %p1094_p7 = pnand %p1093_p2, %p1658_p0  ;;  %s1098_s6 = scalar_lea.vmem %s1097_s13, 8192 }
  0x95   : > { %v426_v32 = vmax.f32 %v394_v24, 0.0  ;;  %v427_v33 = vmax.f32 %v395_v25, 0.0  ;;  %v428_v36 = vmax.f32 %v396_v28, 0.0  ;;  %v398_v37 = vadd.f32 %v1449_v7, %v359_v29  ;;  %v891_v28 = vld [vmem:[%s1437_s10 + $0x38] sm:$0xff]   ;;  %p1099_p13 = scmp.lt.s32.totalorder %s1587_s14, %s1097_s13  ;;  %p1100_p1 = scmp.lt.s32.totalorder %s1098_s6, %s1092_s19 }
  0x96   : > { %v399_v38 = vadd.f32 %v1449_v7, %v360_v30  ;;  %v361_v39 = vmul.f32 %v756_v31, %v1444_v1  ;;  %v429_v43 = vmax.f32 %v397_v34, 0.0  ;;  %v757_v44 = vunpack.c.h.bf16 %v872_v18  ;;  %p1095_p11 = pneg %p1094_p7 }
  0x97   : > { %v522_v41 = vadd.f32 %v808_v8, %v426_v32  ;;  %v523_v42 = vadd.f32 %v809_v9, %v427_v33  ;;  %v524_v45 = vadd.f32 %v812_v11, %v428_v36  ;;  %v430_v46 = vmax.f32 %v398_v37, 0.0  ;;  %v877_v33 = vld [vmem:[%s1426_s7 + $0x40] sm:$0xff]   ;;  %p1101_p12 = por %p1100_p1, %p1099_p13 }
  0x98   : > { %v431_v47 = vmax.f32 %v399_v38, 0.0  ;;  %v400_v48 = vadd.f32 %v1449_v7, %v361_v39  ;;  %v525_v50 = vadd.f32 %v813_v17, %v429_v43  ;;  %v362_v51 = vmul.f32 %v757_v44, %v1444_v1  ;;  %v892_v38 = vld [vmem:[%s1437_s10 + $0x40] sm:$0xff]  }
  0x99   : > { %554 = vst [vmem:[%s1475_s5] sm:$0xff] %v522_v41  ;;  %555 = vst [vmem:[%s1475_s5 + $0x8] sm:$0xff] %v523_v42  ;;  %v760_v52 = vunpack.c.l.bf16 %v873_v40  ;;  %v526_v54 = vadd.f32 %v816_v21, %v430_v46  ;;  %v821_v57 = vunpack.c.h.bf16 %v1458_v23  ;;  %v824_v61 = vunpack.c.l.bf16 %v888_v49  ;;  %p1102_p3 = pnand %p1101_p12, %p1095_p11 }
  0x9a   : > { %556 = vst [vmem:[%s1475_s5 + $0x10] sm:$0xff] %v524_v45  ;;  %v527_v55 = vadd.f32 %v817_v27, %v431_v47  ;;  %v432_v56 = vmax.f32 %v400_v48, 0.0  ;;  %557 = vst [vmem:[%s1475_s5 + $0x18] sm:$0xff] %v525_v50  ;;  %v401_v59 = vadd.f32 %v1449_v7, %v362_v51  ;;  %v761_v62 = vunpack.c.h.bf16 %v873_v40  ;;  %v878_v47 = vld [vmem:[%s1426_s7 + $0x48] sm:$0xff]  }
  0x9b   : > { %v363_v60 = vmul.f32 %v760_v52, %v1444_v1  ;;  %558 = vst [vmem:[%s1475_s5 + $0x20] sm:$0xff] %v526_v54  ;;  %v825_v2 = vunpack.c.h.bf16 %v888_v49  ;;  %v764_v3 = vunpack.c.l.bf16 %v874_v53  ;;  %v765_v4 = vunpack.c.h.bf16 %v874_v53  ;;  %v893_v52 = vld [vmem:[%s1437_s10 + $0x48] sm:$0xff]  }
  0x9c   : > { %559 = vst [vmem:[%s1475_s5 + $0x28] sm:$0xff] %v527_v55  ;;  %v528_v0 = vadd.f32 %v820_v35, %v432_v56  ;;  %v433_v5 = vmax.f32 %v401_v59, 0.0  ;;  %v364_v8 = vmul.f32 %v761_v62, %v1444_v1  ;;  %v828_v9 = vunpack.c.l.bf16 %v889_v58 }
  0x9d   : > { %v402_v6 = vadd.f32 %v1449_v7, %v363_v60  ;;  %v365_v11 = vmul.f32 %v764_v3, %v1444_v1  ;;  %v366_v12 = vmul.f32 %v765_v4, %v1444_v1  ;;  %v829_v13 = vunpack.c.h.bf16 %v889_v58 }
  0x9e   : > { %560 = vst [vmem:[%s1475_s5 + $0x30] sm:$0xff] %v528_v0  ;;  %v768_v14 = vunpack.c.l.bf16 %v875_v63  ;;  %v529_v16 = vadd.f32 %v821_v57, %v433_v5  ;;  %v403_v18 = vadd.f32 %v1449_v7, %v364_v8  ;;  %v769_v19 = vunpack.c.h.bf16 %v875_v63  ;;  %v879_v57 = vld [vmem:[%s1426_s7 + $0x50] sm:$0xff]  }
  0x9f   : > { %v434_v17 = vmax.f32 %v402_v6, 0.0  ;;  %v404_v20 = vadd.f32 %v1449_v7, %v365_v11  ;;  %v405_v21 = vadd.f32 %v1449_v7, %v366_v12  ;;  %v832_v23 = vunpack.c.l.bf16 %v890_v10  ;;  %v894_v8 = vld [vmem:[%s1437_s10 + $0x50] sm:$0xff]  }
  0xa0   : > { %v367_v22 = vmul.f32 %v768_v14, %v1444_v1  ;;  %561 = vst [vmem:[%s1475_s5 + $0x38] sm:$0xff] %v529_v16  ;;  %v435_v25 = vmax.f32 %v403_v18, 0.0  ;;  %v368_v26 = vmul.f32 %v769_v19, %v1444_v1  ;;  %v772_v27 = vunpack.c.l.bf16 %v876_v15 }
  0xa1   : > { %v530_v24 = vadd.f32 %v824_v61, %v434_v17  ;;  %v436_v29 = vmax.f32 %v404_v20, 0.0  ;;  %v437_v30 = vmax.f32 %v405_v21, 0.0  ;;  %v833_v32 = vunpack.c.h.bf16 %v890_v10 }
  0xa2   : > { %v406_v31 = vadd.f32 %v1449_v7, %v367_v22  ;;  %v531_v34 = vadd.f32 %v825_v2, %v435_v25  ;;  %v407_v35 = vadd.f32 %v1449_v7, %v368_v26  ;;  %v369_v36 = vmul.f32 %v772_v27, %v1444_v1  ;;  %v895_v22 = vld [vmem:[%s1437_s10 + $0x58] sm:$0xff]  }
  0xa3   : > { %562 = vst [vmem:[%s1475_s5 + $0x40] sm:$0xff] %v530_v24  ;;  %v773_v37 = vunpack.c.h.bf16 %v876_v15  ;;  %v532_v39 = vadd.f32 %v828_v9, %v436_v29  ;;  %v533_v40 = vadd.f32 %v829_v13, %v437_v30  ;;  %v836_v42 = vunpack.c.l.bf16 %v891_v28  ;;  %v880_v9 = vld [vmem:[%s1426_s7 + $0x58] sm:$0xff]   ;;  %v881_v27 = vld [vmem:[%s1426_s7 + $0x60] sm:$0xff]  }
  0xa4   : > { %v438_v41 = vmax.f32 %v406_v31, 0.0  ;;  %563 = vst [vmem:[%s1475_s5 + $0x48] sm:$0xff] %v531_v34  ;;  %v439_v43 = vmax.f32 %v407_v35, 0.0  ;;  %v408_v44 = vadd.f32 %v1449_v7, %v369_v36  ;;  %v776_v46 = vunpack.c.l.bf16 %v877_v33 }
  0xa5   : > { %v370_v45 = vmul.f32 %v773_v37, %v1444_v1  ;;  %564 = vst [vmem:[%s1475_s5 + $0x50] sm:$0xff] %v532_v39  ;;  %565 = vst [vmem:[%s1475_s5 + $0x58] sm:$0xff] %v533_v40  ;;  %v837_v49 = vunpack.c.h.bf16 %v891_v28  ;;  %v840_v50 = vunpack.c.l.bf16 %v892_v38  ;;  %v777_v51 = vunpack.c.h.bf16 %v877_v33 }
  0xa6   : > { %v534_v48 = vadd.f32 %v832_v23, %v438_v41  ;;  %v535_v53 = vadd.f32 %v833_v32, %v439_v43  ;;  %v440_v54 = vmax.f32 %v408_v44, 0.0  ;;  %v371_v56 = vmul.f32 %v776_v46, %v1444_v1  ;;  %v896_v32 = vld [vmem:[%s1437_s10 + $0x60] sm:$0xff]   ;;  %v897_v46 = vld [vmem:[%s1437_s10 + $0x68] sm:$0xff]  }
  0xa7   : > { %v409_v55 = vadd.f32 %v1449_v7, %v370_v45  ;;  %v372_v58 = vmul.f32 %v777_v51, %v1444_v1  ;;  %v841_v59 = vunpack.c.h.bf16 %v892_v38  ;;  %v780_v60 = vunpack.c.l.bf16 %v878_v47  ;;  %v882_v41 = vld [vmem:[%s1426_s7 + $0x68] sm:$0xff]   ;;  %v883_v51 = vld [vmem:[%s1426_s7 + $0x70] sm:$0xff]  }
  0xa8   : > { %566 = vst [vmem:[%s1475_s5 + $0x60] sm:$0xff] %v534_v48  ;;  %v781_v61 = vunpack.c.h.bf16 %v878_v47  ;;  %567 = vst [vmem:[%s1475_s5 + $0x68] sm:$0xff] %v535_v53  ;;  %v536_v62 = vadd.f32 %v836_v42, %v440_v54  ;;  %v410_v0 = vadd.f32 %v1449_v7, %v371_v56  ;;  %v844_v2 = vunpack.c.l.bf16 %v893_v52 }
  0xa9   : > { %v441_v63 = vmax.f32 %v409_v55, 0.0  ;;  %v411_v3 = vadd.f32 %v1449_v7, %v372_v58  ;;  %v373_v4 = vmul.f32 %v780_v60, %v1444_v1  ;;  %v784_v6 = vunpack.c.l.bf16 %v879_v57 }
  0xaa   : > { %v374_v5 = vmul.f32 %v781_v61, %v1444_v1  ;;  %568 = vst [vmem:[%s1475_s5 + $0x70] sm:$0xff] %v536_v62  ;;  %v442_v11 = vmax.f32 %v410_v0, 0.0  ;;  %v845_v12 = vunpack.c.h.bf16 %v893_v52  ;;  %v785_v13 = vunpack.c.h.bf16 %v879_v57  ;;  %v898_v0 = vld [vmem:[%s1437_s10 + $0x70] sm:$0xff]  }
  0xab   : > { %v537_v10 = vadd.f32 %v837_v49, %v441_v63  ;;  %v443_v14 = vmax.f32 %v411_v3, 0.0  ;;  %v412_v15 = vadd.f32 %v1449_v7, %v373_v4  ;;  %v375_v17 = vmul.f32 %v784_v6, %v1444_v1 }
  0xac   : > { %v413_v16 = vadd.f32 %v1449_v7, %v374_v5  ;;  %v538_v18 = vadd.f32 %v840_v50, %v442_v11  ;;  %v848_v19 = vunpack.c.l.bf16 %v894_v8  ;;  %v376_v20 = vmul.f32 %v785_v13, %v1444_v1 }
  0xad   : > { %569 = vst [vmem:[%s1475_s5 + $0x78] sm:$0xff] %v537_v10  ;;  %v788_v21 = vunpack.c.l.bf16 %v880_v9  ;;  %v539_v23 = vadd.f32 %v841_v59, %v443_v14  ;;  %v444_v24 = vmax.f32 %v412_v15, 0.0  ;;  %v414_v26 = vadd.f32 %v1449_v7, %v375_v17 }
  0xae   : > { %v445_v25 = vmax.f32 %v413_v16, 0.0  ;;  %570 = vst [vmem:[%s1475_s5 + $0x80] sm:$0xff] %v538_v18  ;;  %v415_v28 = vadd.f32 %v1449_v7, %v376_v20  ;;  %v849_v29 = vunpack.c.h.bf16 %v894_v8  ;;  %v789_v31 = vunpack.c.h.bf16 %v880_v9  ;;  %v899_v20 = vld [vmem:[%s1437_s10 + $0x78] sm:$0xff]  }
  0xaf   : > { %v377_v30 = vmul.f32 %v788_v21, %v1444_v1  ;;  %571 = vst [vmem:[%s1475_s5 + $0x88] sm:$0xff] %v539_v23  ;;  %v540_v33 = vadd.f32 %v844_v2, %v444_v24  ;;  %v446_v35 = vmax.f32 %v414_v26, 0.0  ;;  %v852_v36 = vunpack.c.l.bf16 %v895_v22  ;;  %v884_v2 = vld [vmem:[%s1426_s7 + $0x78] sm:$0xff]  }
  0xb0   : > { %v541_v34 = vadd.f32 %v845_v12, %v445_v25  ;;  %v447_v37 = vmax.f32 %v415_v28, 0.0  ;;  %v378_v39 = vmul.f32 %v789_v31, %v1444_v1  ;;  %v792_v40 = vunpack.c.l.bf16 %v881_v27 }
  0xb1   : > { %v416_v38 = vadd.f32 %v1449_v7, %v377_v30  ;;  %572 = vst [vmem:[%s1475_s5 + $0x90] sm:$0xff] %v540_v33  ;;  %v542_v42 = vadd.f32 %v848_v19, %v446_v35  ;;  %v853_v43 = vunpack.c.h.bf16 %v895_v22  ;;  %v856_v44 = vunpack.c.l.bf16 %v896_v32 }
  0xb2   : > { %573 = vst [vmem:[%s1475_s5 + $0x98] sm:$0xff] %v541_v34  ;;  %v793_v45 = vunpack.c.h.bf16 %v881_v27  ;;  %v543_v47 = vadd.f32 %v849_v29, %v447_v37  ;;  %v417_v49 = vadd.f32 %v1449_v7, %v378_v39  ;;  %v379_v50 = vmul.f32 %v792_v40, %v1444_v1 }
  0xb3   : > { %v448_v48 = vmax.f32 %v416_v38, 0.0  ;;  %574 = vst [vmem:[%s1475_s5 + $0xa0] sm:$0xff] %v542_v42  ;;  %v857_v53 = vunpack.c.h.bf16 %v896_v32  ;;  %v796_v54 = vunpack.c.l.bf16 %v882_v41  ;;  %v797_v55 = vunpack.c.h.bf16 %v882_v41 }
  0xb4   : > { %v380_v52 = vmul.f32 %v793_v45, %v1444_v1  ;;  %575 = vst [vmem:[%s1475_s5 + $0xa8] sm:$0xff] %v543_v47  ;;  %v449_v57 = vmax.f32 %v417_v49, 0.0  ;;  %v418_v58 = vadd.f32 %v1449_v7, %v379_v50  ;;  %v860_v59 = vunpack.c.l.bf16 %v897_v46 }
  0xb5   : > { %v544_v56 = vadd.f32 %v852_v36, %v448_v48  ;;  %v381_v61 = vmul.f32 %v796_v54, %v1444_v1  ;;  %v382_v62 = vmul.f32 %v797_v55, %v1444_v1  ;;  %v800_v63 = vunpack.c.l.bf16 %v883_v51 }
  0xb6   : > { %v419_v60 = vadd.f32 %v1449_v7, %v380_v52  ;;  %v545_v3 = vadd.f32 %v853_v43, %v449_v57  ;;  %v450_v4 = vmax.f32 %v418_v58, 0.0  ;;  %v861_v5 = vunpack.c.h.bf16 %v897_v46 }
  0xb7   : > { %576 = vst [vmem:[%s1475_s5 + $0xb0] sm:$0xff] %v544_v56  ;;  %v801_v6 = vunpack.c.h.bf16 %v883_v51  ;;  %v420_v9 = vadd.f32 %v1449_v7, %v381_v61  ;;  %v421_v10 = vadd.f32 %v1449_v7, %v382_v62  ;;  %v383_v11 = vmul.f32 %v800_v63, %v1444_v1 }
  0xb8   : > { %v451_v8 = vmax.f32 %v419_v60, 0.0  ;;  %577 = vst [vmem:[%s1475_s5 + $0xb8] sm:$0xff] %v545_v3  ;;  %v546_v12 = vadd.f32 %v856_v44, %v450_v4  ;;  %v864_v13 = vunpack.c.l.bf16 %v898_v0  ;;  %v804_v15 = vunpack.c.l.bf16 %v884_v2 }
  0xb9   : > { %v384_v14 = vmul.f32 %v801_v6, %v1444_v1  ;;  %v452_v17 = vmax.f32 %v420_v9, 0.0  ;;  %v453_v18 = vmax.f32 %v421_v10, 0.0  ;;  %v422_v19 = vadd.f32 %v1449_v7, %v383_v11 }
  0xba   : > { %v547_v16 = vadd.f32 %v857_v53, %v451_v8  ;;  %578 = vst [vmem:[%s1475_s5 + $0xc0] sm:$0xff] %v546_v12  ;;  %v865_v22 = vunpack.c.h.bf16 %v898_v0  ;;  %v385_v23 = vmul.f32 %v804_v15, %v1444_v1  ;;  %v805_v24 = vunpack.c.h.bf16 %v884_v2 }
  0xbb   : > { %v423_v21 = vadd.f32 %v1449_v7, %v384_v14  ;;  %v548_v25 = vadd.f32 %v860_v59, %v452_v17  ;;  %v549_v26 = vadd.f32 %v861_v5, %v453_v18  ;;  %v454_v27 = vmax.f32 %v422_v19, 0.0 }
  0xbc   : > { %579 = vst [vmem:[%s1475_s5 + $0xc8] sm:$0xff] %v547_v16  ;;  %v424_v29 = vadd.f32 %v1449_v7, %v385_v23  ;;  %v868_v30 = vunpack.c.l.bf16 %v899_v20  ;;  %v386_v31 = vmul.f32 %v805_v24, %v1444_v1  ;;  %v869_v36 = vunpack.c.h.bf16 %v899_v20 }
  0xbd   : > { %v455_v28 = vmax.f32 %v423_v21, 0.0  ;;  %580 = vst [vmem:[%s1475_s5 + $0xd0] sm:$0xff] %v548_v25  ;;  %581 = vst [vmem:[%s1475_s5 + $0xd8] sm:$0xff] %v549_v26  ;;  %v550_v32 = vadd.f32 %v864_v13, %v454_v27 }
  0xbe   : > { %v456_v34 = vmax.f32 %v424_v29, 0.0  ;;  %v425_v35 = vadd.f32 %v1449_v7, %v386_v31 }
  0xbf   : > { %v551_v33 = vadd.f32 %v865_v22, %v455_v28  ;;  %582 = vst [vmem:[%s1475_s5 + $0xe0] sm:$0xff] %v550_v32 }
  0xc0   : > { %v552_v37 = vadd.f32 %v868_v30, %v456_v34  ;;  %v457_v38 = vmax.f32 %v425_v35, 0.0 }
  0xc1   : > { %583 = vst [vmem:[%s1475_s5 + $0xe8] sm:$0xff] %v551_v33 }
  0xc2   : > { %584 = vst [vmem:[%s1475_s5 + $0xf0] sm:$0xff] %v552_v37  ;;  %v553_v1 = vadd.f32 %v869_v36, %v457_v38 }
  0xc4   : > { %585 = vst [vmem:[%s1475_s5 + $0xf8] sm:$0xff] %v553_v1 }
  0xc5   : > { %1105 = shalt.err (!%p1102_p3)
}
  0xc6   : > { %s1106_s20 = scalar_lea.hbm %s1585_s23, 4096  ;;  %s1110_s7 = scalar_lea.hbm %s1637_s4, 8192 }
  0xc7   : > { %p1107_p4 = scmp.ne.s32.totalorder %s1585_s23, %s1106_s20  ;;  %p1111_p8 = scmp.lt.u32.totalorder %s1585_s23, %s1637_s4 }
  0xc8   : > { %p1112_p9 = scmp.lt.u32.totalorder %s1110_s7, %s1106_s20  ;;  %p1114_p2 = scmp.lt.u32.totalorder %s1106_s20, %s1585_s23 }
  0xc9   : > { %p1108_p5 = pnand %p1107_p4, %p1658_p0 }
  0xca   : > { %p1113_p10 = por %p1112_p9, %p1111_p8 }
  0xcb   : > { %p1109_p6 = pneg %p1108_p5 }
  0xcc   : > { %p1115_p7 = por %p1114_p2, %p1113_p10 }
  0xce   : > { %p1116_p11 = pnand %p1115_p7, %p1109_p6 }
  0xd0   : > { %1119 = shalt.err (!%p1116_p11)
}
  0xd1   : > { %s1175_s26 = smov 128   ;;  %s1176_s5 = smov 8  }
  0xd2   : > { %912 = dma.vmem_to_hbm [thread:$0]  (%p1658_p0), %s1587_s14, 4096, %s1585_s23, %s587_s8, %s1175_s26, %s1175_s26, %s1176_s5  }
  0xd3 PF: > { %s615_s30 = sand.u32 1, %s1154_s15   ;;  %p1659_p13 = scmp.ne.s32.totalorder %s1647_s28, 0 }
  0xd4   : > { %p1660_p1 = scmp.ge.s32.totalorder %s1166_s18, 2  ;;  %s616_s9 = scalar_lea.sflag [#allocation4], %s615_s30 }
  0xd6   : > { %p929_p12 = pnand %p1660_p1, %p1659_p13 }
  0xd8   : > { %1149 = dma.done.wait (!%p929_p12), %s616_s9, 4096  }
  0xd9   : > { %1151 = vsyncadd (!%p929_p12), %s616_s9, 4294963200  ;;  %p21_p3 = scmp.ge.s32.totalorder %s1227_s21, 4   ;;  %s1661_s15 = smov %s1158_s16 }
  0xda   : > { %s1662_s16 = smov %s1162_s17  ;;  %s1663_s17 = smov %s1239_s24 }
  0xdb   : > { %s1664_s18 = smov %s1227_s21  ;;  %23 = sbr.rel (!%p21_p3) target bundleno = 10 (0xa), region = 102 }
  0xe2   :  { %621 = vsyncpa [#allocation3], 1 }
  0xe3   :  { %623 = vsyncpa [#allocation3 + $0x1], 1 }
  0xe4   :  { %624 = vsyncpa [#allocation6], 1 }
  0xe5   :  { %625 = vsyncpa [#allocation9], 1 }
  0xe6   :  { %627 = vsyncpa [#allocation9 + $0x1], 1 }
  0xe7   :  { %628 = vsyncpa [#allocation4], 1 }
  0xe8   :  { %630 = vsyncpa [#allocation4 + $0x1], 1 }

</bundles_post_ra>
